<compile_context>
chip_gen: v7x
topology: tpu7x:2x2x1
jax: 0.10.0
libtpu: 0.0.40
codegen_flags: <defaults>
</compile_context>

<pallas_src>
import math

import jax
import jax.numpy as jnp
from jax.experimental import pallas as pl
from jax.experimental.pallas import tpu as pltpu

# --- model hyper-params (stand-ins for the torch module's globals) -----------
VOCAB_SIZE = 128
WORD_SIZE = 32
THOUGHT_SIZE = 32
MAXLEN = 8
N_SENT = 4          # number of consecutive sentences (dim 0 of `sentences`)
EOS = 2


# ----------------------------- helpers ---------------------------------------
def _lstm_cell(gates, c, hdim):
    # One full-width sigmoid + one full-width tanh on the (N, 4H) gates,
    # then slice i, f, g, o (PyTorch gate order).
    sig = jax.nn.sigmoid(gates)
    tnh = jnp.tanh(gates)
    i = sig[:, 0 * hdim:1 * hdim]
    f = sig[:, 1 * hdim:2 * hdim]
    g = tnh[:, 2 * hdim:3 * hdim]
    o = sig[:, 3 * hdim:4 * hdim]
    c_new = f * c + i * g
    h_new = o * jnp.tanh(c_new)
    return h_new, c_new


def _masked_ce_row(logits, tgt_oh, mask):
    # Replicates F.cross_entropy(logits * mask, targets) per row (no reduce).
    masked = logits * mask
    m = jnp.max(masked, axis=-1, keepdims=True)
    lse = m + jnp.log(jnp.sum(jnp.exp(masked - m), axis=-1, keepdims=True))
    tgt_logit = jnp.sum(masked * tgt_oh, axis=-1, keepdims=True)
    return lse - tgt_logit


# ----------------------------- fused Pallas kernel ---------------------------
def _uniskip_kernel(ids_ref, emb_ref, x_w_ref, enc_whh_ref, enc_b_ref,
                    th_w_ref, prev_b_ref, next_b_ref, dec_rhs_ref, wo_b_ref,
                    loss_ref, prev0_ref, next0_ref):
    T, B, W, H, V = MAXLEN, N_SENT, WORD_SIZE, THOUGHT_SIZE, VOCAB_SIZE
    Bm1 = B - 1
    G = 4 * W            # 128 (decoder gate width)
    GH = 4 * H           # 128 (encoder gate width)
    f32, bf16 = jnp.float32, jnp.bfloat16

    # ---- embedding: one-hot matmul (MXU, bf16) + tanh (f32) -----------------
    ids = ids_ref[...]                                            # (T*B, 1) time-major
    onehot = (jax.lax.broadcasted_iota(jnp.int32, (T * B, V), 1)
              == ids).astype(bf16)                                # (T*B, V) bf16
    emb_f32 = jnp.tanh(jnp.dot(onehot, emb_ref[...],
                               preferred_element_type=f32))       # (T*B, W) f32
    emb = emb_f32.astype(bf16)

    # ---- all batched x-side gate contributions in ONE MXU push --------------
    # columns: [enc gates (128) | prev-dec word gates (128) | next-dec word gates (128)]
    xg_all = jnp.dot(emb, x_w_ref[...], preferred_element_type=f32)  # (T*B, 384)
    enc_xg = xg_all[:, 0:GH] + enc_b_ref[...]
    prev_xg = xg_all[:, GH:GH + G]
    next_xg = xg_all[:, GH + G:GH + 2 * G]

    # ---- encoder LSTM over the reversed sequence (only final h is used) -----
    enc_whh = enc_whh_ref[...]
    h = jnp.zeros((B, H), f32)
    c = jnp.zeros((B, H), f32)
    for t in range(T):
        s = T - 1 - t                                             # reverse_variable
        gates = enc_xg[s * B:(s + 1) * B, :] + jnp.dot(
            h.astype(bf16), enc_whh, preferred_element_type=f32)
        h, c = _lstm_cell(gates, c, H)
    thoughts = h                                                  # (B, THOUGHT)

    # ---- thought-side contributions for BOTH decoders in one push -----------
    th_g = jnp.dot(thoughts.astype(bf16), th_w_ref[...],
                   preferred_element_type=f32)                    # (B, 256)
    base_prev = th_g[1:, 0:G] + prev_b_ref[...]        # prev dec conditioned on thoughts[1:]
    base_next = th_g[:Bm1, G:2 * G] + next_b_ref[...]  # next dec conditioned on thoughts[:-1]

    dec_rhs = dec_rhs_ref[...]                                    # (64, 512) bf16
    wo_b = wo_b_ref[...]

    # ---- merged decoder recurrence: ONE MXU push per timestep ---------------
    hc_prev = jnp.zeros((Bm1, G), f32)     # hd_prev @ prev_whh (from prev step)
    hc_next = jnp.zeros((Bm1, G), f32)
    cd_prev = jnp.zeros((Bm1, W), f32)
    cd_next = jnp.zeros((Bm1, W), f32)
    loss_prev = jnp.zeros((Bm1, 1), f32)
    loss_next = jnp.zeros((Bm1, 1), f32)
    prev_rows = []
    next_rows = []
    tgt_iota = jax.lax.broadcasted_iota(jnp.int32, (Bm1, V), 1)

    for t in range(T):
        gates_prev = base_prev + hc_prev
        gates_next = base_next + hc_next
        if t > 0:   # t == 0 uses zero delayed embeddings -> zero contribution
            lo = (t - 1) * B
            gates_prev = gates_prev + prev_xg[lo:lo + Bm1, :]           # sents 0..B-2
            gates_next = gates_next + next_xg[lo + 1:lo + 1 + Bm1, :]   # sents 1..B-1
        hd_prev, cd_prev = _lstm_cell(gates_prev, cd_prev, W)
        hd_next, cd_next = _lstm_cell(gates_next, cd_next, W)

        # Fused push: [hd_prev | hd_next] @ block-diag([prev_whh|next_whh|wo|wo])
        lhs = jnp.concatenate([hd_prev, hd_next], axis=1).astype(bf16)  # (B-1, 64)
        fused = jnp.dot(lhs, dec_rhs, preferred_element_type=f32)       # (B-1, 512)
        hc_prev = fused[:, 0:G]
        hc_next = fused[:, G:2 * G]
        logits_prev = fused[:, 2 * G:2 * G + V] + wo_b
        logits_next = fused[:, 2 * G + V:2 * G + 2 * V] + wo_b
        prev_rows.append(logits_prev[0:1, :])
        next_rows.append(logits_next[0:1, :])

        # masked CE, replicating F.cross_entropy(logits * mask, targets) with
        # mask = (target token != EOS); target one-hots recomputed per step.
        tgt_prev = ids[t * B:t * B + Bm1, :]                  # targets sentences[:-1]
        tgt_next = ids[t * B + 1:t * B + 1 + Bm1, :]          # targets sentences[1:]
        oh_prev = (tgt_iota == tgt_prev).astype(f32)
        oh_next = (tgt_iota == tgt_next).astype(f32)
        mask_prev = (tgt_prev != EOS).astype(f32)
        mask_next = (tgt_next != EOS).astype(f32)
        loss_prev = loss_prev + _masked_ce_row(logits_prev, oh_prev, mask_prev)
        loss_next = loss_next + _masked_ce_row(logits_next, oh_next, mask_next)

    # Coalesced, lane-dense (8, 128) output stores.
    prev0_ref[...] = jnp.concatenate(prev_rows, axis=0)
    next0_ref[...] = jnp.concatenate(next_rows, axis=0)
    # F.cross_entropy default reduction='mean' over T*(B-1) rows, per decoder.
    loss_ref[0, 0] = (jnp.sum(loss_prev) + jnp.sum(loss_next)) / (T * Bm1)


def _fused_forward_call(ids, params, T):
    return pl.pallas_call(
        _uniskip_kernel,
        out_shape=(
            jax.ShapeDtypeStruct((1, 1), jnp.float32),            # total loss
            jax.ShapeDtypeStruct((T, VOCAB_SIZE), jnp.float32),   # prev_pred[0]
            jax.ShapeDtypeStruct((T, VOCAB_SIZE), jnp.float32),   # next_pred[0]
        ),
        in_specs=[pl.BlockSpec(memory_space=pltpu.MemorySpace.VMEM)] * 10,
        out_specs=(
            pl.BlockSpec(memory_space=pltpu.MemorySpace.SMEM),
            pl.BlockSpec(memory_space=pltpu.MemorySpace.VMEM),
            pl.BlockSpec(memory_space=pltpu.MemorySpace.VMEM),
        ),
    )(ids, params['emb'], params['x_w'], params['enc_whh'], params['enc_b'],
      params['th_w'], params['prev_b'], params['next_b'], params['dec_rhs'],
      params['wo_b'])


# ----------------------------- parameters ------------------------------------
def init_params(key):
    ks = jax.random.split(key, 14)
    bf16 = jnp.bfloat16

    def u(k, shape, scale):
        return jax.random.uniform(k, shape, jnp.float32, -scale, scale)

    p = {}
    p['emb'] = u(ks[0], (VOCAB_SIZE, WORD_SIZE), 0.1).astype(bf16)

    # Encoder LSTM: input=WORD_SIZE, hidden=THOUGHT_SIZE (weights transposed).
    s = 1.0 / math.sqrt(THOUGHT_SIZE)
    enc_wih = u(ks[1], (WORD_SIZE, 4 * THOUGHT_SIZE), s)
    p['enc_whh'] = u(ks[2], (THOUGHT_SIZE, 4 * THOUGHT_SIZE), s).astype(bf16)
    p['enc_b'] = u(ks[3], (1, 4 * THOUGHT_SIZE), s)          # b_ih + b_hh folded

    # Decoder LSTMs: input = [thought | delayed word emb], hidden = WORD_SIZE.
    s = 1.0 / math.sqrt(WORD_SIZE)
    prev_wth = u(ks[4], (THOUGHT_SIZE, 4 * WORD_SIZE), s)
    prev_wwe = u(ks[5], (WORD_SIZE, 4 * WORD_SIZE), s)
    prev_whh = u(ks[6], (WORD_SIZE, 4 * WORD_SIZE), s)
    p['prev_b'] = u(ks[7], (1, 4 * WORD_SIZE), s)
    next_wth = u(ks[8], (THOUGHT_SIZE, 4 * WORD_SIZE), s)
    next_wwe = u(ks[9], (WORD_SIZE, 4 * WORD_SIZE), s)
    next_whh = u(ks[10], (WORD_SIZE, 4 * WORD_SIZE), s)
    p['next_b'] = u(ks[11], (1, 4 * WORD_SIZE), s)
    worder_w = u(ks[12], (WORD_SIZE, VOCAB_SIZE), s)          # Linear(WORD->VOCAB)
    p['wo_b'] = u(ks[13], (1, VOCAB_SIZE), s)

    # Fused x-side weights: emb @ [enc_wih | prev_wwe | next_wwe] -> (32, 384).
    p['x_w'] = jnp.concatenate([enc_wih, prev_wwe, next_wwe], axis=1).astype(bf16)
    # Fused thought weights: thoughts @ [prev_wth | next_wth] -> (32, 256).
    p['th_w'] = jnp.concatenate([prev_wth, next_wth], axis=1).astype(bf16)
    # Block-diagonal recurrent RHS for the merged decoder step (64, 512):
    #   rows 0:32  (hd_prev): [prev_whh |    0     | worder_w |    0     ]
    #   rows 32:64 (hd_next): [   0     | next_whh |    0     | worder_w ]
    z_g = jnp.zeros((WORD_SIZE, 4 * WORD_SIZE), jnp.float32)
    z_v = jnp.zeros((WORD_SIZE, VOCAB_SIZE), jnp.float32)
    top = jnp.concatenate([prev_whh, z_g, worder_w, z_v], axis=1)
    bot = jnp.concatenate([z_g, next_whh, z_v, worder_w], axis=1)
    p['dec_rhs'] = jnp.concatenate([top, bot], axis=0).astype(bf16)
    return p


# ----------------------------- forward pass ----------------------------------
@jax.jit
def uniskip_forward(params, sentences):
    B, T = sentences.shape                                   # (N_SENT, MAXLEN)
    # time-major flattened token ids: row t*B + b == sentences[b, t]
    ids = sentences.T.reshape(T * B, 1).astype(jnp.int32)
    loss, prev0, next0 = _fused_forward_call(ids, params, T)
    prev_pred_ids = jnp.argmax(prev0, axis=1)                # tiny glue argmax
    next_pred_ids = jnp.argmax(next0, axis=1)
    return loss[0, 0], sentences[0], sentences[1], prev_pred_ids, next_pred_ids


if __name__ == "__main__":
    key = jax.random.PRNGKey(0)
    pkey, skey = jax.random.split(key)
    params = init_params(pkey)
    sentences = jax.random.randint(skey, (N_SENT, MAXLEN), 0, VOCAB_SIZE,
                                   dtype=jnp.int32)
    out = uniskip_forward(params, sentences)
    out = jax.block_until_ready(out)
    print("KERNEL_OK")
</pallas_src>

<mosaic_0001>
module attributes {stable_mosaic.version = 11 : i64} {
  func.func @_uniskip_kernel(%arg0: memref<32x1xi32, #tpu.memory_space<vmem>>, %arg1: memref<128x32xbf16, #tpu.memory_space<vmem>>, %arg2: memref<32x384xbf16, #tpu.memory_space<vmem>>, %arg3: memref<32x128xbf16, #tpu.memory_space<vmem>>, %arg4: memref<1x128xf32, #tpu.memory_space<vmem>>, %arg5: memref<32x256xbf16, #tpu.memory_space<vmem>>, %arg6: memref<1x128xf32, #tpu.memory_space<vmem>>, %arg7: memref<1x128xf32, #tpu.memory_space<vmem>>, %arg8: memref<64x512xbf16, #tpu.memory_space<vmem>>, %arg9: memref<1x128xf32, #tpu.memory_space<vmem>>, %arg10: memref<1x1xf32, #tpu.memory_space<smem>>, %arg11: memref<8x128xf32, #tpu.memory_space<vmem>>, %arg12: memref<8x128xf32, #tpu.memory_space<vmem>>) attributes {dimension_semantics = [], scalar_prefetch = 0 : i64, scratch_operands = 0 : i64, tpu.core_type = #tpu.core_type<tc>} {
    %c0 = arith.constant 0 : index
    %c0_0 = arith.constant 0 : index
    %0 = vector.load %arg0[%c0, %c0_0] : memref<32x1xi32, #tpu.memory_space<vmem>>, vector<32x1xi32>
    %1 = tpu.iota {dimensions = array<i32: 1>} : vector<32x128xi32>
    %2 = vector.broadcast %0 : vector<32x1xi32> to vector<32x128xi32>
    %3 = arith.cmpi eq, %1, %2 : vector<32x128xi32>
    %4 = arith.extui %3 : vector<32x128xi1> to vector<32x128xi32>
    %5 = arith.sitofp %4 : vector<32x128xi32> to vector<32x128xf32>
    %6 = arith.truncf %5 : vector<32x128xf32> to vector<32x128xbf16>
    %c0_1 = arith.constant 0 : index
    %c0_2 = arith.constant 0 : index
    %7 = vector.load %arg1[%c0_1, %c0_2] : memref<128x32xbf16, #tpu.memory_space<vmem>>, vector<128x32xbf16>
    %cst = arith.constant dense<0.000000e+00> : vector<32x32xf32>
    %8 = tpu.matmul %6, %7, %cst {dimension_numbers = #tpu.dot_dimension_numbers<[1], [0], [0], [1], [0, 0, 1, 1], [], []>} : vector<32x128xbf16>, vector<128x32xbf16>, vector<32x32xf32> -> vector<32x32xf32>
    %9 = math.tanh %8 : vector<32x32xf32>
    %10 = arith.truncf %9 : vector<32x32xf32> to vector<32x32xbf16>
    %c0_3 = arith.constant 0 : index
    %c0_4 = arith.constant 0 : index
    %11 = vector.load %arg2[%c0_3, %c0_4] : memref<32x384xbf16, #tpu.memory_space<vmem>>, vector<32x384xbf16>
    %cst_5 = arith.constant dense<0.000000e+00> : vector<32x384xf32>
    %12 = tpu.matmul %10, %11, %cst_5 {dimension_numbers = #tpu.dot_dimension_numbers<[1], [0], [0], [1], [0, 0, 1, 1], [], []>} : vector<32x32xbf16>, vector<32x384xbf16>, vector<32x384xf32> -> vector<32x384xf32>
    %13 = vector.extract_strided_slice %12 {offsets = [0, 0], sizes = [32, 128], strides = [1, 1]} : vector<32x384xf32> to vector<32x128xf32>
    %c0_6 = arith.constant 0 : index
    %c0_7 = arith.constant 0 : index
    %14 = vector.load %arg4[%c0_6, %c0_7] : memref<1x128xf32, #tpu.memory_space<vmem>>, vector<1x128xf32>
    %15 = vector.broadcast %14 : vector<1x128xf32> to vector<32x128xf32>
    %16 = arith.addf %13, %15 : vector<32x128xf32>
    %17 = vector.extract_strided_slice %12 {offsets = [0, 128], sizes = [32, 128], strides = [1, 1]} : vector<32x384xf32> to vector<32x128xf32>
    %18 = vector.extract_strided_slice %12 {offsets = [0, 256], sizes = [32, 128], strides = [1, 1]} : vector<32x384xf32> to vector<32x128xf32>
    %c0_8 = arith.constant 0 : index
    %c0_9 = arith.constant 0 : index
    %19 = vector.load %arg3[%c0_8, %c0_9] : memref<32x128xbf16, #tpu.memory_space<vmem>>, vector<32x128xbf16>
    %cst_10 = arith.constant 0.000000e+00 : f32
    %20 = vector.broadcast %cst_10 : f32 to vector<4x32xf32>
    %cst_11 = arith.constant 0.000000e+00 : f32
    %21 = vector.broadcast %cst_11 : f32 to vector<4x32xf32>
    %22 = vector.extract_strided_slice %16 {offsets = [28, 0], sizes = [4, 128], strides = [1, 1]} : vector<32x128xf32> to vector<4x128xf32>
    %23 = arith.truncf %20 : vector<4x32xf32> to vector<4x32xbf16>
    %cst_12 = arith.constant dense<0.000000e+00> : vector<4x128xf32>
    %24 = tpu.matmul %23, %19, %cst_12 {dimension_numbers = #tpu.dot_dimension_numbers<[1], [0], [0], [1], [0, 0, 1, 1], [], []>} : vector<4x32xbf16>, vector<32x128xbf16>, vector<4x128xf32> -> vector<4x128xf32>
    %25 = arith.addf %22, %24 : vector<4x128xf32>
    %26 = arith.negf %25 : vector<4x128xf32>
    %27 = math.exp %26 : vector<4x128xf32>
    %cst_13 = arith.constant 1.000000e+00 : f32
    %28 = vector.broadcast %cst_13 : f32 to vector<4x128xf32>
    %29 = arith.addf %28, %27 : vector<4x128xf32>
    %30 = arith.divf %28, %29 : vector<4x128xf32>
    %31 = math.tanh %25 : vector<4x128xf32>
    %32 = vector.extract_strided_slice %30 {offsets = [0, 0], sizes = [4, 32], strides = [1, 1]} : vector<4x128xf32> to vector<4x32xf32>
    %33 = vector.extract_strided_slice %30 {offsets = [0, 32], sizes = [4, 32], strides = [1, 1]} : vector<4x128xf32> to vector<4x32xf32>
    %34 = vector.extract_strided_slice %31 {offsets = [0, 64], sizes = [4, 32], strides = [1, 1]} : vector<4x128xf32> to vector<4x32xf32>
    %35 = vector.extract_strided_slice %30 {offsets = [0, 96], sizes = [4, 32], strides = [1, 1]} : vector<4x128xf32> to vector<4x32xf32>
    %36 = arith.mulf %33, %21 : vector<4x32xf32>
    %37 = arith.mulf %32, %34 : vector<4x32xf32>
    %38 = arith.addf %36, %37 : vector<4x32xf32>
    %39 = math.tanh %38 : vector<4x32xf32>
    %40 = arith.mulf %35, %39 : vector<4x32xf32>
    %41 = vector.extract_strided_slice %16 {offsets = [24, 0], sizes = [4, 128], strides = [1, 1]} : vector<32x128xf32> to vector<4x128xf32>
    %42 = arith.truncf %40 : vector<4x32xf32> to vector<4x32xbf16>
    %cst_14 = arith.constant dense<0.000000e+00> : vector<4x128xf32>
    %43 = tpu.matmul %42, %19, %cst_14 {dimension_numbers = #tpu.dot_dimension_numbers<[1], [0], [0], [1], [0, 0, 1, 1], [], []>} : vector<4x32xbf16>, vector<32x128xbf16>, vector<4x128xf32> -> vector<4x128xf32>
    %44 = arith.addf %41, %43 : vector<4x128xf32>
    %45 = arith.negf %44 : vector<4x128xf32>
    %46 = math.exp %45 : vector<4x128xf32>
    %cst_15 = arith.constant 1.000000e+00 : f32
    %47 = vector.broadcast %cst_15 : f32 to vector<4x128xf32>
    %48 = arith.addf %47, %46 : vector<4x128xf32>
    %49 = arith.divf %47, %48 : vector<4x128xf32>
    %50 = math.tanh %44 : vector<4x128xf32>
    %51 = vector.extract_strided_slice %49 {offsets = [0, 0], sizes = [4, 32], strides = [1, 1]} : vector<4x128xf32> to vector<4x32xf32>
    %52 = vector.extract_strided_slice %49 {offsets = [0, 32], sizes = [4, 32], strides = [1, 1]} : vector<4x128xf32> to vector<4x32xf32>
    %53 = vector.extract_strided_slice %50 {offsets = [0, 64], sizes = [4, 32], strides = [1, 1]} : vector<4x128xf32> to vector<4x32xf32>
    %54 = vector.extract_strided_slice %49 {offsets = [0, 96], sizes = [4, 32], strides = [1, 1]} : vector<4x128xf32> to vector<4x32xf32>
    %55 = arith.mulf %52, %38 : vector<4x32xf32>
    %56 = arith.mulf %51, %53 : vector<4x32xf32>
    %57 = arith.addf %55, %56 : vector<4x32xf32>
    %58 = math.tanh %57 : vector<4x32xf32>
    %59 = arith.mulf %54, %58 : vector<4x32xf32>
    %60 = vector.extract_strided_slice %16 {offsets = [20, 0], sizes = [4, 128], strides = [1, 1]} : vector<32x128xf32> to vector<4x128xf32>
    %61 = arith.truncf %59 : vector<4x32xf32> to vector<4x32xbf16>
    %cst_16 = arith.constant dense<0.000000e+00> : vector<4x128xf32>
    %62 = tpu.matmul %61, %19, %cst_16 {dimension_numbers = #tpu.dot_dimension_numbers<[1], [0], [0], [1], [0, 0, 1, 1], [], []>} : vector<4x32xbf16>, vector<32x128xbf16>, vector<4x128xf32> -> vector<4x128xf32>
    %63 = arith.addf %60, %62 : vector<4x128xf32>
    %64 = arith.negf %63 : vector<4x128xf32>
    %65 = math.exp %64 : vector<4x128xf32>
    %cst_17 = arith.constant 1.000000e+00 : f32
    %66 = vector.broadcast %cst_17 : f32 to vector<4x128xf32>
    %67 = arith.addf %66, %65 : vector<4x128xf32>
    %68 = arith.divf %66, %67 : vector<4x128xf32>
    %69 = math.tanh %63 : vector<4x128xf32>
    %70 = vector.extract_strided_slice %68 {offsets = [0, 0], sizes = [4, 32], strides = [1, 1]} : vector<4x128xf32> to vector<4x32xf32>
    %71 = vector.extract_strided_slice %68 {offsets = [0, 32], sizes = [4, 32], strides = [1, 1]} : vector<4x128xf32> to vector<4x32xf32>
    %72 = vector.extract_strided_slice %69 {offsets = [0, 64], sizes = [4, 32], strides = [1, 1]} : vector<4x128xf32> to vector<4x32xf32>
    %73 = vector.extract_strided_slice %68 {offsets = [0, 96], sizes = [4, 32], strides = [1, 1]} : vector<4x128xf32> to vector<4x32xf32>
    %74 = arith.mulf %71, %57 : vector<4x32xf32>
    %75 = arith.mulf %70, %72 : vector<4x32xf32>
    %76 = arith.addf %74, %75 : vector<4x32xf32>
    %77 = math.tanh %76 : vector<4x32xf32>
    %78 = arith.mulf %73, %77 : vector<4x32xf32>
    %79 = vector.extract_strided_slice %16 {offsets = [16, 0], sizes = [4, 128], strides = [1, 1]} : vector<32x128xf32> to vector<4x128xf32>
    %80 = arith.truncf %78 : vector<4x32xf32> to vector<4x32xbf16>
    %cst_18 = arith.constant dense<0.000000e+00> : vector<4x128xf32>
    %81 = tpu.matmul %80, %19, %cst_18 {dimension_numbers = #tpu.dot_dimension_numbers<[1], [0], [0], [1], [0, 0, 1, 1], [], []>} : vector<4x32xbf16>, vector<32x128xbf16>, vector<4x128xf32> -> vector<4x128xf32>
    %82 = arith.addf %79, %81 : vector<4x128xf32>
    %83 = arith.negf %82 : vector<4x128xf32>
    %84 = math.exp %83 : vector<4x128xf32>
    %cst_19 = arith.constant 1.000000e+00 : f32
    %85 = vector.broadcast %cst_19 : f32 to vector<4x128xf32>
    %86 = arith.addf %85, %84 : vector<4x128xf32>
    %87 = arith.divf %85, %86 : vector<4x128xf32>
    %88 = math.tanh %82 : vector<4x128xf32>
    %89 = vector.extract_strided_slice %87 {offsets = [0, 0], sizes = [4, 32], strides = [1, 1]} : vector<4x128xf32> to vector<4x32xf32>
    %90 = vector.extract_strided_slice %87 {offsets = [0, 32], sizes = [4, 32], strides = [1, 1]} : vector<4x128xf32> to vector<4x32xf32>
    %91 = vector.extract_strided_slice %88 {offsets = [0, 64], sizes = [4, 32], strides = [1, 1]} : vector<4x128xf32> to vector<4x32xf32>
    %92 = vector.extract_strided_slice %87 {offsets = [0, 96], sizes = [4, 32], strides = [1, 1]} : vector<4x128xf32> to vector<4x32xf32>
    %93 = arith.mulf %90, %76 : vector<4x32xf32>
    %94 = arith.mulf %89, %91 : vector<4x32xf32>
    %95 = arith.addf %93, %94 : vector<4x32xf32>
    %96 = math.tanh %95 : vector<4x32xf32>
    %97 = arith.mulf %92, %96 : vector<4x32xf32>
    %98 = vector.extract_strided_slice %16 {offsets = [12, 0], sizes = [4, 128], strides = [1, 1]} : vector<32x128xf32> to vector<4x128xf32>
    %99 = arith.truncf %97 : vector<4x32xf32> to vector<4x32xbf16>
    %cst_20 = arith.constant dense<0.000000e+00> : vector<4x128xf32>
    %100 = tpu.matmul %99, %19, %cst_20 {dimension_numbers = #tpu.dot_dimension_numbers<[1], [0], [0], [1], [0, 0, 1, 1], [], []>} : vector<4x32xbf16>, vector<32x128xbf16>, vector<4x128xf32> -> vector<4x128xf32>
    %101 = arith.addf %98, %100 : vector<4x128xf32>
    %102 = arith.negf %101 : vector<4x128xf32>
    %103 = math.exp %102 : vector<4x128xf32>
    %cst_21 = arith.constant 1.000000e+00 : f32
    %104 = vector.broadcast %cst_21 : f32 to vector<4x128xf32>
    %105 = arith.addf %104, %103 : vector<4x128xf32>
    %106 = arith.divf %104, %105 : vector<4x128xf32>
    %107 = math.tanh %101 : vector<4x128xf32>
    %108 = vector.extract_strided_slice %106 {offsets = [0, 0], sizes = [4, 32], strides = [1, 1]} : vector<4x128xf32> to vector<4x32xf32>
    %109 = vector.extract_strided_slice %106 {offsets = [0, 32], sizes = [4, 32], strides = [1, 1]} : vector<4x128xf32> to vector<4x32xf32>
    %110 = vector.extract_strided_slice %107 {offsets = [0, 64], sizes = [4, 32], strides = [1, 1]} : vector<4x128xf32> to vector<4x32xf32>
    %111 = vector.extract_strided_slice %106 {offsets = [0, 96], sizes = [4, 32], strides = [1, 1]} : vector<4x128xf32> to vector<4x32xf32>
    %112 = arith.mulf %109, %95 : vector<4x32xf32>
    %113 = arith.mulf %108, %110 : vector<4x32xf32>
    %114 = arith.addf %112, %113 : vector<4x32xf32>
    %115 = math.tanh %114 : vector<4x32xf32>
    %116 = arith.mulf %111, %115 : vector<4x32xf32>
    %117 = vector.extract_strided_slice %16 {offsets = [8, 0], sizes = [4, 128], strides = [1, 1]} : vector<32x128xf32> to vector<4x128xf32>
    %118 = arith.truncf %116 : vector<4x32xf32> to vector<4x32xbf16>
    %cst_22 = arith.constant dense<0.000000e+00> : vector<4x128xf32>
    %119 = tpu.matmul %118, %19, %cst_22 {dimension_numbers = #tpu.dot_dimension_numbers<[1], [0], [0], [1], [0, 0, 1, 1], [], []>} : vector<4x32xbf16>, vector<32x128xbf16>, vector<4x128xf32> -> vector<4x128xf32>
    %120 = arith.addf %117, %119 : vector<4x128xf32>
    %121 = arith.negf %120 : vector<4x128xf32>
    %122 = math.exp %121 : vector<4x128xf32>
    %cst_23 = arith.constant 1.000000e+00 : f32
    %123 = vector.broadcast %cst_23 : f32 to vector<4x128xf32>
    %124 = arith.addf %123, %122 : vector<4x128xf32>
    %125 = arith.divf %123, %124 : vector<4x128xf32>
    %126 = math.tanh %120 : vector<4x128xf32>
    %127 = vector.extract_strided_slice %125 {offsets = [0, 0], sizes = [4, 32], strides = [1, 1]} : vector<4x128xf32> to vector<4x32xf32>
    %128 = vector.extract_strided_slice %125 {offsets = [0, 32], sizes = [4, 32], strides = [1, 1]} : vector<4x128xf32> to vector<4x32xf32>
    %129 = vector.extract_strided_slice %126 {offsets = [0, 64], sizes = [4, 32], strides = [1, 1]} : vector<4x128xf32> to vector<4x32xf32>
    %130 = vector.extract_strided_slice %125 {offsets = [0, 96], sizes = [4, 32], strides = [1, 1]} : vector<4x128xf32> to vector<4x32xf32>
    %131 = arith.mulf %128, %114 : vector<4x32xf32>
    %132 = arith.mulf %127, %129 : vector<4x32xf32>
    %133 = arith.addf %131, %132 : vector<4x32xf32>
    %134 = math.tanh %133 : vector<4x32xf32>
    %135 = arith.mulf %130, %134 : vector<4x32xf32>
    %136 = vector.extract_strided_slice %16 {offsets = [4, 0], sizes = [4, 128], strides = [1, 1]} : vector<32x128xf32> to vector<4x128xf32>
    %137 = arith.truncf %135 : vector<4x32xf32> to vector<4x32xbf16>
    %cst_24 = arith.constant dense<0.000000e+00> : vector<4x128xf32>
    %138 = tpu.matmul %137, %19, %cst_24 {dimension_numbers = #tpu.dot_dimension_numbers<[1], [0], [0], [1], [0, 0, 1, 1], [], []>} : vector<4x32xbf16>, vector<32x128xbf16>, vector<4x128xf32> -> vector<4x128xf32>
    %139 = arith.addf %136, %138 : vector<4x128xf32>
    %140 = arith.negf %139 : vector<4x128xf32>
    %141 = math.exp %140 : vector<4x128xf32>
    %cst_25 = arith.constant 1.000000e+00 : f32
    %142 = vector.broadcast %cst_25 : f32 to vector<4x128xf32>
    %143 = arith.addf %142, %141 : vector<4x128xf32>
    %144 = arith.divf %142, %143 : vector<4x128xf32>
    %145 = math.tanh %139 : vector<4x128xf32>
    %146 = vector.extract_strided_slice %144 {offsets = [0, 0], sizes = [4, 32], strides = [1, 1]} : vector<4x128xf32> to vector<4x32xf32>
    %147 = vector.extract_strided_slice %144 {offsets = [0, 32], sizes = [4, 32], strides = [1, 1]} : vector<4x128xf32> to vector<4x32xf32>
    %148 = vector.extract_strided_slice %145 {offsets = [0, 64], sizes = [4, 32], strides = [1, 1]} : vector<4x128xf32> to vector<4x32xf32>
    %149 = vector.extract_strided_slice %144 {offsets = [0, 96], sizes = [4, 32], strides = [1, 1]} : vector<4x128xf32> to vector<4x32xf32>
    %150 = arith.mulf %147, %133 : vector<4x32xf32>
    %151 = arith.mulf %146, %148 : vector<4x32xf32>
    %152 = arith.addf %150, %151 : vector<4x32xf32>
    %153 = math.tanh %152 : vector<4x32xf32>
    %154 = arith.mulf %149, %153 : vector<4x32xf32>
    %155 = vector.extract_strided_slice %16 {offsets = [0, 0], sizes = [4, 128], strides = [1, 1]} : vector<32x128xf32> to vector<4x128xf32>
    %156 = arith.truncf %154 : vector<4x32xf32> to vector<4x32xbf16>
    %cst_26 = arith.constant dense<0.000000e+00> : vector<4x128xf32>
    %157 = tpu.matmul %156, %19, %cst_26 {dimension_numbers = #tpu.dot_dimension_numbers<[1], [0], [0], [1], [0, 0, 1, 1], [], []>} : vector<4x32xbf16>, vector<32x128xbf16>, vector<4x128xf32> -> vector<4x128xf32>
    %158 = arith.addf %155, %157 : vector<4x128xf32>
    %159 = arith.negf %158 : vector<4x128xf32>
    %160 = math.exp %159 : vector<4x128xf32>
    %cst_27 = arith.constant 1.000000e+00 : f32
    %161 = vector.broadcast %cst_27 : f32 to vector<4x128xf32>
    %162 = arith.addf %161, %160 : vector<4x128xf32>
    %163 = arith.divf %161, %162 : vector<4x128xf32>
    %164 = math.tanh %158 : vector<4x128xf32>
    %165 = vector.extract_strided_slice %163 {offsets = [0, 0], sizes = [4, 32], strides = [1, 1]} : vector<4x128xf32> to vector<4x32xf32>
    %166 = vector.extract_strided_slice %163 {offsets = [0, 32], sizes = [4, 32], strides = [1, 1]} : vector<4x128xf32> to vector<4x32xf32>
    %167 = vector.extract_strided_slice %164 {offsets = [0, 64], sizes = [4, 32], strides = [1, 1]} : vector<4x128xf32> to vector<4x32xf32>
    %168 = vector.extract_strided_slice %163 {offsets = [0, 96], sizes = [4, 32], strides = [1, 1]} : vector<4x128xf32> to vector<4x32xf32>
    %169 = arith.mulf %166, %152 : vector<4x32xf32>
    %170 = arith.mulf %165, %167 : vector<4x32xf32>
    %171 = arith.addf %169, %170 : vector<4x32xf32>
    %172 = math.tanh %171 : vector<4x32xf32>
    %173 = arith.mulf %168, %172 : vector<4x32xf32>
    %174 = arith.truncf %173 : vector<4x32xf32> to vector<4x32xbf16>
    %c0_28 = arith.constant 0 : index
    %c0_29 = arith.constant 0 : index
    %175 = vector.load %arg5[%c0_28, %c0_29] : memref<32x256xbf16, #tpu.memory_space<vmem>>, vector<32x256xbf16>
    %cst_30 = arith.constant dense<0.000000e+00> : vector<4x256xf32>
    %176 = tpu.matmul %174, %175, %cst_30 {dimension_numbers = #tpu.dot_dimension_numbers<[1], [0], [0], [1], [0, 0, 1, 1], [], []>} : vector<4x32xbf16>, vector<32x256xbf16>, vector<4x256xf32> -> vector<4x256xf32>
    %177 = vector.extract_strided_slice %176 {offsets = [1, 0], sizes = [3, 128], strides = [1, 1]} : vector<4x256xf32> to vector<3x128xf32>
    %c0_31 = arith.constant 0 : index
    %c0_32 = arith.constant 0 : index
    %178 = vector.load %arg6[%c0_31, %c0_32] : memref<1x128xf32, #tpu.memory_space<vmem>>, vector<1x128xf32>
    %179 = vector.broadcast %178 : vector<1x128xf32> to vector<3x128xf32>
    %180 = arith.addf %177, %179 : vector<3x128xf32>
    %181 = vector.extract_strided_slice %176 {offsets = [0, 128], sizes = [3, 128], strides = [1, 1]} : vector<4x256xf32> to vector<3x128xf32>
    %c0_33 = arith.constant 0 : index
    %c0_34 = arith.constant 0 : index
    %182 = vector.load %arg7[%c0_33, %c0_34] : memref<1x128xf32, #tpu.memory_space<vmem>>, vector<1x128xf32>
    %183 = vector.broadcast %182 : vector<1x128xf32> to vector<3x128xf32>
    %184 = arith.addf %181, %183 : vector<3x128xf32>
    %c0_35 = arith.constant 0 : index
    %c0_36 = arith.constant 0 : index
    %185 = vector.load %arg8[%c0_35, %c0_36] : memref<64x512xbf16, #tpu.memory_space<vmem>>, vector<64x512xbf16>
    %c0_37 = arith.constant 0 : index
    %c0_38 = arith.constant 0 : index
    %186 = vector.load %arg9[%c0_37, %c0_38] : memref<1x128xf32, #tpu.memory_space<vmem>>, vector<1x128xf32>
    %cst_39 = arith.constant 0.000000e+00 : f32
    %187 = vector.broadcast %cst_39 : f32 to vector<3x128xf32>
    %cst_40 = arith.constant 0.000000e+00 : f32
    %188 = vector.broadcast %cst_40 : f32 to vector<3x128xf32>
    %cst_41 = arith.constant 0.000000e+00 : f32
    %189 = vector.broadcast %cst_41 : f32 to vector<3x32xf32>
    %cst_42 = arith.constant 0.000000e+00 : f32
    %190 = vector.broadcast %cst_42 : f32 to vector<3x32xf32>
    %cst_43 = arith.constant 0.000000e+00 : f32
    %191 = vector.broadcast %cst_43 : f32 to vector<3x1xf32>
    %cst_44 = arith.constant 0.000000e+00 : f32
    %192 = vector.broadcast %cst_44 : f32 to vector<3x1xf32>
    %193 = tpu.iota {dimensions = array<i32: 1>} : vector<3x128xi32>
    %194 = arith.addf %180, %187 : vector<3x128xf32>
    %195 = arith.addf %184, %188 : vector<3x128xf32>
    %196 = arith.negf %194 : vector<3x128xf32>
    %197 = math.exp %196 : vector<3x128xf32>
    %cst_45 = arith.constant 1.000000e+00 : f32
    %198 = vector.broadcast %cst_45 : f32 to vector<3x128xf32>
    %199 = arith.addf %198, %197 : vector<3x128xf32>
    %200 = arith.divf %198, %199 : vector<3x128xf32>
    %201 = math.tanh %194 : vector<3x128xf32>
    %202 = vector.extract_strided_slice %200 {offsets = [0, 0], sizes = [3, 32], strides = [1, 1]} : vector<3x128xf32> to vector<3x32xf32>
    %203 = vector.extract_strided_slice %200 {offsets = [0, 32], sizes = [3, 32], strides = [1, 1]} : vector<3x128xf32> to vector<3x32xf32>
    %204 = vector.extract_strided_slice %201 {offsets = [0, 64], sizes = [3, 32], strides = [1, 1]} : vector<3x128xf32> to vector<3x32xf32>
    %205 = vector.extract_strided_slice %200 {offsets = [0, 96], sizes = [3, 32], strides = [1, 1]} : vector<3x128xf32> to vector<3x32xf32>
    %206 = arith.mulf %203, %189 : vector<3x32xf32>
    %207 = arith.mulf %202, %204 : vector<3x32xf32>
    %208 = arith.addf %206, %207 : vector<3x32xf32>
    %209 = math.tanh %208 : vector<3x32xf32>
    %210 = arith.mulf %205, %209 : vector<3x32xf32>
    %211 = arith.negf %195 : vector<3x128xf32>
    %212 = math.exp %211 : vector<3x128xf32>
    %cst_46 = arith.constant 1.000000e+00 : f32
    %213 = vector.broadcast %cst_46 : f32 to vector<3x128xf32>
    %214 = arith.addf %213, %212 : vector<3x128xf32>
    %215 = arith.divf %213, %214 : vector<3x128xf32>
    %216 = math.tanh %195 : vector<3x128xf32>
    %217 = vector.extract_strided_slice %215 {offsets = [0, 0], sizes = [3, 32], strides = [1, 1]} : vector<3x128xf32> to vector<3x32xf32>
    %218 = vector.extract_strided_slice %215 {offsets = [0, 32], sizes = [3, 32], strides = [1, 1]} : vector<3x128xf32> to vector<3x32xf32>
    %219 = vector.extract_strided_slice %216 {offsets = [0, 64], sizes = [3, 32], strides = [1, 1]} : vector<3x128xf32> to vector<3x32xf32>
    %220 = vector.extract_strided_slice %215 {offsets = [0, 96], sizes = [3, 32], strides = [1, 1]} : vector<3x128xf32> to vector<3x32xf32>
    %221 = arith.mulf %218, %190 : vector<3x32xf32>
    %222 = arith.mulf %217, %219 : vector<3x32xf32>
    %223 = arith.addf %221, %222 : vector<3x32xf32>
    %224 = math.tanh %223 : vector<3x32xf32>
    %225 = arith.mulf %220, %224 : vector<3x32xf32>
    %226 = tpu.concatenate %210, %225 in 1 : vector<3x32xf32>, vector<3x32xf32> -> vector<3x64xf32>
    %227 = arith.truncf %226 : vector<3x64xf32> to vector<3x64xbf16>
    %cst_47 = arith.constant dense<0.000000e+00> : vector<3x512xf32>
    %228 = tpu.matmul %227, %185, %cst_47 {dimension_numbers = #tpu.dot_dimension_numbers<[1], [0], [0], [1], [0, 0, 1, 1], [], []>} : vector<3x64xbf16>, vector<64x512xbf16>, vector<3x512xf32> -> vector<3x512xf32>
    %229 = vector.extract_strided_slice %228 {offsets = [0, 0], sizes = [3, 128], strides = [1, 1]} : vector<3x512xf32> to vector<3x128xf32>
    %230 = vector.extract_strided_slice %228 {offsets = [0, 128], sizes = [3, 128], strides = [1, 1]} : vector<3x512xf32> to vector<3x128xf32>
    %231 = vector.extract_strided_slice %228 {offsets = [0, 256], sizes = [3, 128], strides = [1, 1]} : vector<3x512xf32> to vector<3x128xf32>
    %232 = vector.broadcast %186 : vector<1x128xf32> to vector<3x128xf32>
    %233 = arith.addf %231, %232 : vector<3x128xf32>
    %234 = vector.extract_strided_slice %228 {offsets = [0, 384], sizes = [3, 128], strides = [1, 1]} : vector<3x512xf32> to vector<3x128xf32>
    %235 = vector.broadcast %186 : vector<1x128xf32> to vector<3x128xf32>
    %236 = arith.addf %234, %235 : vector<3x128xf32>
    %237 = vector.extract_strided_slice %233 {offsets = [0, 0], sizes = [1, 128], strides = [1, 1]} : vector<3x128xf32> to vector<1x128xf32>
    %238 = vector.extract_strided_slice %236 {offsets = [0, 0], sizes = [1, 128], strides = [1, 1]} : vector<3x128xf32> to vector<1x128xf32>
    %239 = vector.extract_strided_slice %0 {offsets = [0, 0], sizes = [3, 1], strides = [1, 1]} : vector<32x1xi32> to vector<3x1xi32>
    %240 = vector.extract_strided_slice %0 {offsets = [1, 0], sizes = [3, 1], strides = [1, 1]} : vector<32x1xi32> to vector<3x1xi32>
    %241 = vector.broadcast %239 : vector<3x1xi32> to vector<3x128xi32>
    %242 = arith.cmpi eq, %193, %241 : vector<3x128xi32>
    %243 = arith.extui %242 : vector<3x128xi1> to vector<3x128xi32>
    %244 = arith.sitofp %243 : vector<3x128xi32> to vector<3x128xf32>
    %245 = vector.broadcast %240 : vector<3x1xi32> to vector<3x128xi32>
    %246 = arith.cmpi eq, %193, %245 : vector<3x128xi32>
    %247 = arith.extui %246 : vector<3x128xi1> to vector<3x128xi32>
    %248 = arith.sitofp %247 : vector<3x128xi32> to vector<3x128xf32>
    %c2_i32 = arith.constant 2 : i32
    %249 = vector.broadcast %c2_i32 : i32 to vector<3x1xi32>
    %250 = arith.cmpi ne, %239, %249 : vector<3x1xi32>
    %251 = arith.extui %250 : vector<3x1xi1> to vector<3x1xi32>
    %252 = arith.sitofp %251 : vector<3x1xi32> to vector<3x1xf32>
    %c2_i32_48 = arith.constant 2 : i32
    %253 = vector.broadcast %c2_i32_48 : i32 to vector<3x1xi32>
    %254 = arith.cmpi ne, %240, %253 : vector<3x1xi32>
    %255 = arith.extui %254 : vector<3x1xi1> to vector<3x1xi32>
    %256 = arith.sitofp %255 : vector<3x1xi32> to vector<3x1xf32>
    %257 = vector.broadcast %252 : vector<3x1xf32> to vector<3x128xf32>
    %258 = arith.mulf %233, %257 : vector<3x128xf32>
    %cst_49 = arith.constant dense<0xFF800000> : vector<3xf32>
    %259 = vector.multi_reduction <maximumf>, %258, %cst_49 [1] : vector<3x128xf32> to vector<3xf32>
    %260 = vector.shape_cast %259 : vector<3xf32> to vector<3x1xf32>
    %261 = vector.broadcast %260 : vector<3x1xf32> to vector<3x128xf32>
    %262 = arith.subf %258, %261 : vector<3x128xf32>
    %263 = math.exp %262 : vector<3x128xf32>
    %cst_50 = arith.constant dense<0.000000e+00> : vector<3xf32>
    %264 = vector.multi_reduction <add>, %263, %cst_50 [1] : vector<3x128xf32> to vector<3xf32>
    %265 = vector.shape_cast %264 : vector<3xf32> to vector<3x1xf32>
    %266 = math.log %265 : vector<3x1xf32>
    %267 = arith.addf %260, %266 : vector<3x1xf32>
    %268 = arith.mulf %258, %244 : vector<3x128xf32>
    %cst_51 = arith.constant dense<0.000000e+00> : vector<3xf32>
    %269 = vector.multi_reduction <add>, %268, %cst_51 [1] : vector<3x128xf32> to vector<3xf32>
    %270 = vector.shape_cast %269 : vector<3xf32> to vector<3x1xf32>
    %271 = arith.subf %267, %270 : vector<3x1xf32>
    %272 = arith.addf %191, %271 : vector<3x1xf32>
    %273 = vector.broadcast %256 : vector<3x1xf32> to vector<3x128xf32>
    %274 = arith.mulf %236, %273 : vector<3x128xf32>
    %cst_52 = arith.constant dense<0xFF800000> : vector<3xf32>
    %275 = vector.multi_reduction <maximumf>, %274, %cst_52 [1] : vector<3x128xf32> to vector<3xf32>
    %276 = vector.shape_cast %275 : vector<3xf32> to vector<3x1xf32>
    %277 = vector.broadcast %276 : vector<3x1xf32> to vector<3x128xf32>
    %278 = arith.subf %274, %277 : vector<3x128xf32>
    %279 = math.exp %278 : vector<3x128xf32>
    %cst_53 = arith.constant dense<0.000000e+00> : vector<3xf32>
    %280 = vector.multi_reduction <add>, %279, %cst_53 [1] : vector<3x128xf32> to vector<3xf32>
    %281 = vector.shape_cast %280 : vector<3xf32> to vector<3x1xf32>
    %282 = math.log %281 : vector<3x1xf32>
    %283 = arith.addf %276, %282 : vector<3x1xf32>
    %284 = arith.mulf %274, %248 : vector<3x128xf32>
    %cst_54 = arith.constant dense<0.000000e+00> : vector<3xf32>
    %285 = vector.multi_reduction <add>, %284, %cst_54 [1] : vector<3x128xf32> to vector<3xf32>
    %286 = vector.shape_cast %285 : vector<3xf32> to vector<3x1xf32>
    %287 = arith.subf %283, %286 : vector<3x1xf32>
    %288 = arith.addf %192, %287 : vector<3x1xf32>
    %289 = arith.addf %180, %229 : vector<3x128xf32>
    %290 = arith.addf %184, %230 : vector<3x128xf32>
    %291 = vector.extract_strided_slice %17 {offsets = [0, 0], sizes = [3, 128], strides = [1, 1]} : vector<32x128xf32> to vector<3x128xf32>
    %292 = arith.addf %289, %291 : vector<3x128xf32>
    %293 = vector.extract_strided_slice %18 {offsets = [1, 0], sizes = [3, 128], strides = [1, 1]} : vector<32x128xf32> to vector<3x128xf32>
    %294 = arith.addf %290, %293 : vector<3x128xf32>
    %295 = arith.negf %292 : vector<3x128xf32>
    %296 = math.exp %295 : vector<3x128xf32>
    %cst_55 = arith.constant 1.000000e+00 : f32
    %297 = vector.broadcast %cst_55 : f32 to vector<3x128xf32>
    %298 = arith.addf %297, %296 : vector<3x128xf32>
    %299 = arith.divf %297, %298 : vector<3x128xf32>
    %300 = math.tanh %292 : vector<3x128xf32>
    %301 = vector.extract_strided_slice %299 {offsets = [0, 0], sizes = [3, 32], strides = [1, 1]} : vector<3x128xf32> to vector<3x32xf32>
    %302 = vector.extract_strided_slice %299 {offsets = [0, 32], sizes = [3, 32], strides = [1, 1]} : vector<3x128xf32> to vector<3x32xf32>
    %303 = vector.extract_strided_slice %300 {offsets = [0, 64], sizes = [3, 32], strides = [1, 1]} : vector<3x128xf32> to vector<3x32xf32>
    %304 = vector.extract_strided_slice %299 {offsets = [0, 96], sizes = [3, 32], strides = [1, 1]} : vector<3x128xf32> to vector<3x32xf32>
    %305 = arith.mulf %302, %208 : vector<3x32xf32>
    %306 = arith.mulf %301, %303 : vector<3x32xf32>
    %307 = arith.addf %305, %306 : vector<3x32xf32>
    %308 = math.tanh %307 : vector<3x32xf32>
    %309 = arith.mulf %304, %308 : vector<3x32xf32>
    %310 = arith.negf %294 : vector<3x128xf32>
    %311 = math.exp %310 : vector<3x128xf32>
    %cst_56 = arith.constant 1.000000e+00 : f32
    %312 = vector.broadcast %cst_56 : f32 to vector<3x128xf32>
    %313 = arith.addf %312, %311 : vector<3x128xf32>
    %314 = arith.divf %312, %313 : vector<3x128xf32>
    %315 = math.tanh %294 : vector<3x128xf32>
    %316 = vector.extract_strided_slice %314 {offsets = [0, 0], sizes = [3, 32], strides = [1, 1]} : vector<3x128xf32> to vector<3x32xf32>
    %317 = vector.extract_strided_slice %314 {offsets = [0, 32], sizes = [3, 32], strides = [1, 1]} : vector<3x128xf32> to vector<3x32xf32>
    %318 = vector.extract_strided_slice %315 {offsets = [0, 64], sizes = [3, 32], strides = [1, 1]} : vector<3x128xf32> to vector<3x32xf32>
    %319 = vector.extract_strided_slice %314 {offsets = [0, 96], sizes = [3, 32], strides = [1, 1]} : vector<3x128xf32> to vector<3x32xf32>
    %320 = arith.mulf %317, %223 : vector<3x32xf32>
    %321 = arith.mulf %316, %318 : vector<3x32xf32>
    %322 = arith.addf %320, %321 : vector<3x32xf32>
    %323 = math.tanh %322 : vector<3x32xf32>
    %324 = arith.mulf %319, %323 : vector<3x32xf32>
    %325 = tpu.concatenate %309, %324 in 1 : vector<3x32xf32>, vector<3x32xf32> -> vector<3x64xf32>
    %326 = arith.truncf %325 : vector<3x64xf32> to vector<3x64xbf16>
    %cst_57 = arith.constant dense<0.000000e+00> : vector<3x512xf32>
    %327 = tpu.matmul %326, %185, %cst_57 {dimension_numbers = #tpu.dot_dimension_numbers<[1], [0], [0], [1], [0, 0, 1, 1], [], []>} : vector<3x64xbf16>, vector<64x512xbf16>, vector<3x512xf32> -> vector<3x512xf32>
    %328 = vector.extract_strided_slice %327 {offsets = [0, 0], sizes = [3, 128], strides = [1, 1]} : vector<3x512xf32> to vector<3x128xf32>
    %329 = vector.extract_strided_slice %327 {offsets = [0, 128], sizes = [3, 128], strides = [1, 1]} : vector<3x512xf32> to vector<3x128xf32>
    %330 = vector.extract_strided_slice %327 {offsets = [0, 256], sizes = [3, 128], strides = [1, 1]} : vector<3x512xf32> to vector<3x128xf32>
    %331 = vector.broadcast %186 : vector<1x128xf32> to vector<3x128xf32>
    %332 = arith.addf %330, %331 : vector<3x128xf32>
    %333 = vector.extract_strided_slice %327 {offsets = [0, 384], sizes = [3, 128], strides = [1, 1]} : vector<3x512xf32> to vector<3x128xf32>
    %334 = vector.broadcast %186 : vector<1x128xf32> to vector<3x128xf32>
    %335 = arith.addf %333, %334 : vector<3x128xf32>
    %336 = vector.extract_strided_slice %332 {offsets = [0, 0], sizes = [1, 128], strides = [1, 1]} : vector<3x128xf32> to vector<1x128xf32>
    %337 = vector.extract_strided_slice %335 {offsets = [0, 0], sizes = [1, 128], strides = [1, 1]} : vector<3x128xf32> to vector<1x128xf32>
    %338 = vector.extract_strided_slice %0 {offsets = [4, 0], sizes = [3, 1], strides = [1, 1]} : vector<32x1xi32> to vector<3x1xi32>
    %339 = vector.extract_strided_slice %0 {offsets = [5, 0], sizes = [3, 1], strides = [1, 1]} : vector<32x1xi32> to vector<3x1xi32>
    %340 = vector.broadcast %338 : vector<3x1xi32> to vector<3x128xi32>
    %341 = arith.cmpi eq, %193, %340 : vector<3x128xi32>
    %342 = arith.extui %341 : vector<3x128xi1> to vector<3x128xi32>
    %343 = arith.sitofp %342 : vector<3x128xi32> to vector<3x128xf32>
    %344 = vector.broadcast %339 : vector<3x1xi32> to vector<3x128xi32>
    %345 = arith.cmpi eq, %193, %344 : vector<3x128xi32>
    %346 = arith.extui %345 : vector<3x128xi1> to vector<3x128xi32>
    %347 = arith.sitofp %346 : vector<3x128xi32> to vector<3x128xf32>
    %c2_i32_58 = arith.constant 2 : i32
    %348 = vector.broadcast %c2_i32_58 : i32 to vector<3x1xi32>
    %349 = arith.cmpi ne, %338, %348 : vector<3x1xi32>
    %350 = arith.extui %349 : vector<3x1xi1> to vector<3x1xi32>
    %351 = arith.sitofp %350 : vector<3x1xi32> to vector<3x1xf32>
    %c2_i32_59 = arith.constant 2 : i32
    %352 = vector.broadcast %c2_i32_59 : i32 to vector<3x1xi32>
    %353 = arith.cmpi ne, %339, %352 : vector<3x1xi32>
    %354 = arith.extui %353 : vector<3x1xi1> to vector<3x1xi32>
    %355 = arith.sitofp %354 : vector<3x1xi32> to vector<3x1xf32>
    %356 = vector.broadcast %351 : vector<3x1xf32> to vector<3x128xf32>
    %357 = arith.mulf %332, %356 : vector<3x128xf32>
    %cst_60 = arith.constant dense<0xFF800000> : vector<3xf32>
    %358 = vector.multi_reduction <maximumf>, %357, %cst_60 [1] : vector<3x128xf32> to vector<3xf32>
    %359 = vector.shape_cast %358 : vector<3xf32> to vector<3x1xf32>
    %360 = vector.broadcast %359 : vector<3x1xf32> to vector<3x128xf32>
    %361 = arith.subf %357, %360 : vector<3x128xf32>
    %362 = math.exp %361 : vector<3x128xf32>
    %cst_61 = arith.constant dense<0.000000e+00> : vector<3xf32>
    %363 = vector.multi_reduction <add>, %362, %cst_61 [1] : vector<3x128xf32> to vector<3xf32>
    %364 = vector.shape_cast %363 : vector<3xf32> to vector<3x1xf32>
    %365 = math.log %364 : vector<3x1xf32>
    %366 = arith.addf %359, %365 : vector<3x1xf32>
    %367 = arith.mulf %357, %343 : vector<3x128xf32>
    %cst_62 = arith.constant dense<0.000000e+00> : vector<3xf32>
    %368 = vector.multi_reduction <add>, %367, %cst_62 [1] : vector<3x128xf32> to vector<3xf32>
    %369 = vector.shape_cast %368 : vector<3xf32> to vector<3x1xf32>
    %370 = arith.subf %366, %369 : vector<3x1xf32>
    %371 = arith.addf %272, %370 : vector<3x1xf32>
    %372 = vector.broadcast %355 : vector<3x1xf32> to vector<3x128xf32>
    %373 = arith.mulf %335, %372 : vector<3x128xf32>
    %cst_63 = arith.constant dense<0xFF800000> : vector<3xf32>
    %374 = vector.multi_reduction <maximumf>, %373, %cst_63 [1] : vector<3x128xf32> to vector<3xf32>
    %375 = vector.shape_cast %374 : vector<3xf32> to vector<3x1xf32>
    %376 = vector.broadcast %375 : vector<3x1xf32> to vector<3x128xf32>
    %377 = arith.subf %373, %376 : vector<3x128xf32>
    %378 = math.exp %377 : vector<3x128xf32>
    %cst_64 = arith.constant dense<0.000000e+00> : vector<3xf32>
    %379 = vector.multi_reduction <add>, %378, %cst_64 [1] : vector<3x128xf32> to vector<3xf32>
    %380 = vector.shape_cast %379 : vector<3xf32> to vector<3x1xf32>
    %381 = math.log %380 : vector<3x1xf32>
    %382 = arith.addf %375, %381 : vector<3x1xf32>
    %383 = arith.mulf %373, %347 : vector<3x128xf32>
    %cst_65 = arith.constant dense<0.000000e+00> : vector<3xf32>
    %384 = vector.multi_reduction <add>, %383, %cst_65 [1] : vector<3x128xf32> to vector<3xf32>
    %385 = vector.shape_cast %384 : vector<3xf32> to vector<3x1xf32>
    %386 = arith.subf %382, %385 : vector<3x1xf32>
    %387 = arith.addf %288, %386 : vector<3x1xf32>
    %388 = arith.addf %180, %328 : vector<3x128xf32>
    %389 = arith.addf %184, %329 : vector<3x128xf32>
    %390 = vector.extract_strided_slice %17 {offsets = [4, 0], sizes = [3, 128], strides = [1, 1]} : vector<32x128xf32> to vector<3x128xf32>
    %391 = arith.addf %388, %390 : vector<3x128xf32>
    %392 = vector.extract_strided_slice %18 {offsets = [5, 0], sizes = [3, 128], strides = [1, 1]} : vector<32x128xf32> to vector<3x128xf32>
    %393 = arith.addf %389, %392 : vector<3x128xf32>
    %394 = arith.negf %391 : vector<3x128xf32>
    %395 = math.exp %394 : vector<3x128xf32>
    %cst_66 = arith.constant 1.000000e+00 : f32
    %396 = vector.broadcast %cst_66 : f32 to vector<3x128xf32>
    %397 = arith.addf %396, %395 : vector<3x128xf32>
    %398 = arith.divf %396, %397 : vector<3x128xf32>
    %399 = math.tanh %391 : vector<3x128xf32>
    %400 = vector.extract_strided_slice %398 {offsets = [0, 0], sizes = [3, 32], strides = [1, 1]} : vector<3x128xf32> to vector<3x32xf32>
    %401 = vector.extract_strided_slice %398 {offsets = [0, 32], sizes = [3, 32], strides = [1, 1]} : vector<3x128xf32> to vector<3x32xf32>
    %402 = vector.extract_strided_slice %399 {offsets = [0, 64], sizes = [3, 32], strides = [1, 1]} : vector<3x128xf32> to vector<3x32xf32>
    %403 = vector.extract_strided_slice %398 {offsets = [0, 96], sizes = [3, 32], strides = [1, 1]} : vector<3x128xf32> to vector<3x32xf32>
    %404 = arith.mulf %401, %307 : vector<3x32xf32>
    %405 = arith.mulf %400, %402 : vector<3x32xf32>
    %406 = arith.addf %404, %405 : vector<3x32xf32>
    %407 = math.tanh %406 : vector<3x32xf32>
    %408 = arith.mulf %403, %407 : vector<3x32xf32>
    %409 = arith.negf %393 : vector<3x128xf32>
    %410 = math.exp %409 : vector<3x128xf32>
    %cst_67 = arith.constant 1.000000e+00 : f32
    %411 = vector.broadcast %cst_67 : f32 to vector<3x128xf32>
    %412 = arith.addf %411, %410 : vector<3x128xf32>
    %413 = arith.divf %411, %412 : vector<3x128xf32>
    %414 = math.tanh %393 : vector<3x128xf32>
    %415 = vector.extract_strided_slice %413 {offsets = [0, 0], sizes = [3, 32], strides = [1, 1]} : vector<3x128xf32> to vector<3x32xf32>
    %416 = vector.extract_strided_slice %413 {offsets = [0, 32], sizes = [3, 32], strides = [1, 1]} : vector<3x128xf32> to vector<3x32xf32>
    %417 = vector.extract_strided_slice %414 {offsets = [0, 64], sizes = [3, 32], strides = [1, 1]} : vector<3x128xf32> to vector<3x32xf32>
    %418 = vector.extract_strided_slice %413 {offsets = [0, 96], sizes = [3, 32], strides = [1, 1]} : vector<3x128xf32> to vector<3x32xf32>
    %419 = arith.mulf %416, %322 : vector<3x32xf32>
    %420 = arith.mulf %415, %417 : vector<3x32xf32>
    %421 = arith.addf %419, %420 : vector<3x32xf32>
    %422 = math.tanh %421 : vector<3x32xf32>
    %423 = arith.mulf %418, %422 : vector<3x32xf32>
    %424 = tpu.concatenate %408, %423 in 1 : vector<3x32xf32>, vector<3x32xf32> -> vector<3x64xf32>
    %425 = arith.truncf %424 : vector<3x64xf32> to vector<3x64xbf16>
    %cst_68 = arith.constant dense<0.000000e+00> : vector<3x512xf32>
    %426 = tpu.matmul %425, %185, %cst_68 {dimension_numbers = #tpu.dot_dimension_numbers<[1], [0], [0], [1], [0, 0, 1, 1], [], []>} : vector<3x64xbf16>, vector<64x512xbf16>, vector<3x512xf32> -> vector<3x512xf32>
    %427 = vector.extract_strided_slice %426 {offsets = [0, 0], sizes = [3, 128], strides = [1, 1]} : vector<3x512xf32> to vector<3x128xf32>
    %428 = vector.extract_strided_slice %426 {offsets = [0, 128], sizes = [3, 128], strides = [1, 1]} : vector<3x512xf32> to vector<3x128xf32>
    %429 = vector.extract_strided_slice %426 {offsets = [0, 256], sizes = [3, 128], strides = [1, 1]} : vector<3x512xf32> to vector<3x128xf32>
    %430 = vector.broadcast %186 : vector<1x128xf32> to vector<3x128xf32>
    %431 = arith.addf %429, %430 : vector<3x128xf32>
    %432 = vector.extract_strided_slice %426 {offsets = [0, 384], sizes = [3, 128], strides = [1, 1]} : vector<3x512xf32> to vector<3x128xf32>
    %433 = vector.broadcast %186 : vector<1x128xf32> to vector<3x128xf32>
    %434 = arith.addf %432, %433 : vector<3x128xf32>
    %435 = vector.extract_strided_slice %431 {offsets = [0, 0], sizes = [1, 128], strides = [1, 1]} : vector<3x128xf32> to vector<1x128xf32>
    %436 = vector.extract_strided_slice %434 {offsets = [0, 0], sizes = [1, 128], strides = [1, 1]} : vector<3x128xf32> to vector<1x128xf32>
    %437 = vector.extract_strided_slice %0 {offsets = [8, 0], sizes = [3, 1], strides = [1, 1]} : vector<32x1xi32> to vector<3x1xi32>
    %438 = vector.extract_strided_slice %0 {offsets = [9, 0], sizes = [3, 1], strides = [1, 1]} : vector<32x1xi32> to vector<3x1xi32>
    %439 = vector.broadcast %437 : vector<3x1xi32> to vector<3x128xi32>
    %440 = arith.cmpi eq, %193, %439 : vector<3x128xi32>
    %441 = arith.extui %440 : vector<3x128xi1> to vector<3x128xi32>
    %442 = arith.sitofp %441 : vector<3x128xi32> to vector<3x128xf32>
    %443 = vector.broadcast %438 : vector<3x1xi32> to vector<3x128xi32>
    %444 = arith.cmpi eq, %193, %443 : vector<3x128xi32>
    %445 = arith.extui %444 : vector<3x128xi1> to vector<3x128xi32>
    %446 = arith.sitofp %445 : vector<3x128xi32> to vector<3x128xf32>
    %c2_i32_69 = arith.constant 2 : i32
    %447 = vector.broadcast %c2_i32_69 : i32 to vector<3x1xi32>
    %448 = arith.cmpi ne, %437, %447 : vector<3x1xi32>
    %449 = arith.extui %448 : vector<3x1xi1> to vector<3x1xi32>
    %450 = arith.sitofp %449 : vector<3x1xi32> to vector<3x1xf32>
    %c2_i32_70 = arith.constant 2 : i32
    %451 = vector.broadcast %c2_i32_70 : i32 to vector<3x1xi32>
    %452 = arith.cmpi ne, %438, %451 : vector<3x1xi32>
    %453 = arith.extui %452 : vector<3x1xi1> to vector<3x1xi32>
    %454 = arith.sitofp %453 : vector<3x1xi32> to vector<3x1xf32>
    %455 = vector.broadcast %450 : vector<3x1xf32> to vector<3x128xf32>
    %456 = arith.mulf %431, %455 : vector<3x128xf32>
    %cst_71 = arith.constant dense<0xFF800000> : vector<3xf32>
    %457 = vector.multi_reduction <maximumf>, %456, %cst_71 [1] : vector<3x128xf32> to vector<3xf32>
    %458 = vector.shape_cast %457 : vector<3xf32> to vector<3x1xf32>
    %459 = vector.broadcast %458 : vector<3x1xf32> to vector<3x128xf32>
    %460 = arith.subf %456, %459 : vector<3x128xf32>
    %461 = math.exp %460 : vector<3x128xf32>
    %cst_72 = arith.constant dense<0.000000e+00> : vector<3xf32>
    %462 = vector.multi_reduction <add>, %461, %cst_72 [1] : vector<3x128xf32> to vector<3xf32>
    %463 = vector.shape_cast %462 : vector<3xf32> to vector<3x1xf32>
    %464 = math.log %463 : vector<3x1xf32>
    %465 = arith.addf %458, %464 : vector<3x1xf32>
    %466 = arith.mulf %456, %442 : vector<3x128xf32>
    %cst_73 = arith.constant dense<0.000000e+00> : vector<3xf32>
    %467 = vector.multi_reduction <add>, %466, %cst_73 [1] : vector<3x128xf32> to vector<3xf32>
    %468 = vector.shape_cast %467 : vector<3xf32> to vector<3x1xf32>
    %469 = arith.subf %465, %468 : vector<3x1xf32>
    %470 = arith.addf %371, %469 : vector<3x1xf32>
    %471 = vector.broadcast %454 : vector<3x1xf32> to vector<3x128xf32>
    %472 = arith.mulf %434, %471 : vector<3x128xf32>
    %cst_74 = arith.constant dense<0xFF800000> : vector<3xf32>
    %473 = vector.multi_reduction <maximumf>, %472, %cst_74 [1] : vector<3x128xf32> to vector<3xf32>
    %474 = vector.shape_cast %473 : vector<3xf32> to vector<3x1xf32>
    %475 = vector.broadcast %474 : vector<3x1xf32> to vector<3x128xf32>
    %476 = arith.subf %472, %475 : vector<3x128xf32>
    %477 = math.exp %476 : vector<3x128xf32>
    %cst_75 = arith.constant dense<0.000000e+00> : vector<3xf32>
    %478 = vector.multi_reduction <add>, %477, %cst_75 [1] : vector<3x128xf32> to vector<3xf32>
    %479 = vector.shape_cast %478 : vector<3xf32> to vector<3x1xf32>
    %480 = math.log %479 : vector<3x1xf32>
    %481 = arith.addf %474, %480 : vector<3x1xf32>
    %482 = arith.mulf %472, %446 : vector<3x128xf32>
    %cst_76 = arith.constant dense<0.000000e+00> : vector<3xf32>
    %483 = vector.multi_reduction <add>, %482, %cst_76 [1] : vector<3x128xf32> to vector<3xf32>
    %484 = vector.shape_cast %483 : vector<3xf32> to vector<3x1xf32>
    %485 = arith.subf %481, %484 : vector<3x1xf32>
    %486 = arith.addf %387, %485 : vector<3x1xf32>
    %487 = arith.addf %180, %427 : vector<3x128xf32>
    %488 = arith.addf %184, %428 : vector<3x128xf32>
    %489 = vector.extract_strided_slice %17 {offsets = [8, 0], sizes = [3, 128], strides = [1, 1]} : vector<32x128xf32> to vector<3x128xf32>
    %490 = arith.addf %487, %489 : vector<3x128xf32>
    %491 = vector.extract_strided_slice %18 {offsets = [9, 0], sizes = [3, 128], strides = [1, 1]} : vector<32x128xf32> to vector<3x128xf32>
    %492 = arith.addf %488, %491 : vector<3x128xf32>
    %493 = arith.negf %490 : vector<3x128xf32>
    %494 = math.exp %493 : vector<3x128xf32>
    %cst_77 = arith.constant 1.000000e+00 : f32
    %495 = vector.broadcast %cst_77 : f32 to vector<3x128xf32>
    %496 = arith.addf %495, %494 : vector<3x128xf32>
    %497 = arith.divf %495, %496 : vector<3x128xf32>
    %498 = math.tanh %490 : vector<3x128xf32>
    %499 = vector.extract_strided_slice %497 {offsets = [0, 0], sizes = [3, 32], strides = [1, 1]} : vector<3x128xf32> to vector<3x32xf32>
    %500 = vector.extract_strided_slice %497 {offsets = [0, 32], sizes = [3, 32], strides = [1, 1]} : vector<3x128xf32> to vector<3x32xf32>
    %501 = vector.extract_strided_slice %498 {offsets = [0, 64], sizes = [3, 32], strides = [1, 1]} : vector<3x128xf32> to vector<3x32xf32>
    %502 = vector.extract_strided_slice %497 {offsets = [0, 96], sizes = [3, 32], strides = [1, 1]} : vector<3x128xf32> to vector<3x32xf32>
    %503 = arith.mulf %500, %406 : vector<3x32xf32>
    %504 = arith.mulf %499, %501 : vector<3x32xf32>
    %505 = arith.addf %503, %504 : vector<3x32xf32>
    %506 = math.tanh %505 : vector<3x32xf32>
    %507 = arith.mulf %502, %506 : vector<3x32xf32>
    %508 = arith.negf %492 : vector<3x128xf32>
    %509 = math.exp %508 : vector<3x128xf32>
    %cst_78 = arith.constant 1.000000e+00 : f32
    %510 = vector.broadcast %cst_78 : f32 to vector<3x128xf32>
    %511 = arith.addf %510, %509 : vector<3x128xf32>
    %512 = arith.divf %510, %511 : vector<3x128xf32>
    %513 = math.tanh %492 : vector<3x128xf32>
    %514 = vector.extract_strided_slice %512 {offsets = [0, 0], sizes = [3, 32], strides = [1, 1]} : vector<3x128xf32> to vector<3x32xf32>
    %515 = vector.extract_strided_slice %512 {offsets = [0, 32], sizes = [3, 32], strides = [1, 1]} : vector<3x128xf32> to vector<3x32xf32>
    %516 = vector.extract_strided_slice %513 {offsets = [0, 64], sizes = [3, 32], strides = [1, 1]} : vector<3x128xf32> to vector<3x32xf32>
    %517 = vector.extract_strided_slice %512 {offsets = [0, 96], sizes = [3, 32], strides = [1, 1]} : vector<3x128xf32> to vector<3x32xf32>
    %518 = arith.mulf %515, %421 : vector<3x32xf32>
    %519 = arith.mulf %514, %516 : vector<3x32xf32>
    %520 = arith.addf %518, %519 : vector<3x32xf32>
    %521 = math.tanh %520 : vector<3x32xf32>
    %522 = arith.mulf %517, %521 : vector<3x32xf32>
    %523 = tpu.concatenate %507, %522 in 1 : vector<3x32xf32>, vector<3x32xf32> -> vector<3x64xf32>
    %524 = arith.truncf %523 : vector<3x64xf32> to vector<3x64xbf16>
    %cst_79 = arith.constant dense<0.000000e+00> : vector<3x512xf32>
    %525 = tpu.matmul %524, %185, %cst_79 {dimension_numbers = #tpu.dot_dimension_numbers<[1], [0], [0], [1], [0, 0, 1, 1], [], []>} : vector<3x64xbf16>, vector<64x512xbf16>, vector<3x512xf32> -> vector<3x512xf32>
    %526 = vector.extract_strided_slice %525 {offsets = [0, 0], sizes = [3, 128], strides = [1, 1]} : vector<3x512xf32> to vector<3x128xf32>
    %527 = vector.extract_strided_slice %525 {offsets = [0, 128], sizes = [3, 128], strides = [1, 1]} : vector<3x512xf32> to vector<3x128xf32>
    %528 = vector.extract_strided_slice %525 {offsets = [0, 256], sizes = [3, 128], strides = [1, 1]} : vector<3x512xf32> to vector<3x128xf32>
    %529 = vector.broadcast %186 : vector<1x128xf32> to vector<3x128xf32>
    %530 = arith.addf %528, %529 : vector<3x128xf32>
    %531 = vector.extract_strided_slice %525 {offsets = [0, 384], sizes = [3, 128], strides = [1, 1]} : vector<3x512xf32> to vector<3x128xf32>
    %532 = vector.broadcast %186 : vector<1x128xf32> to vector<3x128xf32>
    %533 = arith.addf %531, %532 : vector<3x128xf32>
    %534 = vector.extract_strided_slice %530 {offsets = [0, 0], sizes = [1, 128], strides = [1, 1]} : vector<3x128xf32> to vector<1x128xf32>
    %535 = vector.extract_strided_slice %533 {offsets = [0, 0], sizes = [1, 128], strides = [1, 1]} : vector<3x128xf32> to vector<1x128xf32>
    %536 = vector.extract_strided_slice %0 {offsets = [12, 0], sizes = [3, 1], strides = [1, 1]} : vector<32x1xi32> to vector<3x1xi32>
    %537 = vector.extract_strided_slice %0 {offsets = [13, 0], sizes = [3, 1], strides = [1, 1]} : vector<32x1xi32> to vector<3x1xi32>
    %538 = vector.broadcast %536 : vector<3x1xi32> to vector<3x128xi32>
    %539 = arith.cmpi eq, %193, %538 : vector<3x128xi32>
    %540 = arith.extui %539 : vector<3x128xi1> to vector<3x128xi32>
    %541 = arith.sitofp %540 : vector<3x128xi32> to vector<3x128xf32>
    %542 = vector.broadcast %537 : vector<3x1xi32> to vector<3x128xi32>
    %543 = arith.cmpi eq, %193, %542 : vector<3x128xi32>
    %544 = arith.extui %543 : vector<3x128xi1> to vector<3x128xi32>
    %545 = arith.sitofp %544 : vector<3x128xi32> to vector<3x128xf32>
    %c2_i32_80 = arith.constant 2 : i32
    %546 = vector.broadcast %c2_i32_80 : i32 to vector<3x1xi32>
    %547 = arith.cmpi ne, %536, %546 : vector<3x1xi32>
    %548 = arith.extui %547 : vector<3x1xi1> to vector<3x1xi32>
    %549 = arith.sitofp %548 : vector<3x1xi32> to vector<3x1xf32>
    %c2_i32_81 = arith.constant 2 : i32
    %550 = vector.broadcast %c2_i32_81 : i32 to vector<3x1xi32>
    %551 = arith.cmpi ne, %537, %550 : vector<3x1xi32>
    %552 = arith.extui %551 : vector<3x1xi1> to vector<3x1xi32>
    %553 = arith.sitofp %552 : vector<3x1xi32> to vector<3x1xf32>
    %554 = vector.broadcast %549 : vector<3x1xf32> to vector<3x128xf32>
    %555 = arith.mulf %530, %554 : vector<3x128xf32>
    %cst_82 = arith.constant dense<0xFF800000> : vector<3xf32>
    %556 = vector.multi_reduction <maximumf>, %555, %cst_82 [1] : vector<3x128xf32> to vector<3xf32>
    %557 = vector.shape_cast %556 : vector<3xf32> to vector<3x1xf32>
    %558 = vector.broadcast %557 : vector<3x1xf32> to vector<3x128xf32>
    %559 = arith.subf %555, %558 : vector<3x128xf32>
    %560 = math.exp %559 : vector<3x128xf32>
    %cst_83 = arith.constant dense<0.000000e+00> : vector<3xf32>
    %561 = vector.multi_reduction <add>, %560, %cst_83 [1] : vector<3x128xf32> to vector<3xf32>
    %562 = vector.shape_cast %561 : vector<3xf32> to vector<3x1xf32>
    %563 = math.log %562 : vector<3x1xf32>
    %564 = arith.addf %557, %563 : vector<3x1xf32>
    %565 = arith.mulf %555, %541 : vector<3x128xf32>
    %cst_84 = arith.constant dense<0.000000e+00> : vector<3xf32>
    %566 = vector.multi_reduction <add>, %565, %cst_84 [1] : vector<3x128xf32> to vector<3xf32>
    %567 = vector.shape_cast %566 : vector<3xf32> to vector<3x1xf32>
    %568 = arith.subf %564, %567 : vector<3x1xf32>
    %569 = arith.addf %470, %568 : vector<3x1xf32>
    %570 = vector.broadcast %553 : vector<3x1xf32> to vector<3x128xf32>
    %571 = arith.mulf %533, %570 : vector<3x128xf32>
    %cst_85 = arith.constant dense<0xFF800000> : vector<3xf32>
    %572 = vector.multi_reduction <maximumf>, %571, %cst_85 [1] : vector<3x128xf32> to vector<3xf32>
    %573 = vector.shape_cast %572 : vector<3xf32> to vector<3x1xf32>
    %574 = vector.broadcast %573 : vector<3x1xf32> to vector<3x128xf32>
    %575 = arith.subf %571, %574 : vector<3x128xf32>
    %576 = math.exp %575 : vector<3x128xf32>
    %cst_86 = arith.constant dense<0.000000e+00> : vector<3xf32>
    %577 = vector.multi_reduction <add>, %576, %cst_86 [1] : vector<3x128xf32> to vector<3xf32>
    %578 = vector.shape_cast %577 : vector<3xf32> to vector<3x1xf32>
    %579 = math.log %578 : vector<3x1xf32>
    %580 = arith.addf %573, %579 : vector<3x1xf32>
    %581 = arith.mulf %571, %545 : vector<3x128xf32>
    %cst_87 = arith.constant dense<0.000000e+00> : vector<3xf32>
    %582 = vector.multi_reduction <add>, %581, %cst_87 [1] : vector<3x128xf32> to vector<3xf32>
    %583 = vector.shape_cast %582 : vector<3xf32> to vector<3x1xf32>
    %584 = arith.subf %580, %583 : vector<3x1xf32>
    %585 = arith.addf %486, %584 : vector<3x1xf32>
    %586 = arith.addf %180, %526 : vector<3x128xf32>
    %587 = arith.addf %184, %527 : vector<3x128xf32>
    %588 = vector.extract_strided_slice %17 {offsets = [12, 0], sizes = [3, 128], strides = [1, 1]} : vector<32x128xf32> to vector<3x128xf32>
    %589 = arith.addf %586, %588 : vector<3x128xf32>
    %590 = vector.extract_strided_slice %18 {offsets = [13, 0], sizes = [3, 128], strides = [1, 1]} : vector<32x128xf32> to vector<3x128xf32>
    %591 = arith.addf %587, %590 : vector<3x128xf32>
    %592 = arith.negf %589 : vector<3x128xf32>
    %593 = math.exp %592 : vector<3x128xf32>
    %cst_88 = arith.constant 1.000000e+00 : f32
    %594 = vector.broadcast %cst_88 : f32 to vector<3x128xf32>
    %595 = arith.addf %594, %593 : vector<3x128xf32>
    %596 = arith.divf %594, %595 : vector<3x128xf32>
    %597 = math.tanh %589 : vector<3x128xf32>
    %598 = vector.extract_strided_slice %596 {offsets = [0, 0], sizes = [3, 32], strides = [1, 1]} : vector<3x128xf32> to vector<3x32xf32>
    %599 = vector.extract_strided_slice %596 {offsets = [0, 32], sizes = [3, 32], strides = [1, 1]} : vector<3x128xf32> to vector<3x32xf32>
    %600 = vector.extract_strided_slice %597 {offsets = [0, 64], sizes = [3, 32], strides = [1, 1]} : vector<3x128xf32> to vector<3x32xf32>
    %601 = vector.extract_strided_slice %596 {offsets = [0, 96], sizes = [3, 32], strides = [1, 1]} : vector<3x128xf32> to vector<3x32xf32>
    %602 = arith.mulf %599, %505 : vector<3x32xf32>
    %603 = arith.mulf %598, %600 : vector<3x32xf32>
    %604 = arith.addf %602, %603 : vector<3x32xf32>
    %605 = math.tanh %604 : vector<3x32xf32>
    %606 = arith.mulf %601, %605 : vector<3x32xf32>
    %607 = arith.negf %591 : vector<3x128xf32>
    %608 = math.exp %607 : vector<3x128xf32>
    %cst_89 = arith.constant 1.000000e+00 : f32
    %609 = vector.broadcast %cst_89 : f32 to vector<3x128xf32>
    %610 = arith.addf %609, %608 : vector<3x128xf32>
    %611 = arith.divf %609, %610 : vector<3x128xf32>
    %612 = math.tanh %591 : vector<3x128xf32>
    %613 = vector.extract_strided_slice %611 {offsets = [0, 0], sizes = [3, 32], strides = [1, 1]} : vector<3x128xf32> to vector<3x32xf32>
    %614 = vector.extract_strided_slice %611 {offsets = [0, 32], sizes = [3, 32], strides = [1, 1]} : vector<3x128xf32> to vector<3x32xf32>
    %615 = vector.extract_strided_slice %612 {offsets = [0, 64], sizes = [3, 32], strides = [1, 1]} : vector<3x128xf32> to vector<3x32xf32>
    %616 = vector.extract_strided_slice %611 {offsets = [0, 96], sizes = [3, 32], strides = [1, 1]} : vector<3x128xf32> to vector<3x32xf32>
    %617 = arith.mulf %614, %520 : vector<3x32xf32>
    %618 = arith.mulf %613, %615 : vector<3x32xf32>
    %619 = arith.addf %617, %618 : vector<3x32xf32>
    %620 = math.tanh %619 : vector<3x32xf32>
    %621 = arith.mulf %616, %620 : vector<3x32xf32>
    %622 = tpu.concatenate %606, %621 in 1 : vector<3x32xf32>, vector<3x32xf32> -> vector<3x64xf32>
    %623 = arith.truncf %622 : vector<3x64xf32> to vector<3x64xbf16>
    %cst_90 = arith.constant dense<0.000000e+00> : vector<3x512xf32>
    %624 = tpu.matmul %623, %185, %cst_90 {dimension_numbers = #tpu.dot_dimension_numbers<[1], [0], [0], [1], [0, 0, 1, 1], [], []>} : vector<3x64xbf16>, vector<64x512xbf16>, vector<3x512xf32> -> vector<3x512xf32>
    %625 = vector.extract_strided_slice %624 {offsets = [0, 0], sizes = [3, 128], strides = [1, 1]} : vector<3x512xf32> to vector<3x128xf32>
    %626 = vector.extract_strided_slice %624 {offsets = [0, 128], sizes = [3, 128], strides = [1, 1]} : vector<3x512xf32> to vector<3x128xf32>
    %627 = vector.extract_strided_slice %624 {offsets = [0, 256], sizes = [3, 128], strides = [1, 1]} : vector<3x512xf32> to vector<3x128xf32>
    %628 = vector.broadcast %186 : vector<1x128xf32> to vector<3x128xf32>
    %629 = arith.addf %627, %628 : vector<3x128xf32>
    %630 = vector.extract_strided_slice %624 {offsets = [0, 384], sizes = [3, 128], strides = [1, 1]} : vector<3x512xf32> to vector<3x128xf32>
    %631 = vector.broadcast %186 : vector<1x128xf32> to vector<3x128xf32>
    %632 = arith.addf %630, %631 : vector<3x128xf32>
    %633 = vector.extract_strided_slice %629 {offsets = [0, 0], sizes = [1, 128], strides = [1, 1]} : vector<3x128xf32> to vector<1x128xf32>
    %634 = vector.extract_strided_slice %632 {offsets = [0, 0], sizes = [1, 128], strides = [1, 1]} : vector<3x128xf32> to vector<1x128xf32>
    %635 = vector.extract_strided_slice %0 {offsets = [16, 0], sizes = [3, 1], strides = [1, 1]} : vector<32x1xi32> to vector<3x1xi32>
    %636 = vector.extract_strided_slice %0 {offsets = [17, 0], sizes = [3, 1], strides = [1, 1]} : vector<32x1xi32> to vector<3x1xi32>
    %637 = vector.broadcast %635 : vector<3x1xi32> to vector<3x128xi32>
    %638 = arith.cmpi eq, %193, %637 : vector<3x128xi32>
    %639 = arith.extui %638 : vector<3x128xi1> to vector<3x128xi32>
    %640 = arith.sitofp %639 : vector<3x128xi32> to vector<3x128xf32>
    %641 = vector.broadcast %636 : vector<3x1xi32> to vector<3x128xi32>
    %642 = arith.cmpi eq, %193, %641 : vector<3x128xi32>
    %643 = arith.extui %642 : vector<3x128xi1> to vector<3x128xi32>
    %644 = arith.sitofp %643 : vector<3x128xi32> to vector<3x128xf32>
    %c2_i32_91 = arith.constant 2 : i32
    %645 = vector.broadcast %c2_i32_91 : i32 to vector<3x1xi32>
    %646 = arith.cmpi ne, %635, %645 : vector<3x1xi32>
    %647 = arith.extui %646 : vector<3x1xi1> to vector<3x1xi32>
    %648 = arith.sitofp %647 : vector<3x1xi32> to vector<3x1xf32>
    %c2_i32_92 = arith.constant 2 : i32
    %649 = vector.broadcast %c2_i32_92 : i32 to vector<3x1xi32>
    %650 = arith.cmpi ne, %636, %649 : vector<3x1xi32>
    %651 = arith.extui %650 : vector<3x1xi1> to vector<3x1xi32>
    %652 = arith.sitofp %651 : vector<3x1xi32> to vector<3x1xf32>
    %653 = vector.broadcast %648 : vector<3x1xf32> to vector<3x128xf32>
    %654 = arith.mulf %629, %653 : vector<3x128xf32>
    %cst_93 = arith.constant dense<0xFF800000> : vector<3xf32>
    %655 = vector.multi_reduction <maximumf>, %654, %cst_93 [1] : vector<3x128xf32> to vector<3xf32>
    %656 = vector.shape_cast %655 : vector<3xf32> to vector<3x1xf32>
    %657 = vector.broadcast %656 : vector<3x1xf32> to vector<3x128xf32>
    %658 = arith.subf %654, %657 : vector<3x128xf32>
    %659 = math.exp %658 : vector<3x128xf32>
    %cst_94 = arith.constant dense<0.000000e+00> : vector<3xf32>
    %660 = vector.multi_reduction <add>, %659, %cst_94 [1] : vector<3x128xf32> to vector<3xf32>
    %661 = vector.shape_cast %660 : vector<3xf32> to vector<3x1xf32>
    %662 = math.log %661 : vector<3x1xf32>
    %663 = arith.addf %656, %662 : vector<3x1xf32>
    %664 = arith.mulf %654, %640 : vector<3x128xf32>
    %cst_95 = arith.constant dense<0.000000e+00> : vector<3xf32>
    %665 = vector.multi_reduction <add>, %664, %cst_95 [1] : vector<3x128xf32> to vector<3xf32>
    %666 = vector.shape_cast %665 : vector<3xf32> to vector<3x1xf32>
    %667 = arith.subf %663, %666 : vector<3x1xf32>
    %668 = arith.addf %569, %667 : vector<3x1xf32>
    %669 = vector.broadcast %652 : vector<3x1xf32> to vector<3x128xf32>
    %670 = arith.mulf %632, %669 : vector<3x128xf32>
    %cst_96 = arith.constant dense<0xFF800000> : vector<3xf32>
    %671 = vector.multi_reduction <maximumf>, %670, %cst_96 [1] : vector<3x128xf32> to vector<3xf32>
    %672 = vector.shape_cast %671 : vector<3xf32> to vector<3x1xf32>
    %673 = vector.broadcast %672 : vector<3x1xf32> to vector<3x128xf32>
    %674 = arith.subf %670, %673 : vector<3x128xf32>
    %675 = math.exp %674 : vector<3x128xf32>
    %cst_97 = arith.constant dense<0.000000e+00> : vector<3xf32>
    %676 = vector.multi_reduction <add>, %675, %cst_97 [1] : vector<3x128xf32> to vector<3xf32>
    %677 = vector.shape_cast %676 : vector<3xf32> to vector<3x1xf32>
    %678 = math.log %677 : vector<3x1xf32>
    %679 = arith.addf %672, %678 : vector<3x1xf32>
    %680 = arith.mulf %670, %644 : vector<3x128xf32>
    %cst_98 = arith.constant dense<0.000000e+00> : vector<3xf32>
    %681 = vector.multi_reduction <add>, %680, %cst_98 [1] : vector<3x128xf32> to vector<3xf32>
    %682 = vector.shape_cast %681 : vector<3xf32> to vector<3x1xf32>
    %683 = arith.subf %679, %682 : vector<3x1xf32>
    %684 = arith.addf %585, %683 : vector<3x1xf32>
    %685 = arith.addf %180, %625 : vector<3x128xf32>
    %686 = arith.addf %184, %626 : vector<3x128xf32>
    %687 = vector.extract_strided_slice %17 {offsets = [16, 0], sizes = [3, 128], strides = [1, 1]} : vector<32x128xf32> to vector<3x128xf32>
    %688 = arith.addf %685, %687 : vector<3x128xf32>
    %689 = vector.extract_strided_slice %18 {offsets = [17, 0], sizes = [3, 128], strides = [1, 1]} : vector<32x128xf32> to vector<3x128xf32>
    %690 = arith.addf %686, %689 : vector<3x128xf32>
    %691 = arith.negf %688 : vector<3x128xf32>
    %692 = math.exp %691 : vector<3x128xf32>
    %cst_99 = arith.constant 1.000000e+00 : f32
    %693 = vector.broadcast %cst_99 : f32 to vector<3x128xf32>
    %694 = arith.addf %693, %692 : vector<3x128xf32>
    %695 = arith.divf %693, %694 : vector<3x128xf32>
    %696 = math.tanh %688 : vector<3x128xf32>
    %697 = vector.extract_strided_slice %695 {offsets = [0, 0], sizes = [3, 32], strides = [1, 1]} : vector<3x128xf32> to vector<3x32xf32>
    %698 = vector.extract_strided_slice %695 {offsets = [0, 32], sizes = [3, 32], strides = [1, 1]} : vector<3x128xf32> to vector<3x32xf32>
    %699 = vector.extract_strided_slice %696 {offsets = [0, 64], sizes = [3, 32], strides = [1, 1]} : vector<3x128xf32> to vector<3x32xf32>
    %700 = vector.extract_strided_slice %695 {offsets = [0, 96], sizes = [3, 32], strides = [1, 1]} : vector<3x128xf32> to vector<3x32xf32>
    %701 = arith.mulf %698, %604 : vector<3x32xf32>
    %702 = arith.mulf %697, %699 : vector<3x32xf32>
    %703 = arith.addf %701, %702 : vector<3x32xf32>
    %704 = math.tanh %703 : vector<3x32xf32>
    %705 = arith.mulf %700, %704 : vector<3x32xf32>
    %706 = arith.negf %690 : vector<3x128xf32>
    %707 = math.exp %706 : vector<3x128xf32>
    %cst_100 = arith.constant 1.000000e+00 : f32
    %708 = vector.broadcast %cst_100 : f32 to vector<3x128xf32>
    %709 = arith.addf %708, %707 : vector<3x128xf32>
    %710 = arith.divf %708, %709 : vector<3x128xf32>
    %711 = math.tanh %690 : vector<3x128xf32>
    %712 = vector.extract_strided_slice %710 {offsets = [0, 0], sizes = [3, 32], strides = [1, 1]} : vector<3x128xf32> to vector<3x32xf32>
    %713 = vector.extract_strided_slice %710 {offsets = [0, 32], sizes = [3, 32], strides = [1, 1]} : vector<3x128xf32> to vector<3x32xf32>
    %714 = vector.extract_strided_slice %711 {offsets = [0, 64], sizes = [3, 32], strides = [1, 1]} : vector<3x128xf32> to vector<3x32xf32>
    %715 = vector.extract_strided_slice %710 {offsets = [0, 96], sizes = [3, 32], strides = [1, 1]} : vector<3x128xf32> to vector<3x32xf32>
    %716 = arith.mulf %713, %619 : vector<3x32xf32>
    %717 = arith.mulf %712, %714 : vector<3x32xf32>
    %718 = arith.addf %716, %717 : vector<3x32xf32>
    %719 = math.tanh %718 : vector<3x32xf32>
    %720 = arith.mulf %715, %719 : vector<3x32xf32>
    %721 = tpu.concatenate %705, %720 in 1 : vector<3x32xf32>, vector<3x32xf32> -> vector<3x64xf32>
    %722 = arith.truncf %721 : vector<3x64xf32> to vector<3x64xbf16>
    %cst_101 = arith.constant dense<0.000000e+00> : vector<3x512xf32>
    %723 = tpu.matmul %722, %185, %cst_101 {dimension_numbers = #tpu.dot_dimension_numbers<[1], [0], [0], [1], [0, 0, 1, 1], [], []>} : vector<3x64xbf16>, vector<64x512xbf16>, vector<3x512xf32> -> vector<3x512xf32>
    %724 = vector.extract_strided_slice %723 {offsets = [0, 0], sizes = [3, 128], strides = [1, 1]} : vector<3x512xf32> to vector<3x128xf32>
    %725 = vector.extract_strided_slice %723 {offsets = [0, 128], sizes = [3, 128], strides = [1, 1]} : vector<3x512xf32> to vector<3x128xf32>
    %726 = vector.extract_strided_slice %723 {offsets = [0, 256], sizes = [3, 128], strides = [1, 1]} : vector<3x512xf32> to vector<3x128xf32>
    %727 = vector.broadcast %186 : vector<1x128xf32> to vector<3x128xf32>
    %728 = arith.addf %726, %727 : vector<3x128xf32>
    %729 = vector.extract_strided_slice %723 {offsets = [0, 384], sizes = [3, 128], strides = [1, 1]} : vector<3x512xf32> to vector<3x128xf32>
    %730 = vector.broadcast %186 : vector<1x128xf32> to vector<3x128xf32>
    %731 = arith.addf %729, %730 : vector<3x128xf32>
    %732 = vector.extract_strided_slice %728 {offsets = [0, 0], sizes = [1, 128], strides = [1, 1]} : vector<3x128xf32> to vector<1x128xf32>
    %733 = vector.extract_strided_slice %731 {offsets = [0, 0], sizes = [1, 128], strides = [1, 1]} : vector<3x128xf32> to vector<1x128xf32>
    %734 = vector.extract_strided_slice %0 {offsets = [20, 0], sizes = [3, 1], strides = [1, 1]} : vector<32x1xi32> to vector<3x1xi32>
    %735 = vector.extract_strided_slice %0 {offsets = [21, 0], sizes = [3, 1], strides = [1, 1]} : vector<32x1xi32> to vector<3x1xi32>
    %736 = vector.broadcast %734 : vector<3x1xi32> to vector<3x128xi32>
    %737 = arith.cmpi eq, %193, %736 : vector<3x128xi32>
    %738 = arith.extui %737 : vector<3x128xi1> to vector<3x128xi32>
    %739 = arith.sitofp %738 : vector<3x128xi32> to vector<3x128xf32>
    %740 = vector.broadcast %735 : vector<3x1xi32> to vector<3x128xi32>
    %741 = arith.cmpi eq, %193, %740 : vector<3x128xi32>
    %742 = arith.extui %741 : vector<3x128xi1> to vector<3x128xi32>
    %743 = arith.sitofp %742 : vector<3x128xi32> to vector<3x128xf32>
    %c2_i32_102 = arith.constant 2 : i32
    %744 = vector.broadcast %c2_i32_102 : i32 to vector<3x1xi32>
    %745 = arith.cmpi ne, %734, %744 : vector<3x1xi32>
    %746 = arith.extui %745 : vector<3x1xi1> to vector<3x1xi32>
    %747 = arith.sitofp %746 : vector<3x1xi32> to vector<3x1xf32>
    %c2_i32_103 = arith.constant 2 : i32
    %748 = vector.broadcast %c2_i32_103 : i32 to vector<3x1xi32>
    %749 = arith.cmpi ne, %735, %748 : vector<3x1xi32>
    %750 = arith.extui %749 : vector<3x1xi1> to vector<3x1xi32>
    %751 = arith.sitofp %750 : vector<3x1xi32> to vector<3x1xf32>
    %752 = vector.broadcast %747 : vector<3x1xf32> to vector<3x128xf32>
    %753 = arith.mulf %728, %752 : vector<3x128xf32>
    %cst_104 = arith.constant dense<0xFF800000> : vector<3xf32>
    %754 = vector.multi_reduction <maximumf>, %753, %cst_104 [1] : vector<3x128xf32> to vector<3xf32>
    %755 = vector.shape_cast %754 : vector<3xf32> to vector<3x1xf32>
    %756 = vector.broadcast %755 : vector<3x1xf32> to vector<3x128xf32>
    %757 = arith.subf %753, %756 : vector<3x128xf32>
    %758 = math.exp %757 : vector<3x128xf32>
    %cst_105 = arith.constant dense<0.000000e+00> : vector<3xf32>
    %759 = vector.multi_reduction <add>, %758, %cst_105 [1] : vector<3x128xf32> to vector<3xf32>
    %760 = vector.shape_cast %759 : vector<3xf32> to vector<3x1xf32>
    %761 = math.log %760 : vector<3x1xf32>
    %762 = arith.addf %755, %761 : vector<3x1xf32>
    %763 = arith.mulf %753, %739 : vector<3x128xf32>
    %cst_106 = arith.constant dense<0.000000e+00> : vector<3xf32>
    %764 = vector.multi_reduction <add>, %763, %cst_106 [1] : vector<3x128xf32> to vector<3xf32>
    %765 = vector.shape_cast %764 : vector<3xf32> to vector<3x1xf32>
    %766 = arith.subf %762, %765 : vector<3x1xf32>
    %767 = arith.addf %668, %766 : vector<3x1xf32>
    %768 = vector.broadcast %751 : vector<3x1xf32> to vector<3x128xf32>
    %769 = arith.mulf %731, %768 : vector<3x128xf32>
    %cst_107 = arith.constant dense<0xFF800000> : vector<3xf32>
    %770 = vector.multi_reduction <maximumf>, %769, %cst_107 [1] : vector<3x128xf32> to vector<3xf32>
    %771 = vector.shape_cast %770 : vector<3xf32> to vector<3x1xf32>
    %772 = vector.broadcast %771 : vector<3x1xf32> to vector<3x128xf32>
    %773 = arith.subf %769, %772 : vector<3x128xf32>
    %774 = math.exp %773 : vector<3x128xf32>
    %cst_108 = arith.constant dense<0.000000e+00> : vector<3xf32>
    %775 = vector.multi_reduction <add>, %774, %cst_108 [1] : vector<3x128xf32> to vector<3xf32>
    %776 = vector.shape_cast %775 : vector<3xf32> to vector<3x1xf32>
    %777 = math.log %776 : vector<3x1xf32>
    %778 = arith.addf %771, %777 : vector<3x1xf32>
    %779 = arith.mulf %769, %743 : vector<3x128xf32>
    %cst_109 = arith.constant dense<0.000000e+00> : vector<3xf32>
    %780 = vector.multi_reduction <add>, %779, %cst_109 [1] : vector<3x128xf32> to vector<3xf32>
    %781 = vector.shape_cast %780 : vector<3xf32> to vector<3x1xf32>
    %782 = arith.subf %778, %781 : vector<3x1xf32>
    %783 = arith.addf %684, %782 : vector<3x1xf32>
    %784 = arith.addf %180, %724 : vector<3x128xf32>
    %785 = arith.addf %184, %725 : vector<3x128xf32>
    %786 = vector.extract_strided_slice %17 {offsets = [20, 0], sizes = [3, 128], strides = [1, 1]} : vector<32x128xf32> to vector<3x128xf32>
    %787 = arith.addf %784, %786 : vector<3x128xf32>
    %788 = vector.extract_strided_slice %18 {offsets = [21, 0], sizes = [3, 128], strides = [1, 1]} : vector<32x128xf32> to vector<3x128xf32>
    %789 = arith.addf %785, %788 : vector<3x128xf32>
    %790 = arith.negf %787 : vector<3x128xf32>
    %791 = math.exp %790 : vector<3x128xf32>
    %cst_110 = arith.constant 1.000000e+00 : f32
    %792 = vector.broadcast %cst_110 : f32 to vector<3x128xf32>
    %793 = arith.addf %792, %791 : vector<3x128xf32>
    %794 = arith.divf %792, %793 : vector<3x128xf32>
    %795 = math.tanh %787 : vector<3x128xf32>
    %796 = vector.extract_strided_slice %794 {offsets = [0, 0], sizes = [3, 32], strides = [1, 1]} : vector<3x128xf32> to vector<3x32xf32>
    %797 = vector.extract_strided_slice %794 {offsets = [0, 32], sizes = [3, 32], strides = [1, 1]} : vector<3x128xf32> to vector<3x32xf32>
    %798 = vector.extract_strided_slice %795 {offsets = [0, 64], sizes = [3, 32], strides = [1, 1]} : vector<3x128xf32> to vector<3x32xf32>
    %799 = vector.extract_strided_slice %794 {offsets = [0, 96], sizes = [3, 32], strides = [1, 1]} : vector<3x128xf32> to vector<3x32xf32>
    %800 = arith.mulf %797, %703 : vector<3x32xf32>
    %801 = arith.mulf %796, %798 : vector<3x32xf32>
    %802 = arith.addf %800, %801 : vector<3x32xf32>
    %803 = math.tanh %802 : vector<3x32xf32>
    %804 = arith.mulf %799, %803 : vector<3x32xf32>
    %805 = arith.negf %789 : vector<3x128xf32>
    %806 = math.exp %805 : vector<3x128xf32>
    %cst_111 = arith.constant 1.000000e+00 : f32
    %807 = vector.broadcast %cst_111 : f32 to vector<3x128xf32>
    %808 = arith.addf %807, %806 : vector<3x128xf32>
    %809 = arith.divf %807, %808 : vector<3x128xf32>
    %810 = math.tanh %789 : vector<3x128xf32>
    %811 = vector.extract_strided_slice %809 {offsets = [0, 0], sizes = [3, 32], strides = [1, 1]} : vector<3x128xf32> to vector<3x32xf32>
    %812 = vector.extract_strided_slice %809 {offsets = [0, 32], sizes = [3, 32], strides = [1, 1]} : vector<3x128xf32> to vector<3x32xf32>
    %813 = vector.extract_strided_slice %810 {offsets = [0, 64], sizes = [3, 32], strides = [1, 1]} : vector<3x128xf32> to vector<3x32xf32>
    %814 = vector.extract_strided_slice %809 {offsets = [0, 96], sizes = [3, 32], strides = [1, 1]} : vector<3x128xf32> to vector<3x32xf32>
    %815 = arith.mulf %812, %718 : vector<3x32xf32>
    %816 = arith.mulf %811, %813 : vector<3x32xf32>
    %817 = arith.addf %815, %816 : vector<3x32xf32>
    %818 = math.tanh %817 : vector<3x32xf32>
    %819 = arith.mulf %814, %818 : vector<3x32xf32>
    %820 = tpu.concatenate %804, %819 in 1 : vector<3x32xf32>, vector<3x32xf32> -> vector<3x64xf32>
    %821 = arith.truncf %820 : vector<3x64xf32> to vector<3x64xbf16>
    %cst_112 = arith.constant dense<0.000000e+00> : vector<3x512xf32>
    %822 = tpu.matmul %821, %185, %cst_112 {dimension_numbers = #tpu.dot_dimension_numbers<[1], [0], [0], [1], [0, 0, 1, 1], [], []>} : vector<3x64xbf16>, vector<64x512xbf16>, vector<3x512xf32> -> vector<3x512xf32>
    %823 = vector.extract_strided_slice %822 {offsets = [0, 0], sizes = [3, 128], strides = [1, 1]} : vector<3x512xf32> to vector<3x128xf32>
    %824 = vector.extract_strided_slice %822 {offsets = [0, 128], sizes = [3, 128], strides = [1, 1]} : vector<3x512xf32> to vector<3x128xf32>
    %825 = vector.extract_strided_slice %822 {offsets = [0, 256], sizes = [3, 128], strides = [1, 1]} : vector<3x512xf32> to vector<3x128xf32>
    %826 = vector.broadcast %186 : vector<1x128xf32> to vector<3x128xf32>
    %827 = arith.addf %825, %826 : vector<3x128xf32>
    %828 = vector.extract_strided_slice %822 {offsets = [0, 384], sizes = [3, 128], strides = [1, 1]} : vector<3x512xf32> to vector<3x128xf32>
    %829 = vector.broadcast %186 : vector<1x128xf32> to vector<3x128xf32>
    %830 = arith.addf %828, %829 : vector<3x128xf32>
    %831 = vector.extract_strided_slice %827 {offsets = [0, 0], sizes = [1, 128], strides = [1, 1]} : vector<3x128xf32> to vector<1x128xf32>
    %832 = vector.extract_strided_slice %830 {offsets = [0, 0], sizes = [1, 128], strides = [1, 1]} : vector<3x128xf32> to vector<1x128xf32>
    %833 = vector.extract_strided_slice %0 {offsets = [24, 0], sizes = [3, 1], strides = [1, 1]} : vector<32x1xi32> to vector<3x1xi32>
    %834 = vector.extract_strided_slice %0 {offsets = [25, 0], sizes = [3, 1], strides = [1, 1]} : vector<32x1xi32> to vector<3x1xi32>
    %835 = vector.broadcast %833 : vector<3x1xi32> to vector<3x128xi32>
    %836 = arith.cmpi eq, %193, %835 : vector<3x128xi32>
    %837 = arith.extui %836 : vector<3x128xi1> to vector<3x128xi32>
    %838 = arith.sitofp %837 : vector<3x128xi32> to vector<3x128xf32>
    %839 = vector.broadcast %834 : vector<3x1xi32> to vector<3x128xi32>
    %840 = arith.cmpi eq, %193, %839 : vector<3x128xi32>
    %841 = arith.extui %840 : vector<3x128xi1> to vector<3x128xi32>
    %842 = arith.sitofp %841 : vector<3x128xi32> to vector<3x128xf32>
    %c2_i32_113 = arith.constant 2 : i32
    %843 = vector.broadcast %c2_i32_113 : i32 to vector<3x1xi32>
    %844 = arith.cmpi ne, %833, %843 : vector<3x1xi32>
    %845 = arith.extui %844 : vector<3x1xi1> to vector<3x1xi32>
    %846 = arith.sitofp %845 : vector<3x1xi32> to vector<3x1xf32>
    %c2_i32_114 = arith.constant 2 : i32
    %847 = vector.broadcast %c2_i32_114 : i32 to vector<3x1xi32>
    %848 = arith.cmpi ne, %834, %847 : vector<3x1xi32>
    %849 = arith.extui %848 : vector<3x1xi1> to vector<3x1xi32>
    %850 = arith.sitofp %849 : vector<3x1xi32> to vector<3x1xf32>
    %851 = vector.broadcast %846 : vector<3x1xf32> to vector<3x128xf32>
    %852 = arith.mulf %827, %851 : vector<3x128xf32>
    %cst_115 = arith.constant dense<0xFF800000> : vector<3xf32>
    %853 = vector.multi_reduction <maximumf>, %852, %cst_115 [1] : vector<3x128xf32> to vector<3xf32>
    %854 = vector.shape_cast %853 : vector<3xf32> to vector<3x1xf32>
    %855 = vector.broadcast %854 : vector<3x1xf32> to vector<3x128xf32>
    %856 = arith.subf %852, %855 : vector<3x128xf32>
    %857 = math.exp %856 : vector<3x128xf32>
    %cst_116 = arith.constant dense<0.000000e+00> : vector<3xf32>
    %858 = vector.multi_reduction <add>, %857, %cst_116 [1] : vector<3x128xf32> to vector<3xf32>
    %859 = vector.shape_cast %858 : vector<3xf32> to vector<3x1xf32>
    %860 = math.log %859 : vector<3x1xf32>
    %861 = arith.addf %854, %860 : vector<3x1xf32>
    %862 = arith.mulf %852, %838 : vector<3x128xf32>
    %cst_117 = arith.constant dense<0.000000e+00> : vector<3xf32>
    %863 = vector.multi_reduction <add>, %862, %cst_117 [1] : vector<3x128xf32> to vector<3xf32>
    %864 = vector.shape_cast %863 : vector<3xf32> to vector<3x1xf32>
    %865 = arith.subf %861, %864 : vector<3x1xf32>
    %866 = arith.addf %767, %865 : vector<3x1xf32>
    %867 = vector.broadcast %850 : vector<3x1xf32> to vector<3x128xf32>
    %868 = arith.mulf %830, %867 : vector<3x128xf32>
    %cst_118 = arith.constant dense<0xFF800000> : vector<3xf32>
    %869 = vector.multi_reduction <maximumf>, %868, %cst_118 [1] : vector<3x128xf32> to vector<3xf32>
    %870 = vector.shape_cast %869 : vector<3xf32> to vector<3x1xf32>
    %871 = vector.broadcast %870 : vector<3x1xf32> to vector<3x128xf32>
    %872 = arith.subf %868, %871 : vector<3x128xf32>
    %873 = math.exp %872 : vector<3x128xf32>
    %cst_119 = arith.constant dense<0.000000e+00> : vector<3xf32>
    %874 = vector.multi_reduction <add>, %873, %cst_119 [1] : vector<3x128xf32> to vector<3xf32>
    %875 = vector.shape_cast %874 : vector<3xf32> to vector<3x1xf32>
    %876 = math.log %875 : vector<3x1xf32>
    %877 = arith.addf %870, %876 : vector<3x1xf32>
    %878 = arith.mulf %868, %842 : vector<3x128xf32>
    %cst_120 = arith.constant dense<0.000000e+00> : vector<3xf32>
    %879 = vector.multi_reduction <add>, %878, %cst_120 [1] : vector<3x128xf32> to vector<3xf32>
    %880 = vector.shape_cast %879 : vector<3xf32> to vector<3x1xf32>
    %881 = arith.subf %877, %880 : vector<3x1xf32>
    %882 = arith.addf %783, %881 : vector<3x1xf32>
    %883 = arith.addf %180, %823 : vector<3x128xf32>
    %884 = arith.addf %184, %824 : vector<3x128xf32>
    %885 = vector.extract_strided_slice %17 {offsets = [24, 0], sizes = [3, 128], strides = [1, 1]} : vector<32x128xf32> to vector<3x128xf32>
    %886 = arith.addf %883, %885 : vector<3x128xf32>
    %887 = vector.extract_strided_slice %18 {offsets = [25, 0], sizes = [3, 128], strides = [1, 1]} : vector<32x128xf32> to vector<3x128xf32>
    %888 = arith.addf %884, %887 : vector<3x128xf32>
    %889 = arith.negf %886 : vector<3x128xf32>
    %890 = math.exp %889 : vector<3x128xf32>
    %cst_121 = arith.constant 1.000000e+00 : f32
    %891 = vector.broadcast %cst_121 : f32 to vector<3x128xf32>
    %892 = arith.addf %891, %890 : vector<3x128xf32>
    %893 = arith.divf %891, %892 : vector<3x128xf32>
    %894 = math.tanh %886 : vector<3x128xf32>
    %895 = vector.extract_strided_slice %893 {offsets = [0, 0], sizes = [3, 32], strides = [1, 1]} : vector<3x128xf32> to vector<3x32xf32>
    %896 = vector.extract_strided_slice %893 {offsets = [0, 32], sizes = [3, 32], strides = [1, 1]} : vector<3x128xf32> to vector<3x32xf32>
    %897 = vector.extract_strided_slice %894 {offsets = [0, 64], sizes = [3, 32], strides = [1, 1]} : vector<3x128xf32> to vector<3x32xf32>
    %898 = vector.extract_strided_slice %893 {offsets = [0, 96], sizes = [3, 32], strides = [1, 1]} : vector<3x128xf32> to vector<3x32xf32>
    %899 = arith.mulf %896, %802 : vector<3x32xf32>
    %900 = arith.mulf %895, %897 : vector<3x32xf32>
    %901 = arith.addf %899, %900 : vector<3x32xf32>
    %902 = math.tanh %901 : vector<3x32xf32>
    %903 = arith.mulf %898, %902 : vector<3x32xf32>
    %904 = arith.negf %888 : vector<3x128xf32>
    %905 = math.exp %904 : vector<3x128xf32>
    %cst_122 = arith.constant 1.000000e+00 : f32
    %906 = vector.broadcast %cst_122 : f32 to vector<3x128xf32>
    %907 = arith.addf %906, %905 : vector<3x128xf32>
    %908 = arith.divf %906, %907 : vector<3x128xf32>
    %909 = math.tanh %888 : vector<3x128xf32>
    %910 = vector.extract_strided_slice %908 {offsets = [0, 0], sizes = [3, 32], strides = [1, 1]} : vector<3x128xf32> to vector<3x32xf32>
    %911 = vector.extract_strided_slice %908 {offsets = [0, 32], sizes = [3, 32], strides = [1, 1]} : vector<3x128xf32> to vector<3x32xf32>
    %912 = vector.extract_strided_slice %909 {offsets = [0, 64], sizes = [3, 32], strides = [1, 1]} : vector<3x128xf32> to vector<3x32xf32>
    %913 = vector.extract_strided_slice %908 {offsets = [0, 96], sizes = [3, 32], strides = [1, 1]} : vector<3x128xf32> to vector<3x32xf32>
    %914 = arith.mulf %911, %817 : vector<3x32xf32>
    %915 = arith.mulf %910, %912 : vector<3x32xf32>
    %916 = arith.addf %914, %915 : vector<3x32xf32>
    %917 = math.tanh %916 : vector<3x32xf32>
    %918 = arith.mulf %913, %917 : vector<3x32xf32>
    %919 = tpu.concatenate %903, %918 in 1 : vector<3x32xf32>, vector<3x32xf32> -> vector<3x64xf32>
    %920 = arith.truncf %919 : vector<3x64xf32> to vector<3x64xbf16>
    %cst_123 = arith.constant dense<0.000000e+00> : vector<3x512xf32>
    %921 = tpu.matmul %920, %185, %cst_123 {dimension_numbers = #tpu.dot_dimension_numbers<[1], [0], [0], [1], [0, 0, 1, 1], [], []>} : vector<3x64xbf16>, vector<64x512xbf16>, vector<3x512xf32> -> vector<3x512xf32>
    %922 = vector.extract_strided_slice %921 {offsets = [0, 256], sizes = [3, 128], strides = [1, 1]} : vector<3x512xf32> to vector<3x128xf32>
    %923 = vector.broadcast %186 : vector<1x128xf32> to vector<3x128xf32>
    %924 = arith.addf %922, %923 : vector<3x128xf32>
    %925 = vector.extract_strided_slice %921 {offsets = [0, 384], sizes = [3, 128], strides = [1, 1]} : vector<3x512xf32> to vector<3x128xf32>
    %926 = vector.broadcast %186 : vector<1x128xf32> to vector<3x128xf32>
    %927 = arith.addf %925, %926 : vector<3x128xf32>
    %928 = vector.extract_strided_slice %924 {offsets = [0, 0], sizes = [1, 128], strides = [1, 1]} : vector<3x128xf32> to vector<1x128xf32>
    %929 = vector.extract_strided_slice %927 {offsets = [0, 0], sizes = [1, 128], strides = [1, 1]} : vector<3x128xf32> to vector<1x128xf32>
    %930 = vector.extract_strided_slice %0 {offsets = [28, 0], sizes = [3, 1], strides = [1, 1]} : vector<32x1xi32> to vector<3x1xi32>
    %931 = vector.extract_strided_slice %0 {offsets = [29, 0], sizes = [3, 1], strides = [1, 1]} : vector<32x1xi32> to vector<3x1xi32>
    %932 = vector.broadcast %930 : vector<3x1xi32> to vector<3x128xi32>
    %933 = arith.cmpi eq, %193, %932 : vector<3x128xi32>
    %934 = arith.extui %933 : vector<3x128xi1> to vector<3x128xi32>
    %935 = arith.sitofp %934 : vector<3x128xi32> to vector<3x128xf32>
    %936 = vector.broadcast %931 : vector<3x1xi32> to vector<3x128xi32>
    %937 = arith.cmpi eq, %193, %936 : vector<3x128xi32>
    %938 = arith.extui %937 : vector<3x128xi1> to vector<3x128xi32>
    %939 = arith.sitofp %938 : vector<3x128xi32> to vector<3x128xf32>
    %c2_i32_124 = arith.constant 2 : i32
    %940 = vector.broadcast %c2_i32_124 : i32 to vector<3x1xi32>
    %941 = arith.cmpi ne, %930, %940 : vector<3x1xi32>
    %942 = arith.extui %941 : vector<3x1xi1> to vector<3x1xi32>
    %943 = arith.sitofp %942 : vector<3x1xi32> to vector<3x1xf32>
    %c2_i32_125 = arith.constant 2 : i32
    %944 = vector.broadcast %c2_i32_125 : i32 to vector<3x1xi32>
    %945 = arith.cmpi ne, %931, %944 : vector<3x1xi32>
    %946 = arith.extui %945 : vector<3x1xi1> to vector<3x1xi32>
    %947 = arith.sitofp %946 : vector<3x1xi32> to vector<3x1xf32>
    %948 = vector.broadcast %943 : vector<3x1xf32> to vector<3x128xf32>
    %949 = arith.mulf %924, %948 : vector<3x128xf32>
    %cst_126 = arith.constant dense<0xFF800000> : vector<3xf32>
    %950 = vector.multi_reduction <maximumf>, %949, %cst_126 [1] : vector<3x128xf32> to vector<3xf32>
    %951 = vector.shape_cast %950 : vector<3xf32> to vector<3x1xf32>
    %952 = vector.broadcast %951 : vector<3x1xf32> to vector<3x128xf32>
    %953 = arith.subf %949, %952 : vector<3x128xf32>
    %954 = math.exp %953 : vector<3x128xf32>
    %cst_127 = arith.constant dense<0.000000e+00> : vector<3xf32>
    %955 = vector.multi_reduction <add>, %954, %cst_127 [1] : vector<3x128xf32> to vector<3xf32>
    %956 = vector.shape_cast %955 : vector<3xf32> to vector<3x1xf32>
    %957 = math.log %956 : vector<3x1xf32>
    %958 = arith.addf %951, %957 : vector<3x1xf32>
    %959 = arith.mulf %949, %935 : vector<3x128xf32>
    %cst_128 = arith.constant dense<0.000000e+00> : vector<3xf32>
    %960 = vector.multi_reduction <add>, %959, %cst_128 [1] : vector<3x128xf32> to vector<3xf32>
    %961 = vector.shape_cast %960 : vector<3xf32> to vector<3x1xf32>
    %962 = arith.subf %958, %961 : vector<3x1xf32>
    %963 = arith.addf %866, %962 : vector<3x1xf32>
    %964 = vector.broadcast %947 : vector<3x1xf32> to vector<3x128xf32>
    %965 = arith.mulf %927, %964 : vector<3x128xf32>
    %cst_129 = arith.constant dense<0xFF800000> : vector<3xf32>
    %966 = vector.multi_reduction <maximumf>, %965, %cst_129 [1] : vector<3x128xf32> to vector<3xf32>
    %967 = vector.shape_cast %966 : vector<3xf32> to vector<3x1xf32>
    %968 = vector.broadcast %967 : vector<3x1xf32> to vector<3x128xf32>
    %969 = arith.subf %965, %968 : vector<3x128xf32>
    %970 = math.exp %969 : vector<3x128xf32>
    %cst_130 = arith.constant dense<0.000000e+00> : vector<3xf32>
    %971 = vector.multi_reduction <add>, %970, %cst_130 [1] : vector<3x128xf32> to vector<3xf32>
    %972 = vector.shape_cast %971 : vector<3xf32> to vector<3x1xf32>
    %973 = math.log %972 : vector<3x1xf32>
    %974 = arith.addf %967, %973 : vector<3x1xf32>
    %975 = arith.mulf %965, %939 : vector<3x128xf32>
    %cst_131 = arith.constant dense<0.000000e+00> : vector<3xf32>
    %976 = vector.multi_reduction <add>, %975, %cst_131 [1] : vector<3x128xf32> to vector<3xf32>
    %977 = vector.shape_cast %976 : vector<3xf32> to vector<3x1xf32>
    %978 = arith.subf %974, %977 : vector<3x1xf32>
    %979 = arith.addf %882, %978 : vector<3x1xf32>
    %980 = tpu.concatenate %237, %336, %435, %534, %633, %732, %831, %928 in 0 : vector<1x128xf32>, vector<1x128xf32>, vector<1x128xf32>, vector<1x128xf32>, vector<1x128xf32>, vector<1x128xf32>, vector<1x128xf32>, vector<1x128xf32> -> vector<8x128xf32>
    %c0_132 = arith.constant 0 : index
    %c0_133 = arith.constant 0 : index
    %981 = vector.load %arg11[%c0_132, %c0_133] : memref<8x128xf32, #tpu.memory_space<vmem>>, vector<8x128xf32>
    tpu.vector_store %arg11[%c0_132, %c0_133], %980 {strides = array<i32>} : memref<8x128xf32, #tpu.memory_space<vmem>>, vector<8x128xf32>,
    %982 = tpu.concatenate %238, %337, %436, %535, %634, %733, %832, %929 in 0 : vector<1x128xf32>, vector<1x128xf32>, vector<1x128xf32>, vector<1x128xf32>, vector<1x128xf32>, vector<1x128xf32>, vector<1x128xf32>, vector<1x128xf32> -> vector<8x128xf32>
    %c0_134 = arith.constant 0 : index
    %c0_135 = arith.constant 0 : index
    %983 = vector.load %arg12[%c0_134, %c0_135] : memref<8x128xf32, #tpu.memory_space<vmem>>, vector<8x128xf32>
    tpu.vector_store %arg12[%c0_134, %c0_135], %982 {strides = array<i32>} : memref<8x128xf32, #tpu.memory_space<vmem>>, vector<8x128xf32>,
    %984 = vector.shape_cast %963 : vector<3x1xf32> to vector<1x3x1xf32>
    %cst_136 = arith.constant dense<0.000000e+00> : vector<1xf32>
    %985 = vector.multi_reduction <add>, %984, %cst_136 [1, 2] : vector<1x3x1xf32> to vector<1xf32>
    %986 = vector.shape_cast %985 : vector<1xf32> to vector<1x1x1xf32>
    %987 = vector.extract %986[0, 0, 0] : f32 from vector<1x1x1xf32>
    %988 = vector.shape_cast %979 : vector<3x1xf32> to vector<1x3x1xf32>
    %cst_137 = arith.constant dense<0.000000e+00> : vector<1xf32>
    %989 = vector.multi_reduction <add>, %988, %cst_137 [1, 2] : vector<1x3x1xf32> to vector<1xf32>
    %990 = vector.shape_cast %989 : vector<1xf32> to vector<1x1x1xf32>
    %991 = vector.extract %990[0, 0, 0] : f32 from vector<1x1x1xf32>
    %992 = arith.addf %987, %991 : f32
    %cst_138 = arith.constant 2.400000e+01 : f32
    %993 = arith.divf %992, %cst_138 : f32
    %c0_139 = arith.constant 0 : index
    %c0_140 = arith.constant 0 : index
    %994 = memref.load %arg10[%c0_139, %c0_140] : memref<1x1xf32, #tpu.memory_space<smem>>
    memref.store %993, %arg10[%c0_139, %c0_140] : memref<1x1xf32, #tpu.memory_space<smem>>
    return
  }
}

</mosaic_0001>

<bundles_post_ra>
// kernel: uniskip_forward.1
= control target key start
LH: loop header
LB: loop body
LE: loop exit
PB: predicated region body
PF: predicated region fallthrough
CT: control target
= control target key end

     0   :  { %18 = vsyncpa [#allocation3], 0  ;;  %s4818_s0 = inlined_call_operand.vmem [shape: s32[32,1], index: 0, kind: input, shape index: {}]   ;;  %s4819_s1 = inlined_call_operand.vmem [shape: bf16[128,32], index: 1, kind: input, shape index: {}]   ;;  %s4820_s2 = inlined_call_operand.hbm [shape: bf16[32,384], index: 2, kind: input, shape index: {}]   ;;  %s4821_s3 = inlined_call_operand.hbm [shape: bf16[32,128], index: 3, kind: input, shape index: {}]   ;;  %s4822_s4 = inlined_call_operand.vmem [shape: f32[1,128], index: 4, kind: input, shape index: {}]   ;;  %s4823_s5 = inlined_call_operand.vmem [shape: bf16[32,256], index: 5, kind: input, shape index: {}]   ;;  %s4824_s6 = inlined_call_operand.vmem [shape: f32[1,128], index: 6, kind: input, shape index: {}]   ;;  %s4825_s7 = inlined_call_operand.hbm [shape: f32[1,128], index: 7, kind: input, shape index: {}]   ;;  %s4826_s8 = inlined_call_operand.vmem [shape: bf16[64,512], index: 8, kind: input, shape index: {}]   ;;  %s4827_s9 = inlined_call_operand.hbm [shape: f32[1,128], index: 9, kind: input, shape index: {}]   ;;  %s4828_s10 = inlined_call_operand.hbm [shape: f32[1,1], index: 10, kind: output, shape index: {0}]   ;;  %s4829_s11 = inlined_call_operand.vmem [shape: f32[8,128], index: 11, kind: output, shape index: {1}]   ;;  %s4830_s12 = inlined_call_operand.vmem [shape: f32[8,128], index: 12, kind: output, shape index: {2}]  }
   0x1   :  { %19 = vsyncpa [#allocation6], 0 }
   0x2   :  { %20 = vsyncpa [#allocation9], 0 }
   0x3   :  { %21 = vsyncpa [#allocation4], 0  ;;  %s3675_s21 = smov [#allocation5]   ;;  %s3569_s25 = scalar_lea.hbm %s4821_s3, 256 }
   0x4   :  { %s43_s22 = sshll.u32 %s3675_s21, 4  ;;  %p3570_p0 = scmp.ne.s32.totalorder %s4821_s3, %s3569_s25  ;;  %s44_s22 = int_to_ptr.vmem [resolvable:$true] %s43_s22 }
   0x5   :  { %p3573_p1 = scmp.lt.u32.totalorder %s3569_s25, %s4821_s3 }
   0x7   :  { %p3575_p2 = pnand %p3573_p1, %p3570_p0 }
   0x9   :  { %3578 = shalt.err (!%p3575_p2)
}
   0xa   :  { %s3579_s30 = scalar_lea.vmem %s44_s22, 256  ;;  %p3584_p4 = scmp.lt.s32.totalorder %s44_s22, %s44_s22 }
   0xb   :  { %p3580_p3 = scmp.ne.s32.totalorder %s44_s22, %s3579_s30  ;;  %p3585_p5 = scmp.lt.s32.totalorder %s3579_s30, %s3579_s30 }
   0xd   :  { %p3586_p6 = por %p3585_p5, %p3584_p4 }
   0xf   :  { %p3587_p7 = pnand %p3586_p6, %p3580_p3 }
  0x11   :  { %3590 = shalt.err (!%p3587_p7)
}
  0x12   :  { %s3676_s13 = smov 64   ;;  %s3677_s14 = smov 4  }
  0x13   :  { %49 = dma.hbm_to_vmem [thread:$0]  %s4821_s3, 256, %s44_s22, [#allocation6], %s3676_s13, %s3676_s13, %s3677_s14  }
  0x14   :  { %s3678_s17 = smov [#allocation2]   ;;  %s3591_s21 = scalar_lea.hbm %s4820_s2, 768 }
  0x15   :  { %s31_s18 = sshll.u32 %s3678_s17, 4  ;;  %p3592_p8 = scmp.ne.s32.totalorder %s4820_s2, %s3591_s21  ;;  %s32_s18 = int_to_ptr.vmem [resolvable:$true] %s31_s18 }
  0x16   :  { %p3595_p9 = scmp.lt.u32.totalorder %s3591_s21, %s4820_s2 }
  0x18   :  { %p3597_p10 = pnand %p3595_p9, %p3592_p8 }
  0x1a   :  { %3600 = shalt.err (!%p3597_p10)
}
  0x1b   :  { %s3601_s27 = scalar_lea.vmem %s32_s18, 768  ;;  %p3606_p12 = scmp.lt.s32.totalorder %s32_s18, %s32_s18 }
  0x1c   :  { %p3602_p11 = scmp.ne.s32.totalorder %s32_s18, %s3601_s27  ;;  %p3607_p13 = scmp.lt.s32.totalorder %s3601_s27, %s3601_s27 }
  0x1e   :  { %p3608_p0 = por %p3607_p13, %p3606_p12 }
  0x20   :  { %p3609_p1 = pnand %p3608_p0, %p3602_p11 }
  0x22   :  { %3612 = shalt.err (!%p3609_p1)
}
  0x23   :  { %s3679_s3 = smov 192   ;;  %s3680_s22 = smov 12  }
  0x24   :  { %37 = dma.hbm_to_vmem [thread:$0]  %s4820_s2, 768, %s32_s18, [#allocation3], %s3679_s3, %s3679_s3, %s3680_s22  }
  0x25   :  { %s3681_s30 = smov [#allocation7]   ;;  %s3682_s15 = smov [#allocation8]  }
  0x26   :  { %s62_s14 = sshll.u32 %s3681_s30, 4  ;;  %s74_s16 = sshll.u32 %s3682_s15, 4  ;;  %s63_s14 = int_to_ptr.vmem [resolvable:$true] %s62_s14  ;;  %s75_s16 = int_to_ptr.vmem [resolvable:$true] %s74_s16 }
  0x27   :  { %s3613_s20 = scalar_lea.hbm %s4825_s7, 16 }
  0x28   :  { %p3614_p2 = scmp.ne.s32.totalorder %s4825_s7, %s3613_s20  ;;  %p3617_p3 = scmp.lt.u32.totalorder %s3613_s20, %s4825_s7 }
  0x2a   :  { %p3619_p4 = pnand %p3617_p3, %p3614_p2 }
  0x2c   :  { %3622 = shalt.err (!%p3619_p4)
}
  0x2d   :  { %s3623_s2 = scalar_lea.vmem %s63_s14, 16  ;;  %s3627_s18 = scalar_lea.vmem %s63_s14, 32 }
  0x2e   :  { %p3624_p5 = scmp.ne.s32.totalorder %s63_s14, %s3623_s2  ;;  %p3628_p6 = scmp.lt.s32.totalorder %s63_s14, %s63_s14 }
  0x2f   :  { %p3629_p7 = scmp.lt.s32.totalorder %s3627_s18, %s3623_s2 }
  0x31   :  { %p3630_p8 = por %p3629_p7, %p3628_p6 }
  0x33   :  { %p3631_p9 = pnand %p3630_p8, %p3624_p5 }
  0x35   :  { %3634 = shalt.err (!%p3631_p9)
}
  0x36   :  { %65 = dma.hbm_to_vmem [thread:$0]  %s4825_s7, 16, %s63_s14, [#allocation6]  }
  0x37   :  { %s3635_s28 = scalar_lea.hbm %s4827_s9, 16 }
  0x38   :  { %p3636_p10 = scmp.ne.s32.totalorder %s4827_s9, %s3635_s28  ;;  %p3639_p11 = scmp.lt.u32.totalorder %s3635_s28, %s4827_s9 }
  0x3a   :  { %p3641_p12 = pnand %p3639_p11, %p3636_p10 }
  0x3c   :  { %3644 = shalt.err (!%p3641_p12)
}
  0x3d   :  { %s3645_s19 = scalar_lea.vmem %s75_s16, 16  ;;  %s3649_s20 = scalar_lea.vmem %s75_s16, 32 }
  0x3e   :  { %p3646_p13 = scmp.ne.s32.totalorder %s75_s16, %s3645_s19  ;;  %p3650_p0 = scmp.lt.s32.totalorder %s75_s16, %s75_s16 }
  0x3f   :  { %p3651_p1 = scmp.lt.s32.totalorder %s3649_s20, %s3645_s19 }
  0x41   :  { %p3652_p2 = por %p3651_p1, %p3650_p0 }
  0x43   :  { %p3653_p3 = pnand %p3652_p2, %p3646_p13 }
  0x45   :  { %3656 = shalt.err (!%p3653_p3)
}
  0x46   :  { %77 = dma.hbm_to_vmem [thread:$0]  %s4827_s9, 16, %s75_s16, [#allocation9]  }
  0x47   :  { %3667 = dma.done.wait [#allocation3], 768  }
  0x48   :  { %3668 = vsyncadd [#allocation3], 4294966528 }
  0x49   :  { %3669 = dma.done.wait [#allocation6], 272  }
  0x4a   :  { %3670 = vsyncadd [#allocation6], 4294967024 }
  0x4b   :  { %3671 = dma.done.wait [#allocation9], 16  }
  0x4c   :  { %3672 = vsyncadd [#allocation9], 4294967280  ;;  %v3683_v0 = vmov 0   ;;  %v93_v1 = vld [vmem:[%s4818_s0 + $0x10] sm:$0xff]  ;;  %v91_v2 = vld [vmem:[%s4818_s0] sm:$0xff]  ;;  %v3684_v13 = vmov 0.0   ;;  %v95_v14 = vlaneseq }
  0x4d   :  { %3245 = vset.pattern.permute.xlu1 %v3683_v0  ;;  %3244 = vset.pattern.permute.xlu0 %v3683_v0  ;;  %v94_v3 = vld [vmem:[%s4818_s0 + $0x18] sm:$0xff]  ;;  %v92_v4 = vld [vmem:[%s4818_s0 + $0x8] sm:$0xff]  ;;  %v3246_v5 = vld [vmem:[%s4819_s1] sm:$0xff]   ;;  %v3685_v20 = vmov 1.0|1.0   ;;  %vm3686_vm6 = vmmov 0  }
  0x4e   :  { %321 = vmatprep.mubr.bf16.mxu1 %v3683_v0  ;;  %104 = vperm.xlu1 %3245, %v93_v1   ;;  %v3247_v6 = vld [vmem:[%s4819_s1 + $0x8] sm:$0xff]   ;;  %v3248_v7 = vld [vmem:[%s4819_s1 + $0x10] sm:$0xff]   ;;  %v3249_v8 = vld [vmem:[%s4819_s1 + $0x18] sm:$0xff]   ;;  %v3848_v17 = vand.u32 127, %v95_v14  ;;  %vm282_vm7 = vcmask 261120   ;;  %vm1280_vm8 = vcmask 523264  }
  0x4f   :  { %98 = vperm.xlu0 %3244, %v91_v2   ;;  %3134 = vmatprep.subr.bf16.mxu0 %v3246_v5  ;;  %v3250_v9 = vld [vmem:[%s4819_s1 + $0x20] sm:$0xff]   ;;  %v3251_v10 = vld [vmem:[%s4819_s1 + $0x28] sm:$0xff]   ;;  %v3252_v11 = vld [vmem:[%s4819_s1 + $0x30] sm:$0xff]   ;;  %vm1383_vm13 = vcmask 1042432   ;;  %vm2899_vm14 = vcmask 1040384   ;;  %vm2901_vm15 = vcmask 1041408  }
  0x50   :  { %3135 = vmatpush3.bf16.msra.mxu0 %v3246_v5  ;;  %v3253_v12 = vld [vmem:[%s4819_s1 + $0x38] sm:$0xff]   ;;  %v3254_v21 = vld [vmem:[#allocation2 + $0x4] ss:$12 sps:$4 sm:$0xff]   ;;  %v3256_v22 = vld [vmem:[#allocation2] ss:$12 sps:$4 sm:$0xff]   ;;  %s3657_s23 = scalar_lea.hbm %s4828_s10, 16 }
  0x51   :  { %3136 = vmatprep.subr.bf16.mxu0 %v3247_v6  ;;  %v3257_v23 = vld [vmem:[#allocation2 + $0x1c] ss:$12 sps:$4 sm:$0xff]   ;;  %289 = vmatprep.subr.bf16.mxu1 %v3254_v21  ;;  %v3259_v24 = vld [vmem:[#allocation2 + $0x18] ss:$12 sps:$4 sm:$0xff]   ;;  %v3874_v26 = vld [vmem:[#allocation5] sm:$0xff]   ;;  %p3658_p4 = scmp.ne.s32.totalorder %s4828_s10, %s3657_s23  ;;  %p3661_p5 = scmp.lt.u32.totalorder %s3657_s23, %s4828_s10 }
  0x52   :  { %107 = vperm.xlu1 %3245, %v94_v3   ;;  %290 = vmatpush1.bf16.msra.mxu1 %v3256_v22  ;;  %v3260_v25 = vld [vmem:[#allocation2 + $0x8] ss:$12 sps:$4 sm:$0xff]   ;;  %v3878_v27 = vld [vmem:[#allocation5 + $0x8] sm:$0xff]   ;;  %v3261_v38 = vld [vmem:[#allocation2 + $0x20] ss:$12 sps:$4 sm:$0xff]  }
  0x53   :  { %101 = vperm.xlu0 %3244, %v92_v4   ;;  %291 = vmatprep.subr.bf16.mxu1 %v3257_v23  ;;  %v3019_v39 = vld [vmem:[%s4822_s4] ss:$0 sm:$0xff]  ;;  %s3687_s4 = smov 32   ;;  %p3663_p6 = pnand %p3661_p5, %p3658_p4 }
  0x54   :  { %3137 = vmatpush3.bf16.msra.mxu0 %v3247_v6 }
  0x55   :  { %3138 = vmatprep.subr.bf16.mxu0 %v3248_v7 }
  0x56   :  { %292 = vmatpush1.bf16.msra.mxu1 %v3259_v24 }
  0x57   :  { %3154 = vmatprep.subr.bf16.mxu1 %v3260_v25 }
  0x58   :  { %3139 = vmatpush3.bf16.msra.mxu0 %v3248_v7 }
  0x59   :  { %3140 = vmatprep.subr.bf16.mxu0 %v3249_v8 }
  0x5c   :  { %3141 = vmatpush3.bf16.msra.mxu0 %v3249_v8 }
  0x5d   :  { %3142 = vmatprep.subr.bf16.mxu0 %v3250_v9 }
  0x60   :  { %3143 = vmatpush3.bf16.msra.mxu0 %v3250_v9 }
  0x61   :  { %3144 = vmatprep.subr.bf16.mxu0 %v3251_v10 }
  0x64   :  { %3145 = vmatpush3.bf16.msra.mxu0 %v3251_v10 }
  0x65   :  { %3146 = vmatprep.subr.bf16.mxu0 %v3252_v11 }
  0x68   :  { %3147 = vmatpush3.bf16.msra.mxu0 %v3252_v11 }
  0x69   :  { %3148 = vmatprep.subr.bf16.mxu0 %v3253_v12 }
  0x6c   :  { %3149 = vmatpush3.bf16.msra.mxu0 %v3253_v12 }
  0x6d   :  { %3186 = vmatprep.subr.bf16.mxu0 %v3684_v13 }
  0xcd   :  { %v3844_v15 = vpop.permute.xlu1 %104 }
  0xce   :  { %v3846_v16 = vpop.permute.xlu0 %98  ;;  %vm111_vm0 = vcmp.eq.s32.totalorder %v3848_v17, %v3844_v15 }
  0xcf   :  { %vm109_vm4 = vcmp.eq.s32.totalorder %v3848_v17, %v3846_v16 }
  0xd1   :  { %v3850_v18 = vpop.permute.xlu1 %107 }
  0xd2   :  { %v3852_v19 = vpop.permute.xlu0 %101  ;;  %vm112_vm1 = vcmp.eq.s32.totalorder %v3848_v17, %v3850_v18 }
  0xd3   :  { %vm110_vm2 = vcmp.eq.s32.totalorder %v3848_v17, %v3852_v19  ;;  %vm3007_vm3 = vmpackc.low %vm112_vm1, %vm111_vm0  ;;  %v2996_v15 = vsel %vm112_vm1, 1.0, %v3684_v13 }
  0xd4   :  { %vm3005_vm5 = vmpackc.low %vm110_vm2, %vm109_vm4  ;;  %v2847_v17 = vrot.slane %v2996_v15, 4  ;;  %v2870_v18 = vrot.slane %v2996_v15, 5 }
  0xd5   :  { %3150 = vmatprep.mubr.msk.bf16.mxu0 %vm3005_vm5, %v3685_v20  ;;  %vm2906_vm5 = vcmask 1044480  }
  0xd6   :  { %3151 = vmatmul.mubr.msk.bf16.vlgmr.msra.gmra.mrb[0].mxu0 %vm3007_vm3, %v3685_v20  ;;  %vm2904_vm3 = vcmask 1043456  }
  0xd7   :  { %3187 = vmatpush3.bf16.msra.mxu0 %v3874_v26  ;;  %3190 = vmatprep.mubr.msk.bf16.mxu0 %vm3686_vm6, %v3684_v13 }
  0xd8   :  { %3188 = vmatprep.subr.bf16.mxu0 %v3684_v13 }
  0xdb   :  { %3189 = vmatpush3.bf16.msra.mxu0 %v3878_v27 }
  0xdc   :  { %3202 = vmatprep.subr.bf16.mxu0 %v3684_v13 }
 0x1a9   :  { %v3152_v28 = vpop.f32.mrb[0].mxu0 }
 0x1aa   :  { %3294 = vtanh.f32 %v3152_v28  ;;  %v221_v29 = vpop.f32.mrb[1].mxu0 }
 0x1ab   :  { %3296 = vtanh.f32 %v221_v29  ;;  %v3153_v30 = vpop.f32.mrb[2].mxu0 }
 0x1ac   :  { %3298 = vtanh.f32 %v3153_v30  ;;  %v224_v31 = vpop.f32.mrb[3].mxu0 }
 0x1ad   :  { %3300 = vtanh.f32 %v224_v31 }
 0x1b4   :  { %v3295_v32 = vpop.eup %3294 }
 0x1b5   :  { %v3297_v33 = vpop.eup %3296 }
 0x1b6   :  { %v3299_v34 = vpop.eup %3298 }
 0x1b7   :  { %v3301_v35 = vpop.eup %3300  ;;  %v241_v36 = vpack.c.bf16 %v3299_v34, %v3295_v32 }
 0x1b8   :  { %v240_v37 = vpack.c.bf16 %v3301_v35, %v3297_v33 }
 0x1ba   :  { %3015 = vmatmul.mubr.msk.bf16.vlgmr.msra.gmra.mrb[0].mxu1 %vm282_vm7, %v240_v37 }
 0x1bb   :  { %3155 = vmatpush3.bf16.msra.mxu1 %v3260_v25  ;;  %331 = vmatprep.mubr.bf16.mxu1 %v3683_v0 }
 0x1bc   :  { %3156 = vmatprep.subr.bf16.mxu1 %v3261_v38 }
 0x1bf   :  { %3157 = vmatpush3.bf16.msra.mxu1 %v3261_v38 }
 0x1c0   :  { %3162 = vmatprep.subr.bf16.mxu1 %v3684_v13 }
 0x1c2   :  { %3016 = vmatmul.mubr.msk.bf16.gmra.mrb[4].mxu1 %vm282_vm7, %v241_v36 }
 0x1c3   :  { %3158 = vmatprep.mubr.msk.bf16.mxu1 %vm282_vm7, %v240_v37 }
 0x1ca   :  { %3159 = vmatmul.mubr.msk.bf16.vlgmr.msra.gmra.mrb[8].mxu1 %vm282_vm7, %v241_v36 }
 0x1cb   :  { %3163 = vmatpush3.bf16.msra.mxu1 %v3874_v26  ;;  %3166 = vmatprep.mubr.msk.bf16.mxu1 %vm3686_vm6, %v3684_v13 }
 0x1cc   :  { %3164 = vmatprep.subr.bf16.mxu1 %v3684_v13 }
 0x1cf   :  { %3165 = vmatpush3.bf16.msra.mxu1 %v3878_v27 }
 0x1d0   :  { %3170 = vmatprep.subr.bf16.mxu1 %v3684_v13 }
 0x1d2   :  { %3167 = vmatmul.mubr.bf16.vlgmr.msra.gmra.mrb[12].mxu1 %v3683_v0 }
 0x1d3   :  { %3171 = vmatpush3.bf16.msra.mxu1 %v3874_v26  ;;  %3174 = vmatprep.mubr.msk.bf16.mxu1 %vm3686_vm6, %v3684_v13 }
 0x1d4   :  { %3172 = vmatprep.subr.bf16.mxu1 %v3684_v13 }
 0x1d7   :  { %3173 = vmatpush3.bf16.msra.mxu1 %v3878_v27 }
 0x1d8   :  { %3178 = vmatprep.subr.bf16.mxu1 %v3684_v13 }
 0x28d   :  { %v323_v40 = vpop.f32.mrb[0].mxu1 }
 0x28e   :  { %v3906_v41 = vadd.f32 %v3019_v39, %v323_v40  ;;  %v3908_v42 = vpop.f32.mrb[1].mxu1 }
 0x28f   :  { %v327_v43 = vpop.f32.mrb[2].mxu1 }
 0x290   :  { %v3910_v44 = vadd.f32 %v3019_v39, %v327_v43  ;;  %v3912_v45 = vpop.f32.mrb[3].mxu1 }
 0x295   :  { %v333_v46 = vpop.f32.mrb[4].mxu1 }
 0x296   :  { %v3914_v47 = vadd.f32 %v3019_v39, %v333_v46  ;;  %v3916_v48 = vpop.f32.mrb[5].mxu1 }
 0x297   :  { %v337_v49 = vpop.f32.mrb[6].mxu1 }
 0x298   :  { %v3918_v50 = vpop.f32.mrb[7].mxu1  ;;  %v401_v56 = vadd.f32 %v3019_v39, %v337_v49 }
 0x29d   :  { %v3920_v51 = vpop.f32.mrb[8].mxu1 }
 0x29e   :  { %v3922_v52 = vpop.f32.mrb[9].mxu1 }
 0x29f   :  { %v3924_v53 = vpop.f32.mrb[10].mxu1 }
 0x2a0   :  { %v3926_v54 = vpop.f32.mrb[11].mxu1 }
 0x2a5   :  { %v455_v55 = vpop.f32.mrb[12].mxu1 }
 0x2a6   :  { %v462_v57 = vrot.slane %v455_v55, 4  ;;  %v3168_v58 = vpop.f32.mrb[13].mxu1 }
 0x2a7   :  { %v458_v59 = vpop.f32.mrb[14].mxu1 }
 0x2a8   :  { %v464_v60 = vadd.f32 %v462_v57, %v401_v56  ;;  %v3169_v61 = vpop.f32.mrb[15].mxu1 }
 0x2aa   :  { %3302 = vtanh.f32 %v464_v60  ;;  %v3022_v63 = vmul.f32 -1.442695, %v464_v60 }
 0x2ac   :  { %3304 = vpow2.f32 %v3022_v63 }
 0x2b4   :  { %v3303_v62 = vpop.eup %3302 }
 0x2b5   :  { %474 = vrot.lane.b32.xlu0 %v3303_v62, %s3676_s13 }
 0x2b6   :  { %v3305_v1 = vpop.eup %3304 }
 0x2b7   :  { %v468_v2 = vadd.f32 1.0, %v3305_v1 }
 0x2b9   :  { %3306 = vrcp.f32 %v468_v2 }
 0x2c3   :  { %v3307_v3 = vpop.eup %3306 }
 0x2c4   :  { %v472_v6 = vmul.f32 0.0, %v3307_v3 }
 0x327   :  { %v475_v4 = vpop.permute.xlu0 %474 }
 0x328   :  { %v477_v5 = vmul.f32 %v3307_v3, %v475_v4 }
 0x32a   :  { %479 = vrot.lane.b32.xlu1 %v477_v5, %s3687_s4 }
 0x39c   :  { %v480_v7 = vpop.permute.xlu1 %479 }
 0x39d   :  { %v482_v8 = vadd.f32 %v480_v7, %v472_v6 }
 0x39f   :  { %3308 = vtanh.f32 %v482_v8  ;;  %v546_v35 = vrot.slane %v482_v8, 4 }
 0x3a9   :  { %v3309_v9 = vpop.eup %3308 }
 0x3aa   :  { %485 = vrot.lane.b32.xlu0 %v3309_v9, %s3676_s13 }
 0x41c   :  { %v486_v10 = vpop.permute.xlu0 %485 }
 0x41d   :  { %v488_v11 = vmul.f32 %v3307_v3, %v486_v10 }
 0x41f   :  { %v489_v12 = vpack.c.bf16 %v488_v11, %v488_v11 }
 0x421   :  { %v491_v14 = vrot.slane %v489_v12, 2 }
 0x423   :  { %492 = vrot.lane.b32.xlu1 %v491_v14, %s3687_s4 }
 0x495   :  { %v493_v20 = vpop.permute.xlu1 %492 }
 0x496   :  { %3175 = vmatmul.mubr.msk.bf16.vlgmr.msra.gmra.mrb[16].mxu1 %vm282_vm7, %v493_v20 }
 0x497   :  { %3179 = vmatpush3.bf16.msra.mxu1 %v3874_v26  ;;  %3182 = vmatprep.mubr.msk.bf16.mxu1 %vm3686_vm6, %v3684_v13 }
 0x498   :  { %3180 = vmatprep.subr.bf16.mxu1 %v3684_v13 }
 0x49b   :  { %3181 = vmatpush3.bf16.msra.mxu1 %v3878_v27 }
 0x49c   :  { %3194 = vmatprep.subr.bf16.mxu1 %v3684_v13 }
 0x569   :  { %v531_v21 = vpop.f32.mrb[16].mxu1 }
 0x56a   :  { %v537_v22 = vadd.f32 %v531_v21, %v401_v56  ;;  %v3176_v23 = vpop.f32.mrb[17].mxu1 }
 0x56b   :  { %v534_v24 = vpop.f32.mrb[18].mxu1 }
 0x56c   :  { %3310 = vtanh.f32 %v537_v22  ;;  %v3177_v25 = vpop.f32.mrb[19].mxu1  ;;  %v3024_v29 = vmul.f32 -1.442695, %v537_v22 }
 0x56e   :  { %3312 = vpow2.f32 %v3024_v29 }
 0x576   :  { %v3311_v28 = vpop.eup %3310 }
 0x577   :  { %550 = vrot.lane.b32.xlu0 %v3311_v28, %s3676_s13 }
 0x578   :  { %v3313_v30 = vpop.eup %3312 }
 0x579   :  { %v541_v31 = vadd.f32 1.0, %v3313_v30 }
 0x57b   :  { %3314 = vrcp.f32 %v541_v31 }
 0x585   :  { %v3315_v32 = vpop.eup %3314 }
 0x586   :  { %v548_v36 = vmul.f32 %v3315_v32, %v546_v35 }
 0x5e9   :  { %v551_v33 = vpop.permute.xlu0 %550 }
 0x5ea   :  { %v553_v34 = vmul.f32 %v3315_v32, %v551_v33 }
 0x5ec   :  { %555 = vrot.lane.b32.xlu1 %v553_v34, %s3687_s4 }
 0x65e   :  { %v556_v37 = vpop.permute.xlu1 %555 }
 0x65f   :  { %v558_v38 = vadd.f32 %v556_v37, %v548_v36 }
 0x661   :  { %3316 = vtanh.f32 %v558_v38  ;;  %v624_v5 = vrot.slane %v558_v38, 4 }
 0x66b   :  { %v3317_v39 = vpop.eup %3316 }
 0x66c   :  { %561 = vrot.lane.b32.xlu0 %v3317_v39, %s3676_s13 }
 0x6de   :  { %v562_v40 = vpop.permute.xlu0 %561 }
 0x6df   :  { %v564_v43 = vmul.f32 %v3315_v32, %v562_v40 }
 0x6e1   :  { %v565_v46 = vpack.c.bf16 %v564_v43, %v564_v43 }
 0x6e3   :  { %567 = vrot.lane.b32.xlu1 %v565_v46, %s3687_s4 }
 0x755   :  { %v568_v49 = vpop.permute.xlu1 %567 }
 0x756   :  { %3183 = vmatmul.mubr.msk.bf16.vlgmr.msra.gmra.mrb[20].mxu1 %vm282_vm7, %v568_v49 }
 0x757   :  { %3195 = vmatpush3.bf16.msra.mxu1 %v3874_v26  ;;  %3198 = vmatprep.mubr.msk.bf16.mxu1 %vm3686_vm6, %v3684_v13 }
 0x758   :  { %3196 = vmatprep.subr.bf16.mxu1 %v3684_v13 }
 0x75b   :  { %3197 = vmatpush3.bf16.msra.mxu1 %v3878_v27 }
 0x75c   :  { %3210 = vmatprep.subr.bf16.mxu1 %v3684_v13 }
 0x829   :  { %v606_v55 = vpop.f32.mrb[20].mxu1 }
 0x82a   :  { %v613_v56 = vrot.slane %v606_v55, 4  ;;  %v3184_v57 = vpop.f32.mrb[21].mxu1 }
 0x82b   :  { %v609_v58 = vpop.f32.mrb[22].mxu1 }
 0x82c   :  { %v615_v59 = vadd.f32 %v613_v56, %v3914_v47  ;;  %v3185_v60 = vpop.f32.mrb[23].mxu1 }
 0x82e   :  { %3318 = vtanh.f32 %v615_v59  ;;  %v3026_v62 = vmul.f32 -1.442695, %v615_v59 }
 0x830   :  { %3320 = vpow2.f32 %v3026_v62 }
 0x838   :  { %v3319_v61 = vpop.eup %3318 }
 0x839   :  { %628 = vrot.lane.b32.xlu0 %v3319_v61, %s3676_s13 }
 0x83a   :  { %v3321_v63 = vpop.eup %3320 }
 0x83b   :  { %v619_v1 = vadd.f32 1.0, %v3321_v63 }
 0x83d   :  { %3322 = vrcp.f32 %v619_v1 }
 0x847   :  { %v3323_v2 = vpop.eup %3322 }
 0x848   :  { %v626_v6 = vmul.f32 %v3323_v2, %v624_v5 }
 0x8ab   :  { %v629_v3 = vpop.permute.xlu0 %628 }
 0x8ac   :  { %v631_v4 = vmul.f32 %v3323_v2, %v629_v3 }
 0x8ae   :  { %633 = vrot.lane.b32.xlu1 %v631_v4, %s3687_s4 }
 0x920   :  { %v634_v7 = vpop.permute.xlu1 %633 }
 0x921   :  { %v636_v8 = vadd.f32 %v634_v7, %v626_v6 }
 0x923   :  { %3324 = vtanh.f32 %v636_v8  ;;  %v700_v35 = vrot.slane %v636_v8, 4 }
 0x92d   :  { %v3325_v9 = vpop.eup %3324 }
 0x92e   :  { %639 = vrot.lane.b32.xlu0 %v3325_v9, %s3676_s13 }
 0x9a0   :  { %v640_v10 = vpop.permute.xlu0 %639 }
 0x9a1   :  { %v642_v11 = vmul.f32 %v3323_v2, %v640_v10 }
 0x9a3   :  { %v643_v12 = vpack.c.bf16 %v642_v11, %v642_v11 }
 0x9a5   :  { %v645_v14 = vrot.slane %v643_v12, 2 }
 0x9a7   :  { %646 = vrot.lane.b32.xlu1 %v645_v14, %s3687_s4 }
 0xa19   :  { %v647_v20 = vpop.permute.xlu1 %646 }
 0xa1a   :  { %3191 = vmatmul.mubr.msk.bf16.vlgmr.msra.gmra.mrb[4].mxu0 %vm282_vm7, %v647_v20 }
 0xa1b   :  { %3203 = vmatpush3.bf16.msra.mxu0 %v3874_v26  ;;  %3206 = vmatprep.mubr.msk.bf16.mxu0 %vm3686_vm6, %v3684_v13 }
 0xa1c   :  { %3204 = vmatprep.subr.bf16.mxu0 %v3684_v13 }
 0xa1f   :  { %3205 = vmatpush3.bf16.msra.mxu0 %v3878_v27 }
 0xa20   :  { %3218 = vmatprep.subr.bf16.mxu0 %v3684_v13 }
 0xaed   :  { %v685_v21 = vpop.f32.mrb[4].mxu0 }
 0xaee   :  { %v691_v22 = vadd.f32 %v685_v21, %v3914_v47  ;;  %v3192_v23 = vpop.f32.mrb[5].mxu0 }
 0xaef   :  { %v688_v24 = vpop.f32.mrb[6].mxu0 }
 0xaf0   :  { %3326 = vtanh.f32 %v691_v22  ;;  %v3193_v25 = vpop.f32.mrb[7].mxu0  ;;  %v3028_v29 = vmul.f32 -1.442695, %v691_v22 }
 0xaf2   :  { %3328 = vpow2.f32 %v3028_v29 }
 0xafa   :  { %v3327_v28 = vpop.eup %3326 }
 0xafb   :  { %704 = vrot.lane.b32.xlu0 %v3327_v28, %s3676_s13 }
 0xafc   :  { %v3329_v30 = vpop.eup %3328 }
 0xafd   :  { %v695_v31 = vadd.f32 1.0, %v3329_v30 }
 0xaff   :  { %3330 = vrcp.f32 %v695_v31 }
 0xb09   :  { %v3331_v32 = vpop.eup %3330 }
 0xb0a   :  { %v702_v36 = vmul.f32 %v3331_v32, %v700_v35 }
 0xb6d   :  { %v705_v33 = vpop.permute.xlu0 %704 }
 0xb6e   :  { %v707_v34 = vmul.f32 %v3331_v32, %v705_v33 }
 0xb70   :  { %709 = vrot.lane.b32.xlu1 %v707_v34, %s3687_s4 }
 0xbe2   :  { %v710_v47 = vpop.permute.xlu1 %709 }
 0xbe3   :  { %v712_v37 = vadd.f32 %v710_v47, %v702_v36 }
 0xbe5   :  { %3332 = vtanh.f32 %v712_v37  ;;  %v778_v4 = vrot.slane %v712_v37, 4 }
 0xbef   :  { %v3333_v38 = vpop.eup %3332 }
 0xbf0   :  { %715 = vrot.lane.b32.xlu0 %v3333_v38, %s3676_s13 }
 0xc62   :  { %v716_v39 = vpop.permute.xlu0 %715 }
 0xc63   :  { %v718_v40 = vmul.f32 %v3331_v32, %v716_v39 }
 0xc65   :  { %v719_v43 = vpack.c.bf16 %v718_v40, %v718_v40 }
 0xc67   :  { %721 = vrot.lane.b32.xlu1 %v719_v43, %s3687_s4 }
 0xcd9   :  { %v722_v46 = vpop.permute.xlu1 %721 }
 0xcda   :  { %3199 = vmatmul.mubr.msk.bf16.vlgmr.msra.gmra.mrb[24].mxu1 %vm282_vm7, %v722_v46 }
 0xcdb   :  { %3211 = vmatpush3.bf16.msra.mxu1 %v3874_v26  ;;  %3214 = vmatprep.mubr.msk.bf16.mxu1 %vm3686_vm6, %v3684_v13 }
 0xcdc   :  { %3212 = vmatprep.subr.bf16.mxu1 %v3684_v13 }
 0xcdf   :  { %3213 = vmatpush3.bf16.msra.mxu1 %v3878_v27 }
 0xdad   :  { %v760_v49 = vpop.f32.mrb[24].mxu1 }
 0xdae   :  { %v767_v55 = vrot.slane %v760_v49, 4  ;;  %v3200_v56 = vpop.f32.mrb[25].mxu1 }
 0xdaf   :  { %v763_v57 = vpop.f32.mrb[26].mxu1 }
 0xdb0   :  { %v769_v58 = vadd.f32 %v767_v55, %v3910_v44  ;;  %v3201_v59 = vpop.f32.mrb[27].mxu1 }
 0xdb2   :  { %3334 = vtanh.f32 %v769_v58  ;;  %v3030_v61 = vmul.f32 -1.442695, %v769_v58 }
 0xdb4   :  { %3336 = vpow2.f32 %v3030_v61 }
 0xdbc   :  { %v3335_v60 = vpop.eup %3334 }
 0xdbd   :  { %782 = vrot.lane.b32.xlu0 %v3335_v60, %s3676_s13 }
 0xdbe   :  { %v3337_v62 = vpop.eup %3336 }
 0xdbf   :  { %v773_v63 = vadd.f32 1.0, %v3337_v62 }
 0xdc1   :  { %3338 = vrcp.f32 %v773_v63 }
 0xdcb   :  { %v3339_v1 = vpop.eup %3338 }
 0xdcc   :  { %v780_v5 = vmul.f32 %v3339_v1, %v778_v4 }
 0xe2f   :  { %v783_v2 = vpop.permute.xlu0 %782 }
 0xe30   :  { %v785_v3 = vmul.f32 %v3339_v1, %v783_v2 }
 0xe32   :  { %787 = vrot.lane.b32.xlu1 %v785_v3, %s3687_s4 }
 0xea4   :  { %v788_v6 = vpop.permute.xlu1 %787 }
 0xea5   :  { %v790_v7 = vadd.f32 %v788_v6, %v780_v5 }
 0xea7   :  { %3340 = vtanh.f32 %v790_v7 }
 0xeb1   :  { %v3341_v8 = vpop.eup %3340 }
 0xeb2   :  { %793 = vrot.lane.b32.xlu0 %v3341_v8, %s3676_s13 }
 0xf24   :  { %v794_v9 = vpop.permute.xlu0 %793 }
 0xf25   :  { %v796_v10 = vmul.f32 %v3339_v1, %v794_v9 }
 0xf27   :  { %v797_v11 = vpack.c.bf16 %v796_v10, %v796_v10 }
 0xf29   :  { %v799_v12 = vrot.slane %v797_v11, 2 }
 0xf2b   :  { %800 = vrot.lane.b32.xlu1 %v799_v12, %s3687_s4 }
 0xf9d   :  { %v801_v14 = vpop.permute.xlu1 %800 }
 0xf9e   :  { %3207 = vmatmul.mubr.msk.bf16.vlgmr.msra.gmra.mrb[8].mxu0 %vm282_vm7, %v801_v14 }
 0xf9f   :  { %3219 = vmatpush3.bf16.msra.mxu0 %v3874_v26  ;;  %3222 = vmatprep.mubr.msk.bf16.mxu0 %vm3686_vm6, %v3684_v13  ;;  %vm2908_vm6 = vcmask 1045504  }
 0xfa0   :  { %3220 = vmatprep.subr.bf16.mxu0 %v3684_v13 }
 0xfa3   :  { %3221 = vmatpush3.bf16.msra.mxu0 %v3878_v27  ;;  %v854_v27 = vrot.slane %v790_v7, 4 }
0x1071   :  { %v839_v20 = vpop.f32.mrb[8].mxu0 }
0x1072   :  { %v845_v21 = vadd.f32 %v839_v20, %v3910_v44  ;;  %v3208_v22 = vpop.f32.mrb[9].mxu0 }
0x1073   :  { %v842_v23 = vpop.f32.mrb[10].mxu0 }
0x1074   :  { %3342 = vtanh.f32 %v845_v21  ;;  %v3209_v24 = vpop.f32.mrb[11].mxu0  ;;  %v3032_v28 = vmul.f32 -1.442695, %v845_v21 }
0x1076   :  { %3344 = vpow2.f32 %v3032_v28 }
0x107e   :  { %v3343_v25 = vpop.eup %3342 }
0x107f   :  { %858 = vrot.lane.b32.xlu0 %v3343_v25, %s3676_s13 }
0x1080   :  { %v3345_v26 = vpop.eup %3344 }
0x1081   :  { %v849_v29 = vadd.f32 1.0, %v3345_v26 }
0x1083   :  { %3346 = vrcp.f32 %v849_v29 }
0x108d   :  { %v3347_v30 = vpop.eup %3346 }
0x108e   :  { %v856_v33 = vmul.f32 %v3347_v30, %v854_v27  ;;  %v3266_v27 = vld [vmem:[%s4823_s5 + $0x4] ss:$8 sps:$4 sm:$0xff]  }
0x108f   :  { %1058 = vmatprep.subr.bf16.mxu1 %v3266_v27  ;;  %v4106_v27 = vld [vmem:[%s4826_s8 + $0x48] ss:$16 sps:$4 sm:$0xff]  }
0x10f1   :  { %v859_v31 = vpop.permute.xlu0 %858 }
0x10f2   :  { %v861_v32 = vmul.f32 %v3347_v30, %v859_v31 }
0x10f4   :  { %863 = vrot.lane.b32.xlu1 %v861_v32, %s3687_s4  ;;  %v3264_v32 = vld [vmem:[%s4823_s5] ss:$8 sps:$4 sm:$0xff]  }
0x1166   :  { %v864_v44 = vpop.permute.xlu1 %863 }
0x1167   :  { %v866_v34 = vadd.f32 %v864_v44, %v856_v33  ;;  %v3269_v33 = vld [vmem:[%s4823_s5 + $0x14] ss:$8 sps:$4 sm:$0xff]   ;;  %v3267_v44 = vld [vmem:[%s4823_s5 + $0x10] ss:$8 sps:$4 sm:$0xff]  }
0x1169   :  { %3348 = vtanh.f32 %v866_v34  ;;  %v932_v63 = vrot.slane %v866_v34, 4 }
0x1173   :  { %v3349_v35 = vpop.eup %3348 }
0x1174   :  { %869 = vrot.lane.b32.xlu0 %v3349_v35, %s3676_s13 }
0x11e6   :  { %v870_v36 = vpop.permute.xlu0 %869 }
0x11e7   :  { %v872_v47 = vmul.f32 %v3347_v30, %v870_v36 }
0x11e9   :  { %v873_v37 = vpack.c.bf16 %v872_v47, %v872_v47 }
0x11eb   :  { %875 = vrot.lane.b32.xlu1 %v873_v37, %s3687_s4 }
0x125d   :  { %v876_v38 = vpop.permute.xlu1 %875 }
0x125e   :  { %3215 = vmatmul.mubr.msk.bf16.vlgmr.msra.gmra.mrb[28].mxu1 %vm282_vm7, %v876_v38  ;;  %v3042_v38 = vld [vmem:[%s4824_s6] ss:$0 sm:$0xff] }
0x125f   :  { %1090 = vmatprep.mubr.bf16.mxu1 %v3683_v0  ;;  %1059 = vmatpush1.bf16.msra.mxu1 %v3264_v32  ;;  %v4101_v32 = vld [vmem:[%s4826_s8 + $0x40] ss:$16 sps:$4 sm:$0xff]  }
0x1260   :  { %1060 = vmatprep.subr.bf16.mxu1 %v3269_v33  ;;  %v4115_v33 = vld [vmem:[%s4826_s8 + $0x64] ss:$16 sps:$4 sm:$0xff]  }
0x1263   :  { %1061 = vmatpush1.bf16.msra.mxu1 %v3267_v44  ;;  %v4120_v44 = vld [vmem:[%s4826_s8 + $0x6c] ss:$16 sps:$4 sm:$0xff]  }
0x1331   :  { %v914_v39 = vpop.f32.mrb[28].mxu1 }
0x1332   :  { %v921_v40 = vrot.slane %v914_v39, 4  ;;  %v3216_v43 = vpop.f32.mrb[29].mxu1  ;;  %v3043_v39 = vld [vmem:[#allocation7] ss:$0 sm:$0xff] }
0x1333   :  { %v917_v46 = vpop.f32.mrb[30].mxu1 }
0x1334   :  { %v923_v49 = vadd.f32 %v921_v40, %v3906_v41  ;;  %v3217_v55 = vpop.f32.mrb[31].mxu1 }
0x1336   :  { %3350 = vtanh.f32 %v923_v49  ;;  %v3034_v57 = vmul.f32 -1.442695, %v923_v49 }
0x1338   :  { %3352 = vpow2.f32 %v3034_v57 }
0x1340   :  { %v3351_v56 = vpop.eup %3350 }
0x1341   :  { %936 = vrot.lane.b32.xlu0 %v3351_v56, %s3676_s13 }
0x1342   :  { %v3353_v58 = vpop.eup %3352 }
0x1343   :  { %v927_v59 = vadd.f32 1.0, %v3353_v58 }
0x1345   :  { %3354 = vrcp.f32 %v927_v59 }
0x134f   :  { %v3355_v60 = vpop.eup %3354 }
0x1350   :  { %v934_v1 = vmul.f32 %v3355_v60, %v932_v63 }
0x13b3   :  { %v937_v61 = vpop.permute.xlu0 %936 }
0x13b4   :  { %v939_v62 = vmul.f32 %v3355_v60, %v937_v61 }
0x13b6   :  { %941 = vrot.lane.b32.xlu1 %v939_v62, %s3687_s4 }
0x1428   :  { %v942_v2 = vpop.permute.xlu1 %941 }
0x1429   :  { %v944_v3 = vadd.f32 %v942_v2, %v934_v1 }
0x142b   :  { %3356 = vtanh.f32 %v944_v3  ;;  %v1008_v29 = vrot.slane %v944_v3, 4 }
0x1435   :  { %v3357_v4 = vpop.eup %3356 }
0x1436   :  { %947 = vrot.lane.b32.xlu0 %v3357_v4, %s3676_s13 }
0x14a8   :  { %v948_v5 = vpop.permute.xlu0 %947 }
0x14a9   :  { %v950_v6 = vmul.f32 %v3355_v60, %v948_v5 }
0x14ab   :  { %v951_v7 = vpack.c.bf16 %v950_v6, %v950_v6 }
0x14ad   :  { %v953_v8 = vrot.slane %v951_v7, 2 }
0x14af   :  { %954 = vrot.lane.b32.xlu1 %v953_v8, %s3687_s4 }
0x1521   :  { %v955_v9 = vpop.permute.xlu1 %954 }
0x1522   :  { %3223 = vmatmul.mubr.msk.bf16.vlgmr.msra.gmra.mrb[12].mxu0 %vm282_vm7, %v955_v9 }
0x1523   :  { %1316 = vmatprep.mubr.bf16.mxu0 %v3683_v0 }
0x15f5   :  { %v993_v10 = vpop.f32.mrb[12].mxu0 }
0x15f6   :  { %v999_v11 = vadd.f32 %v993_v10, %v3906_v41  ;;  %v3224_v12 = vpop.f32.mrb[13].mxu0 }
0x15f7   :  { %v996_v14 = vpop.f32.mrb[14].mxu0 }
0x15f8   :  { %3358 = vtanh.f32 %v999_v11  ;;  %v3225_v20 = vpop.f32.mrb[15].mxu0  ;;  %v3036_v22 = vmul.f32 -1.442695, %v999_v11 }
0x15f9   :  { %v4041_v20 = vld [vmem:[%s4826_s8 + $0x4] ss:$16 sps:$4 sm:$0xff]  }
0x15fa   :  { %3360 = vpow2.f32 %v3036_v22  ;;  %v4051_v22 = vld [vmem:[%s4826_s8] ss:$16 sps:$4 sm:$0xff]   ;;  %1284 = vmatprep.subr.bf16.mxu0 %v4041_v20 }
0x15fb   :  { %1285 = vmatpush1.bf16.msra.mxu0 %v4051_v22 }
0x1602   :  { %v3359_v21 = vpop.eup %3358 }
0x1603   :  { %1012 = vrot.lane.b32.xlu0 %v3359_v21, %s3676_s13  ;;  %v4046_v21 = vld [vmem:[%s4826_s8 + $0xc] ss:$16 sps:$4 sm:$0xff]  }
0x1604   :  { %v3361_v23 = vpop.eup %3360  ;;  %1325 = vmatprep.subr.bf16.mxu1 %v4046_v21 }
0x1605   :  { %v1003_v24 = vadd.f32 1.0, %v3361_v23  ;;  %v4056_v23 = vld [vmem:[%s4826_s8 + $0x8] ss:$16 sps:$4 sm:$0xff]  }
0x1607   :  { %3362 = vrcp.f32 %v1003_v24 }
0x1611   :  { %v3363_v25 = vpop.eup %3362 }
0x1612   :  { %v1010_v30 = vmul.f32 %v3363_v25, %v1008_v29  ;;  %v4077_v29 = vld [vmem:[%s4826_s8 + $0x20] ss:$16 sps:$4 sm:$0xff]  }
0x1675   :  { %v1013_v28 = vpop.permute.xlu0 %1012 }
0x1676   :  { %v1015_v26 = vmul.f32 %v3363_v25, %v1013_v28  ;;  %v4067_v28 = vld [vmem:[%s4826_s8 + $0x24] ss:$16 sps:$4 sm:$0xff]  }
0x1677   :  { %1286 = vmatprep.subr.bf16.mxu0 %v4067_v28 }
0x1678   :  { %1017 = vrot.lane.b32.xlu1 %v1015_v26, %s3687_s4  ;;  %v4072_v26 = vld [vmem:[%s4826_s8 + $0x2c] ss:$16 sps:$4 sm:$0xff]   ;;  %1287 = vmatpush1.bf16.msra.mxu0 %v4077_v29 }
0x16ea   :  { %v1018_v41 = vpop.permute.xlu1 %1017 }
0x16eb   :  { %v1020_v31 = vadd.f32 %v1018_v41, %v1010_v30  ;;  %v4082_v30 = vld [vmem:[%s4826_s8 + $0x28] ss:$16 sps:$4 sm:$0xff]   ;;  %v4091_v41 = vld [vmem:[%s4826_s8 + $0x44] ss:$16 sps:$4 sm:$0xff]  }
0x16ec   :  { %1288 = vmatprep.subr.bf16.mxu0 %v4091_v41 }
0x16ed   :  { %3364 = vtanh.f32 %v1020_v31  ;;  %v4096_v31 = vld [vmem:[%s4826_s8 + $0x4c] ss:$16 sps:$4 sm:$0xff]   ;;  %1289 = vmatpush1.bf16.msra.mxu0 %v4101_v32 }
0x16ee   :  { %1290 = vmatprep.subr.bf16.mxu0 %v4115_v33 }
0x16f7   :  { %v3365_v34 = vpop.eup %3364 }
0x16f8   :  { %1023 = vrot.lane.b32.xlu0 %v3365_v34, %s3676_s13  ;;  %v4125_v34 = vld [vmem:[%s4826_s8 + $0x60] ss:$16 sps:$4 sm:$0xff]  }
0x16f9   :  { %1291 = vmatpush1.bf16.msra.mxu0 %v4125_v34 }
0x16fa   :  { %1508 = vmatprep.subr.bf16.mxu0 %v4041_v20 }
0x176a   :  { %v1024_v35 = vpop.permute.xlu0 %1023 }
0x176b   :  { %v1026_v36 = vmul.f32 %v3363_v25, %v1024_v35  ;;  %v4130_v35 = vld [vmem:[%s4826_s8 + $0x68] ss:$16 sps:$4 sm:$0xff]  }
0x176d   :  { %v1027_v47 = vpack.c.bf16 %v1026_v36, %v1026_v36 }
0x176f   :  { %1033 = vrot.lane.b32.xlu1 %v1027_v47, %s3687_s4 }
0x17e1   :  { %v1034_v37 = vpop.permute.xlu1 %1033 }
0x17e2   :  { %3041 = vmatmul.mubr.msk.bf16.vlgmr.msra.gmra.mrb[32].mxu1 %vm282_vm7, %v1034_v37 }
0x17e3   :  { %1357 = vmatprep.mubr.bf16.mxu1 %v3683_v0  ;;  %1326 = vmatpush1.bf16.msra.mxu1 %v4056_v23 }
0x17e4   :  { %1327 = vmatprep.subr.bf16.mxu1 %v4072_v26 }
0x17e7   :  { %1328 = vmatpush1.bf16.msra.mxu1 %v4082_v30 }
0x17e8   :  { %1329 = vmatprep.subr.bf16.mxu1 %v4096_v31 }
0x17eb   :  { %1330 = vmatpush1.bf16.msra.mxu1 %v4106_v27 }
0x17ec   :  { %1331 = vmatprep.subr.bf16.mxu1 %v4120_v44 }
0x17ef   :  { %1332 = vmatpush1.bf16.msra.mxu1 %v4130_v35 }
0x17f0   :  { %1549 = vmatprep.subr.bf16.mxu1 %v4046_v21 }
0x18b5   :  { %v1092_v40 = vpop.f32.mrb[32].mxu1 }
0x18b6   :  { %v4020_v43 = vadd.f32 %v3042_v38, %v1092_v40  ;;  %v1094_v46 = vpop.f32.mrb[33].mxu1 }
0x18b7   :  { %v4022_v49 = vadd.f32 %v3043_v39, %v1094_v46  ;;  %v1096_v55 = vpop.f32.mrb[34].mxu1 }
0x18b8   :  { %v1097_v56 = vpop.f32.mrb[35].mxu1  ;;  %3366 = vtanh.f32 %v4020_v43  ;;  %v3044_v59 = vmul.f32 -1.442695, %v4020_v43 }
0x18b9   :  { %3368 = vtanh.f32 %v4022_v49  ;;  %v3045_v60 = vmul.f32 -1.442695, %v4022_v49 }
0x18ba   :  { %3370 = vpow2.f32 %v3044_v59 }
0x18bb   :  { %3372 = vpow2.f32 %v3045_v60 }
0x18c2   :  { %v3367_v57 = vpop.eup %3366 }
0x18c3   :  { %v3369_v58 = vpop.eup %3368  ;;  %1143 = vrot.lane.b32.xlu1 %v3367_v57, %s3676_s13 }
0x18c4   :  { %1167 = vrot.lane.b32.xlu0 %v3369_v58, %s3676_s13  ;;  %v3371_v61 = vpop.eup %3370 }
0x18c5   :  { %v3373_v62 = vpop.eup %3372  ;;  %v1137_v63 = vadd.f32 1.0, %v3371_v61 }
0x18c6   :  { %v1161_v1 = vadd.f32 1.0, %v3373_v62 }
0x18c7   :  { %3374 = vrcp.f32 %v1137_v63 }
0x18c8   :  { %3376 = vrcp.f32 %v1161_v1 }
0x18d1   :  { %v3375_v2 = vpop.eup %3374 }
0x18d2   :  { %v3377_v4 = vpop.eup %3376  ;;  %v1141_v8 = vmul.f32 0.0, %v3375_v2 }
0x18d3   :  { %v1165_v10 = vmul.f32 0.0, %v3377_v4 }
0x1935   :  { %v1144_v3 = vpop.permute.xlu1 %1143 }
0x1936   :  { %v1146_v5 = vmul.f32 %v3375_v2, %v1144_v3  ;;  %v1168_v6 = vpop.permute.xlu0 %1167  ;;  %v1436_v3 = vrot.slane %v3922_v52, 1 }
0x1937   :  { %v1170_v7 = vmul.f32 %v3377_v4, %v1168_v6 }
0x1938   :  { %1148 = vrot.lane.b32.xlu1 %v1146_v5, %s3687_s4 }
0x1939   :  { %1172 = vrot.lane.b32.xlu0 %v1170_v7, %s3687_s4  ;;  %v1432_v7 = vrot.slane %v3908_v42, 7 }
0x19aa   :  { %v1149_v9 = vpop.permute.xlu1 %1148 }
0x19ab   :  { %v4032_v11 = vadd.f32 %v1149_v9, %v1141_v8  ;;  %v1173_v12 = vpop.permute.xlu0 %1172 }
0x19ac   :  { %v4034_v14 = vadd.f32 %v1173_v12, %v1165_v10 }
0x19ad   :  { %3378 = vtanh.f32 %v4032_v11 }
0x19ae   :  { %3380 = vtanh.f32 %v4034_v14 }
0x19b7   :  { %v3379_v24 = vpop.eup %3378 }
0x19b8   :  { %v3381_v25 = vpop.eup %3380  ;;  %1154 = vrot.lane.b32.xlu1 %v3379_v24, %s3676_s13 }
0x19b9   :  { %1178 = vrot.lane.b32.xlu0 %v3381_v25, %s3676_s13 }
0x1a2a   :  { %v1155_v36 = vpop.permute.xlu1 %1154 }
0x1a2b   :  { %v1157_v47 = vmul.f32 %v3375_v2, %v1155_v36  ;;  %v1179_v37 = vpop.permute.xlu0 %1178 }
0x1a2c   :  { %v1181_v38 = vmul.f32 %v3377_v4, %v1179_v37 }
0x1a2d   :  { %1183 = vrot.lane.b32.xlu0 %v1157_v47, %s3687_s4 }
0x1a2e   :  { %v1187_v39 = vrot.slane %v1181_v38, 7 }
0x1a30   :  { %1188 = vrot.lane.b32.xlu1 %v1187_v39, %s3676_s13 }
0x1a9f   :  { %v1184_v40 = vpop.permute.xlu0 %1183 }
0x1aa2   :  { %v1189_v46 = vpop.permute.xlu1 %1188 }
0x1aa3   :  { %v1191_v55 = vsel %vm282_vm7, %v1184_v40, %v1189_v46 }
0x1aa4   :  { %v1192_v56 = vpack.c.bf16 %v1191_v55, %v1191_v55 }
0x1aa6   :  { %v1196_v57 = vshll.u32 %v1192_v56, 16  ;;  %v1194_v58 = vshrl.u32 %v1192_v56, 16 }
0x1aa8   :  { %v1198_v59 = vrot.slane %v1196_v57, 1 }
0x1aaa   :  { %v1199_v60 = vor.u32 %v1198_v59, %v1194_v58 }
0x1aac   :  { %3062 = vmatmul.mubr.msk.bf16.vlgmr.msra.gmra.mrb[16].mxu0 %vm1280_vm8, %v1199_v60  ;;  %3063 = vmatmul.mubr.msk.bf16.vlgmr.msra.gmra.mrb[36].mxu1 %vm1280_vm8, %v1199_v60 }
0x1aad   :  { %1509 = vmatpush1.bf16.msra.mxu0 %v4051_v22  ;;  %1550 = vmatpush1.bf16.msra.mxu1 %v4056_v23 }
0x1aae   :  { %1510 = vmatprep.subr.bf16.mxu0 %v4067_v28  ;;  %1551 = vmatprep.subr.bf16.mxu1 %v4072_v26 }
0x1aaf   :  { %1540 = vmatprep.mubr.bf16.mxu0 %v3683_v0  ;;  %1581 = vmatprep.mubr.bf16.mxu1 %v3683_v0 }
0x1ab1   :  { %1511 = vmatpush1.bf16.msra.mxu0 %v4077_v29  ;;  %1552 = vmatpush1.bf16.msra.mxu1 %v4082_v30 }
0x1ab2   :  { %1512 = vmatprep.subr.bf16.mxu0 %v4091_v41  ;;  %1553 = vmatprep.subr.bf16.mxu1 %v4096_v31 }
0x1ab5   :  { %1513 = vmatpush1.bf16.msra.mxu0 %v4101_v32  ;;  %1554 = vmatpush1.bf16.msra.mxu1 %v4106_v27 }
0x1ab6   :  { %1514 = vmatprep.subr.bf16.mxu0 %v4115_v33  ;;  %1555 = vmatprep.subr.bf16.mxu1 %v4120_v44 }
0x1ab9   :  { %1515 = vmatpush1.bf16.msra.mxu0 %v4125_v34  ;;  %1556 = vmatpush1.bf16.msra.mxu1 %v4130_v35 }
0x1aba   :  { %1718 = vmatprep.subr.bf16.mxu0 %v4041_v20  ;;  %1759 = vmatprep.subr.bf16.mxu1 %v4046_v21 }
0x1b7f   :  { %v1318_v61 = vpop.f32.mrb[16].mxu0  ;;  %v4161_v62 = vpop.f32.mrb[36].mxu1 }
0x1b80   :  { %v1427_v63 = vrot.slane %v1318_v61, 7  ;;  %v1320_v1 = vpop.f32.mrb[17].mxu0  ;;  %v4163_v2 = vpop.f32.mrb[37].mxu1 }
0x1b81   :  { %v1430_v4 = vadd.f32 %v1320_v1, %v4022_v49  ;;  %v1322_v5 = vpop.f32.mrb[18].mxu0  ;;  %v1363_v6 = vpop.f32.mrb[38].mxu1 }
0x1b82   :  { %v1429_v8 = vadd.f32 %v1427_v63, %v4020_v43  ;;  %v1323_v9 = vpop.f32.mrb[19].mxu0  ;;  %v1364_v10 = vpop.f32.mrb[39].mxu1 }
0x1b83   :  { %v1438_v12 = vadd.f32 %v1436_v3, %v1430_v4 }
0x1b84   :  { %v1434_v24 = vadd.f32 %v1432_v7, %v1429_v8 }
0x1b85   :  { %3382 = vtanh.f32 %v1438_v12  ;;  %v3067_v47 = vmul.f32 -1.442695, %v1438_v12 }
0x1b86   :  { %3384 = vtanh.f32 %v1434_v24  ;;  %v3066_v37 = vmul.f32 -1.442695, %v1434_v24 }
0x1b87   :  { %3386 = vpow2.f32 %v3067_v47 }
0x1b88   :  { %3388 = vpow2.f32 %v3066_v37 }
0x1b8f   :  { %v3383_v25 = vpop.eup %3382 }
0x1b90   :  { %v3385_v36 = vpop.eup %3384  ;;  %1472 = vrot.lane.b32.xlu0 %v3383_v25, %s3676_s13 }
0x1b91   :  { %1448 = vrot.lane.b32.xlu1 %v3385_v36, %s3676_s13  ;;  %v3387_v38 = vpop.eup %3386 }
0x1b92   :  { %v3389_v39 = vpop.eup %3388  ;;  %v1466_v40 = vadd.f32 1.0, %v3387_v38 }
0x1b93   :  { %v1442_v46 = vadd.f32 1.0, %v3389_v39 }
0x1b94   :  { %3390 = vrcp.f32 %v1466_v40 }
0x1b95   :  { %3392 = vrcp.f32 %v1442_v46 }
0x1b9e   :  { %v3391_v55 = vpop.eup %3390 }
0x1b9f   :  { %v3393_v57 = vpop.eup %3392  ;;  %v1470_v61 = vmul.f32 %v3391_v55, %v4034_v14 }
0x1ba0   :  { %v1446_v1 = vmul.f32 %v3393_v57, %v4032_v11 }
0x1c02   :  { %v1473_v56 = vpop.permute.xlu0 %1472 }
0x1c03   :  { %v1475_v58 = vmul.f32 %v3391_v55, %v1473_v56  ;;  %v1449_v59 = vpop.permute.xlu1 %1448 }
0x1c04   :  { %v1451_v60 = vmul.f32 %v3393_v57, %v1449_v59 }
0x1c05   :  { %1477 = vrot.lane.b32.xlu0 %v1475_v58, %s3687_s4  ;;  %v1646_v58 = vrot.slane %v3922_v52, 5 }
0x1c06   :  { %1453 = vrot.lane.b32.xlu1 %v1451_v60, %s3687_s4 }
0x1c77   :  { %v1478_v63 = vpop.permute.xlu0 %1477 }
0x1c78   :  { %v4175_v3 = vadd.f32 %v1478_v63, %v1470_v61  ;;  %v1454_v4 = vpop.permute.xlu1 %1453  ;;  %v1643_v63 = vrot.slane %v3908_v42, 3 }
0x1c79   :  { %v4177_v5 = vadd.f32 %v1454_v4, %v1446_v1 }
0x1c7a   :  { %3394 = vtanh.f32 %v4175_v3 }
0x1c7b   :  { %3396 = vtanh.f32 %v4177_v5 }
0x1c84   :  { %v3395_v6 = vpop.eup %3394 }
0x1c85   :  { %v3397_v7 = vpop.eup %3396  ;;  %1483 = vrot.lane.b32.xlu0 %v3395_v6, %s3676_s13 }
0x1c86   :  { %1459 = vrot.lane.b32.xlu1 %v3397_v7, %s3676_s13 }
0x1cf7   :  { %v1484_v8 = vpop.permute.xlu0 %1483 }
0x1cf8   :  { %v1486_v14 = vmul.f32 %v3391_v55, %v1484_v8  ;;  %v1460_v9 = vpop.permute.xlu1 %1459 }
0x1cf9   :  { %v1462_v10 = vmul.f32 %v3393_v57, %v1460_v9 }
0x1cfa   :  { %v1492_v11 = vrot.slane %v1486_v14, 7 }
0x1cfb   :  { %1488 = vrot.lane.b32.xlu0 %v1462_v10, %s3687_s4 }
0x1cfc   :  { %1493 = vrot.lane.b32.xlu1 %v1492_v11, %s3676_s13 }
0x1d6d   :  { %v1489_v12 = vpop.permute.xlu0 %1488 }
0x1d6e   :  { %v1494_v24 = vpop.permute.xlu1 %1493 }
0x1d6f   :  { %v1496_v25 = vsel %vm282_vm7, %v1489_v12, %v1494_v24 }
0x1d70   :  { %v1497_v36 = vpack.c.bf16 %v1496_v25, %v1496_v25 }
0x1d72   :  { %v1501_v47 = vshll.u32 %v1497_v36, 16  ;;  %v1499_v37 = vshrl.u32 %v1497_v36, 16 }
0x1d74   :  { %v1503_v38 = vrot.slane %v1501_v47, 1 }
0x1d76   :  { %v1504_v39 = vor.u32 %v1503_v38, %v1499_v37 }
0x1d78   :  { %3068 = vmatmul.mubr.msk.bf16.vlgmr.msra.gmra.mrb[20].mxu0 %vm1280_vm8, %v1504_v39  ;;  %3069 = vmatmul.mubr.msk.bf16.vlgmr.msra.gmra.mrb[40].mxu1 %vm1280_vm8, %v1504_v39 }
0x1d79   :  { %1719 = vmatpush1.bf16.msra.mxu0 %v4051_v22  ;;  %1760 = vmatpush1.bf16.msra.mxu1 %v4056_v23 }
0x1d7a   :  { %1720 = vmatprep.subr.bf16.mxu0 %v4067_v28  ;;  %1761 = vmatprep.subr.bf16.mxu1 %v4072_v26 }
0x1d7b   :  { %1750 = vmatprep.mubr.bf16.mxu0 %v3683_v0  ;;  %1791 = vmatprep.mubr.bf16.mxu1 %v3683_v0 }
0x1d7d   :  { %1721 = vmatpush1.bf16.msra.mxu0 %v4077_v29  ;;  %1762 = vmatpush1.bf16.msra.mxu1 %v4082_v30 }
0x1d7e   :  { %1722 = vmatprep.subr.bf16.mxu0 %v4091_v41  ;;  %1763 = vmatprep.subr.bf16.mxu1 %v4096_v31 }
0x1d81   :  { %1723 = vmatpush1.bf16.msra.mxu0 %v4101_v32  ;;  %1764 = vmatpush1.bf16.msra.mxu1 %v4106_v27 }
0x1d82   :  { %1724 = vmatprep.subr.bf16.mxu0 %v4115_v33  ;;  %1765 = vmatprep.subr.bf16.mxu1 %v4120_v44 }
0x1d85   :  { %1725 = vmatpush1.bf16.msra.mxu0 %v4125_v34  ;;  %1766 = vmatpush1.bf16.msra.mxu1 %v4130_v35 }
0x1d86   :  { %1935 = vmatprep.subr.bf16.mxu0 %v4041_v20  ;;  %1976 = vmatprep.subr.bf16.mxu1 %v4046_v21 }
0x1e4b   :  { %v1542_v40 = vpop.f32.mrb[20].mxu0  ;;  %v4206_v46 = vpop.f32.mrb[40].mxu1 }
0x1e4c   :  { %v1639_v55 = vrot.slane %v1542_v40, 7  ;;  %v1544_v56 = vpop.f32.mrb[21].mxu0  ;;  %v4208_v57 = vpop.f32.mrb[41].mxu1 }
0x1e4d   :  { %v1642_v59 = vadd.f32 %v1544_v56, %v4022_v49  ;;  %v1546_v60 = vpop.f32.mrb[22].mxu0  ;;  %v1587_v61 = vpop.f32.mrb[42].mxu1 }
0x1e4e   :  { %v1641_v1 = vadd.f32 %v1639_v55, %v4020_v43  ;;  %v1547_v4 = vpop.f32.mrb[23].mxu0  ;;  %v1588_v6 = vpop.f32.mrb[43].mxu1 }
0x1e4f   :  { %v1648_v7 = vadd.f32 %v1646_v58, %v1642_v59 }
0x1e50   :  { %v1645_v8 = vadd.f32 %v1643_v63, %v1641_v1 }
0x1e51   :  { %3398 = vtanh.f32 %v1648_v7  ;;  %v3071_v52 = vmul.f32 -1.442695, %v1648_v7 }
0x1e52   :  { %3400 = vtanh.f32 %v1645_v8  ;;  %v3070_v10 = vmul.f32 -1.442695, %v1645_v8 }
0x1e53   :  { %3402 = vpow2.f32 %v3071_v52 }
0x1e54   :  { %3404 = vpow2.f32 %v3070_v10 }
0x1e5b   :  { %v3399_v14 = vpop.eup %3398 }
0x1e5c   :  { %v3401_v9 = vpop.eup %3400  ;;  %1682 = vrot.lane.b32.xlu0 %v3399_v14, %s3676_s13 }
0x1e5d   :  { %1658 = vrot.lane.b32.xlu1 %v3401_v9, %s3676_s13  ;;  %v3403_v11 = vpop.eup %3402 }
0x1e5e   :  { %v3405_v42 = vpop.eup %3404  ;;  %v1676_v12 = vadd.f32 1.0, %v3403_v11 }
0x1e5f   :  { %v1652_v24 = vadd.f32 1.0, %v3405_v42 }
0x1e60   :  { %3406 = vrcp.f32 %v1676_v12 }
0x1e61   :  { %3408 = vrcp.f32 %v1652_v24 }
0x1e6a   :  { %v3407_v25 = vpop.eup %3406 }
0x1e6b   :  { %v3409_v47 = vpop.eup %3408  ;;  %v1680_v40 = vmul.f32 %v3407_v25, %v4175_v3 }
0x1e6c   :  { %v1656_v56 = vmul.f32 %v3409_v47, %v4177_v5 }
0x1ece   :  { %v1683_v36 = vpop.permute.xlu0 %1682 }
0x1ecf   :  { %v1685_v37 = vmul.f32 %v3407_v25, %v1683_v36  ;;  %v1659_v38 = vpop.permute.xlu1 %1658 }
0x1ed0   :  { %v1661_v39 = vmul.f32 %v3409_v47, %v1659_v38 }
0x1ed1   :  { %1687 = vrot.lane.b32.xlu0 %v1685_v37, %s3687_s4  ;;  %v1863_v37 = vrot.slane %v3926_v54, 1 }
0x1ed2   :  { %1663 = vrot.lane.b32.xlu1 %v1661_v39, %s3687_s4 }
0x1f43   :  { %v1688_v55 = vpop.permute.xlu0 %1687 }
0x1f44   :  { %v4220_v58 = vadd.f32 %v1688_v55, %v1680_v40  ;;  %v1664_v59 = vpop.permute.xlu1 %1663  ;;  %v1859_v55 = vrot.slane %v3912_v45, 7 }
0x1f45   :  { %v4222_v60 = vadd.f32 %v1664_v59, %v1656_v56 }
0x1f46   :  { %3410 = vtanh.f32 %v4220_v58 }
0x1f47   :  { %3412 = vtanh.f32 %v4222_v60 }
0x1f50   :  { %v3411_v61 = vpop.eup %3410 }
0x1f51   :  { %v3413_v63 = vpop.eup %3412  ;;  %1693 = vrot.lane.b32.xlu0 %v3411_v61, %s3676_s13 }
0x1f52   :  { %1669 = vrot.lane.b32.xlu1 %v3413_v63, %s3676_s13 }
0x1fc3   :  { %v1694_v1 = vpop.permute.xlu0 %1693 }
0x1fc4   :  { %v1696_v3 = vmul.f32 %v3407_v25, %v1694_v1  ;;  %v1670_v4 = vpop.permute.xlu1 %1669 }
0x1fc5   :  { %v1672_v6 = vmul.f32 %v3409_v47, %v1670_v4 }
0x1fc6   :  { %v1702_v5 = vrot.slane %v1696_v3, 7 }
0x1fc7   :  { %1698 = vrot.lane.b32.xlu0 %v1672_v6, %s3687_s4 }
0x1fc8   :  { %1703 = vrot.lane.b32.xlu1 %v1702_v5, %s3676_s13 }
0x2039   :  { %v1699_v7 = vpop.permute.xlu0 %1698 }
0x203a   :  { %v1704_v8 = vpop.permute.xlu1 %1703 }
0x203b   :  { %v1706_v14 = vsel %vm282_vm7, %v1699_v7, %v1704_v8 }
0x203c   :  { %v1707_v9 = vpack.c.bf16 %v1706_v14, %v1706_v14 }
0x203e   :  { %v1711_v52 = vshll.u32 %v1707_v9, 16  ;;  %v1709_v10 = vshrl.u32 %v1707_v9, 16 }
0x2040   :  { %v1713_v11 = vrot.slane %v1711_v52, 1 }
0x2042   :  { %v1714_v42 = vor.u32 %v1713_v11, %v1709_v10 }
0x2044   :  { %3072 = vmatmul.mubr.msk.bf16.vlgmr.msra.gmra.mrb[24].mxu0 %vm1280_vm8, %v1714_v42  ;;  %3073 = vmatmul.mubr.msk.bf16.vlgmr.msra.gmra.mrb[44].mxu1 %vm1280_vm8, %v1714_v42 }
0x2045   :  { %1936 = vmatpush1.bf16.msra.mxu0 %v4051_v22  ;;  %1977 = vmatpush1.bf16.msra.mxu1 %v4056_v23 }
0x2046   :  { %1937 = vmatprep.subr.bf16.mxu0 %v4067_v28  ;;  %1978 = vmatprep.subr.bf16.mxu1 %v4072_v26 }
0x2047   :  { %1967 = vmatprep.mubr.bf16.mxu0 %v3683_v0  ;;  %2008 = vmatprep.mubr.bf16.mxu1 %v3683_v0 }
0x2049   :  { %1938 = vmatpush1.bf16.msra.mxu0 %v4077_v29  ;;  %1979 = vmatpush1.bf16.msra.mxu1 %v4082_v30 }
0x204a   :  { %1939 = vmatprep.subr.bf16.mxu0 %v4091_v41  ;;  %1980 = vmatprep.subr.bf16.mxu1 %v4096_v31 }
0x204d   :  { %1940 = vmatpush1.bf16.msra.mxu0 %v4101_v32  ;;  %1981 = vmatpush1.bf16.msra.mxu1 %v4106_v27 }
0x204e   :  { %1941 = vmatprep.subr.bf16.mxu0 %v4115_v33  ;;  %1982 = vmatprep.subr.bf16.mxu1 %v4120_v44 }
0x2051   :  { %1942 = vmatpush1.bf16.msra.mxu0 %v4125_v34  ;;  %1983 = vmatpush1.bf16.msra.mxu1 %v4130_v35 }
0x2052   :  { %2145 = vmatprep.subr.bf16.mxu0 %v4041_v20  ;;  %2186 = vmatprep.subr.bf16.mxu1 %v4046_v21 }
0x2117   :  { %v1752_v12 = vpop.f32.mrb[24].mxu0  ;;  %v4251_v24 = vpop.f32.mrb[44].mxu1 }
0x2118   :  { %v1854_v25 = vrot.slane %v1752_v12, 7  ;;  %v1754_v36 = vpop.f32.mrb[25].mxu0  ;;  %v4253_v47 = vpop.f32.mrb[45].mxu1 }
0x2119   :  { %v1857_v38 = vadd.f32 %v1754_v36, %v4022_v49  ;;  %v1756_v39 = vpop.f32.mrb[26].mxu0  ;;  %v1797_v40 = vpop.f32.mrb[46].mxu1 }
0x211a   :  { %v1856_v56 = vadd.f32 %v1854_v25, %v4020_v43  ;;  %v1757_v59 = vpop.f32.mrb[27].mxu0  ;;  %v1798_v61 = vpop.f32.mrb[47].mxu1 }
0x211b   :  { %v1865_v63 = vadd.f32 %v1863_v37, %v1857_v38 }
0x211c   :  { %v1861_v1 = vadd.f32 %v1859_v55, %v1856_v56 }
0x211d   :  { %3414 = vtanh.f32 %v1865_v63  ;;  %v3076_v6 = vmul.f32 -1.442695, %v1865_v63 }
0x211e   :  { %3416 = vtanh.f32 %v1861_v1  ;;  %v3075_v5 = vmul.f32 -1.442695, %v1861_v1 }
0x211f   :  { %3418 = vpow2.f32 %v3076_v6 }
0x2120   :  { %3420 = vpow2.f32 %v3075_v5 }
0x2127   :  { %v3415_v3 = vpop.eup %3414 }
0x2128   :  { %v3417_v4 = vpop.eup %3416  ;;  %1899 = vrot.lane.b32.xlu0 %v3415_v3, %s3676_s13 }
0x2129   :  { %1875 = vrot.lane.b32.xlu1 %v3417_v4, %s3676_s13  ;;  %v3419_v7 = vpop.eup %3418 }
0x212a   :  { %v3421_v8 = vpop.eup %3420  ;;  %v1893_v14 = vadd.f32 1.0, %v3419_v7 }
0x212b   :  { %v1869_v9 = vadd.f32 1.0, %v3421_v8 }
0x212c   :  { %3422 = vrcp.f32 %v1893_v14 }
0x212d   :  { %3424 = vrcp.f32 %v1869_v9 }
0x2136   :  { %v3423_v52 = vpop.eup %3422 }
0x2137   :  { %v3425_v11 = vpop.eup %3424  ;;  %v1897_v36 = vmul.f32 %v3423_v52, %v4220_v58 }
0x2138   :  { %v1873_v38 = vmul.f32 %v3425_v11, %v4222_v60 }
0x219a   :  { %v1900_v10 = vpop.permute.xlu0 %1899 }
0x219b   :  { %v1902_v42 = vmul.f32 %v3423_v52, %v1900_v10  ;;  %v1876_v12 = vpop.permute.xlu1 %1875 }
0x219c   :  { %v1878_v25 = vmul.f32 %v3425_v11, %v1876_v12 }
0x219d   :  { %1904 = vrot.lane.b32.xlu0 %v1902_v42, %s3687_s4 }
0x219e   :  { %1880 = vrot.lane.b32.xlu1 %v1878_v25, %s3687_s4  ;;  %v2073_v25 = vrot.slane %v3926_v54, 5 }
0x220f   :  { %v1905_v37 = vpop.permute.xlu0 %1904 }
0x2210   :  { %v4265_v39 = vadd.f32 %v1905_v37, %v1897_v36  ;;  %v1881_v40 = vpop.permute.xlu1 %1880 }
0x2211   :  { %v4267_v55 = vadd.f32 %v1881_v40, %v1873_v38  ;;  %v2070_v40 = vrot.slane %v3912_v45, 3 }
0x2212   :  { %3426 = vtanh.f32 %v4265_v39 }
0x2213   :  { %3428 = vtanh.f32 %v4267_v55 }
0x221c   :  { %v3427_v56 = vpop.eup %3426 }
0x221d   :  { %v3429_v59 = vpop.eup %3428  ;;  %1910 = vrot.lane.b32.xlu0 %v3427_v56, %s3676_s13 }
0x221e   :  { %1886 = vrot.lane.b32.xlu1 %v3429_v59, %s3676_s13 }
0x228f   :  { %v1911_v61 = vpop.permute.xlu0 %1910 }
0x2290   :  { %v1913_v58 = vmul.f32 %v3423_v52, %v1911_v61  ;;  %v1887_v63 = vpop.permute.xlu1 %1886 }
0x2291   :  { %v1889_v1 = vmul.f32 %v3425_v11, %v1887_v63 }
0x2292   :  { %v1919_v60 = vrot.slane %v1913_v58, 7 }
0x2293   :  { %1915 = vrot.lane.b32.xlu0 %v1889_v1, %s3687_s4 }
0x2294   :  { %1920 = vrot.lane.b32.xlu1 %v1919_v60, %s3676_s13 }
0x2305   :  { %v1916_v3 = vpop.permute.xlu0 %1915 }
0x2306   :  { %v1921_v4 = vpop.permute.xlu1 %1920 }
0x2307   :  { %v1923_v6 = vsel %vm282_vm7, %v1916_v3, %v1921_v4 }
0x2308   :  { %v1924_v5 = vpack.c.bf16 %v1923_v6, %v1923_v6 }
0x230a   :  { %v1928_v7 = vshll.u32 %v1924_v5, 16  ;;  %v1926_v8 = vshrl.u32 %v1924_v5, 16 }
0x230c   :  { %v1930_v14 = vrot.slane %v1928_v7, 1 }
0x230e   :  { %v1931_v9 = vor.u32 %v1930_v14, %v1926_v8 }
0x2310   :  { %3077 = vmatmul.mubr.msk.bf16.vlgmr.msra.gmra.mrb[28].mxu0 %vm1280_vm8, %v1931_v9  ;;  %3078 = vmatmul.mubr.msk.bf16.vlgmr.msra.gmra.mrb[48].mxu1 %vm1280_vm8, %v1931_v9 }
0x2311   :  { %2146 = vmatpush1.bf16.msra.mxu0 %v4051_v22  ;;  %2187 = vmatpush1.bf16.msra.mxu1 %v4056_v23 }
0x2312   :  { %2147 = vmatprep.subr.bf16.mxu0 %v4067_v28  ;;  %2188 = vmatprep.subr.bf16.mxu1 %v4072_v26 }
0x2313   :  { %2177 = vmatprep.mubr.bf16.mxu0 %v3683_v0  ;;  %2218 = vmatprep.mubr.bf16.mxu1 %v3683_v0 }
0x2315   :  { %2148 = vmatpush1.bf16.msra.mxu0 %v4077_v29  ;;  %2189 = vmatpush1.bf16.msra.mxu1 %v4082_v30 }
0x2316   :  { %2149 = vmatprep.subr.bf16.mxu0 %v4091_v41  ;;  %2190 = vmatprep.subr.bf16.mxu1 %v4096_v31 }
0x2319   :  { %2150 = vmatpush1.bf16.msra.mxu0 %v4101_v32  ;;  %2191 = vmatpush1.bf16.msra.mxu1 %v4106_v27 }
0x231a   :  { %2151 = vmatprep.subr.bf16.mxu0 %v4115_v33  ;;  %2192 = vmatprep.subr.bf16.mxu1 %v4120_v44 }
0x231d   :  { %2152 = vmatpush1.bf16.msra.mxu0 %v4125_v34  ;;  %2193 = vmatpush1.bf16.msra.mxu1 %v4130_v35 }
0x231e   :  { %2362 = vmatprep.subr.bf16.mxu0 %v4041_v20  ;;  %2403 = vmatprep.subr.bf16.mxu1 %v4046_v21 }
0x23e3   :  { %v1969_v52 = vpop.f32.mrb[28].mxu0  ;;  %v4296_v10 = vpop.f32.mrb[48].mxu1 }
0x23e4   :  { %v2066_v11 = vrot.slane %v1969_v52, 7  ;;  %v1971_v42 = vpop.f32.mrb[29].mxu0  ;;  %v4298_v12 = vpop.f32.mrb[49].mxu1 }
0x23e5   :  { %v2069_v36 = vadd.f32 %v1971_v42, %v4022_v49  ;;  %v1973_v37 = vpop.f32.mrb[30].mxu0  ;;  %v2014_v38 = vpop.f32.mrb[50].mxu1 }
0x23e6   :  { %v2068_v56 = vadd.f32 %v2066_v11, %v4020_v43  ;;  %v1974_v59 = vpop.f32.mrb[31].mxu0  ;;  %v2015_v61 = vpop.f32.mrb[51].mxu1 }
0x23e7   :  { %v2075_v58 = vadd.f32 %v2073_v25, %v2069_v36 }
0x23e8   :  { %v2072_v63 = vadd.f32 %v2070_v40, %v2068_v56 }
0x23e9   :  { %3430 = vtanh.f32 %v2075_v58  ;;  %v3080_v54 = vmul.f32 -1.442695, %v2075_v58 }
0x23ea   :  { %3432 = vtanh.f32 %v2072_v63  ;;  %v3079_v3 = vmul.f32 -1.442695, %v2072_v63 }
0x23eb   :  { %3434 = vpow2.f32 %v3080_v54 }
0x23ec   :  { %3436 = vpow2.f32 %v3079_v3 }
0x23f3   :  { %v3431_v1 = vpop.eup %3430 }
0x23f4   :  { %v3433_v60 = vpop.eup %3432  ;;  %2109 = vrot.lane.b32.xlu0 %v3431_v1, %s3676_s13 }
0x23f5   :  { %2085 = vrot.lane.b32.xlu1 %v3433_v60, %s3676_s13  ;;  %v3435_v4 = vpop.eup %3434 }
0x23f6   :  { %v3437_v45 = vpop.eup %3436  ;;  %v2103_v6 = vadd.f32 1.0, %v3435_v4 }
0x23f7   :  { %v2079_v5 = vadd.f32 1.0, %v3437_v45 }
0x23f8   :  { %3438 = vrcp.f32 %v2103_v6 }
0x23f9   :  { %3440 = vrcp.f32 %v2079_v5 }
0x2402   :  { %v3439_v7 = vpop.eup %3438 }
0x2403   :  { %v3441_v14 = vpop.eup %3440  ;;  %v2107_v42 = vmul.f32 %v3439_v7, %v4265_v39 }
0x2404   :  { %v2083_v36 = vmul.f32 %v3441_v14, %v4267_v55 }
0x2466   :  { %v2110_v8 = vpop.permute.xlu0 %2109 }
0x2467   :  { %v2112_v9 = vmul.f32 %v3439_v7, %v2110_v8  ;;  %v2086_v52 = vpop.permute.xlu1 %2085 }
0x2468   :  { %v2088_v11 = vmul.f32 %v3441_v14, %v2086_v52 }
0x2469   :  { %2114 = vrot.lane.b32.xlu0 %v2112_v9, %s3687_s4 }
0x246a   :  { %2090 = vrot.lane.b32.xlu1 %v2088_v11, %s3687_s4  ;;  %v2290_v11 = vrot.slane %v3920_v51, 1 }
0x24db   :  { %v2115_v25 = vpop.permute.xlu0 %2114 }
0x24dc   :  { %v4310_v37 = vadd.f32 %v2115_v25, %v2107_v42  ;;  %v2091_v38 = vpop.permute.xlu1 %2090 }
0x24dd   :  { %v4312_v40 = vadd.f32 %v2091_v38, %v2083_v36  ;;  %v2286_v38 = vrot.slane %v3916_v48, 7 }
0x24de   :  { %3442 = vtanh.f32 %v4310_v37 }
0x24df   :  { %3444 = vtanh.f32 %v4312_v40 }
0x24e8   :  { %v3443_v56 = vpop.eup %3442 }
0x24e9   :  { %v3445_v59 = vpop.eup %3444  ;;  %2120 = vrot.lane.b32.xlu0 %v3443_v56, %s3676_s13 }
0x24ea   :  { %2096 = vrot.lane.b32.xlu1 %v3445_v59, %s3676_s13 }
0x255b   :  { %v2121_v61 = vpop.permute.xlu0 %2120 }
0x255c   :  { %v2123_v39 = vmul.f32 %v3439_v7, %v2121_v61  ;;  %v2097_v58 = vpop.permute.xlu1 %2096 }
0x255d   :  { %v2099_v63 = vmul.f32 %v3441_v14, %v2097_v58 }
0x255e   :  { %v2129_v55 = vrot.slane %v2123_v39, 7 }
0x255f   :  { %2125 = vrot.lane.b32.xlu0 %v2099_v63, %s3687_s4 }
0x2560   :  { %2130 = vrot.lane.b32.xlu1 %v2129_v55, %s3676_s13 }
0x25d1   :  { %v2126_v1 = vpop.permute.xlu0 %2125 }
0x25d2   :  { %v2131_v60 = vpop.permute.xlu1 %2130 }
0x25d3   :  { %v2133_v54 = vsel %vm282_vm7, %v2126_v1, %v2131_v60 }
0x25d4   :  { %v2134_v3 = vpack.c.bf16 %v2133_v54, %v2133_v54 }
0x25d6   :  { %v2138_v4 = vshll.u32 %v2134_v3, 16  ;;  %v2136_v45 = vshrl.u32 %v2134_v3, 16 }
0x25d8   :  { %v2140_v6 = vrot.slane %v2138_v4, 1 }
0x25da   :  { %v2141_v5 = vor.u32 %v2140_v6, %v2136_v45 }
0x25dc   :  { %3081 = vmatmul.mubr.msk.bf16.vlgmr.msra.gmra.mrb[32].mxu0 %vm1280_vm8, %v2141_v5  ;;  %3082 = vmatmul.mubr.msk.bf16.vlgmr.msra.gmra.mrb[52].mxu1 %vm1280_vm8, %v2141_v5 }
0x25dd   :  { %2363 = vmatpush1.bf16.msra.mxu0 %v4051_v22  ;;  %2404 = vmatpush1.bf16.msra.mxu1 %v4056_v23 }
0x25de   :  { %2364 = vmatprep.subr.bf16.mxu0 %v4067_v28  ;;  %2405 = vmatprep.subr.bf16.mxu1 %v4072_v26 }
0x25df   :  { %2394 = vmatprep.mubr.bf16.mxu0 %v3683_v0  ;;  %2435 = vmatprep.mubr.bf16.mxu1 %v3683_v0 }
0x25e1   :  { %2365 = vmatpush1.bf16.msra.mxu0 %v4077_v29  ;;  %2406 = vmatpush1.bf16.msra.mxu1 %v4082_v30 }
0x25e2   :  { %2366 = vmatprep.subr.bf16.mxu0 %v4091_v41  ;;  %2407 = vmatprep.subr.bf16.mxu1 %v4096_v31 }
0x25e5   :  { %2367 = vmatpush1.bf16.msra.mxu0 %v4101_v32  ;;  %2408 = vmatpush1.bf16.msra.mxu1 %v4106_v27 }
0x25e6   :  { %2368 = vmatprep.subr.bf16.mxu0 %v4115_v33  ;;  %2409 = vmatprep.subr.bf16.mxu1 %v4120_v44 }
0x25e9   :  { %2369 = vmatpush1.bf16.msra.mxu0 %v4125_v34  ;;  %2410 = vmatpush1.bf16.msra.mxu1 %v4130_v35 }
0x25ea   :  { %2572 = vmatprep.subr.bf16.mxu0 %v4041_v20  ;;  %2613 = vmatprep.subr.bf16.mxu1 %v4046_v21 }
0x26af   :  { %v2179_v7 = vpop.f32.mrb[32].mxu0  ;;  %v4341_v8 = vpop.f32.mrb[52].mxu1 }
0x26b0   :  { %v2281_v14 = vrot.slane %v2179_v7, 7  ;;  %v2181_v9 = vpop.f32.mrb[33].mxu0  ;;  %v4343_v52 = vpop.f32.mrb[53].mxu1 }
0x26b1   :  { %v2284_v42 = vadd.f32 %v2181_v9, %v4022_v49  ;;  %v2183_v25 = vpop.f32.mrb[34].mxu0  ;;  %v2224_v36 = vpop.f32.mrb[54].mxu1 }
0x26b2   :  { %v2283_v56 = vadd.f32 %v2281_v14, %v4020_v43  ;;  %v2184_v20 = vpop.f32.mrb[35].mxu0  ;;  %v2225_v59 = vpop.f32.mrb[55].mxu1 }
0x26b3   :  { %v2292_v61 = vadd.f32 %v2290_v11, %v2284_v42 }
0x26b4   :  { %v2288_v39 = vadd.f32 %v2286_v38, %v2283_v56 }
0x26b5   :  { %3446 = vtanh.f32 %v2292_v61  ;;  %v3085_v55 = vmul.f32 -1.442695, %v2292_v61 }
0x26b6   :  { %3448 = vtanh.f32 %v2288_v39  ;;  %v3084_v1 = vmul.f32 -1.442695, %v2288_v39 }
0x26b7   :  { %3450 = vpow2.f32 %v3085_v55 }
0x26b8   :  { %3452 = vpow2.f32 %v3084_v1 }
0x26bf   :  { %v3447_v58 = vpop.eup %3446 }
0x26c0   :  { %v3449_v63 = vpop.eup %3448  ;;  %2326 = vrot.lane.b32.xlu0 %v3447_v58, %s3676_s13 }
0x26c1   :  { %2302 = vrot.lane.b32.xlu1 %v3449_v63, %s3676_s13  ;;  %v3451_v60 = vpop.eup %3450 }
0x26c2   :  { %v3453_v54 = vpop.eup %3452  ;;  %v2320_v3 = vadd.f32 1.0, %v3451_v60 }
0x26c3   :  { %v2296_v4 = vadd.f32 1.0, %v3453_v54 }
0x26c4   :  { %3454 = vrcp.f32 %v2320_v3 }
0x26c5   :  { %3456 = vrcp.f32 %v2296_v4 }
0x26ce   :  { %v3455_v45 = vpop.eup %3454 }
0x26cf   :  { %v3457_v5 = vpop.eup %3456  ;;  %v2324_v11 = vmul.f32 %v3455_v45, %v4310_v37 }
0x26d0   :  { %v2300_v25 = vmul.f32 %v3457_v5, %v4312_v40 }
0x2732   :  { %v2327_v6 = vpop.permute.xlu0 %2326 }
0x2733   :  { %v2329_v7 = vmul.f32 %v3455_v45, %v2327_v6  ;;  %v2303_v14 = vpop.permute.xlu1 %2302 }
0x2734   :  { %v2305_v9 = vmul.f32 %v3457_v5, %v2303_v14 }
0x2735   :  { %2331 = vrot.lane.b32.xlu0 %v2329_v7, %s3687_s4 }
0x2736   :  { %2307 = vrot.lane.b32.xlu1 %v2305_v9, %s3687_s4 }
0x27a7   :  { %v2332_v42 = vpop.permute.xlu0 %2331 }
0x27a8   :  { %v4355_v36 = vadd.f32 %v2332_v42, %v2324_v11  ;;  %v2308_v38 = vpop.permute.xlu1 %2307 }
0x27a9   :  { %v4357_v56 = vadd.f32 %v2308_v38, %v2300_v25 }
0x27aa   :  { %3458 = vtanh.f32 %v4355_v36 }
0x27ab   :  { %3460 = vtanh.f32 %v4357_v56 }
0x27b4   :  { %v3459_v20 = vpop.eup %3458 }
0x27b5   :  { %v3461_v59 = vpop.eup %3460  ;;  %2337 = vrot.lane.b32.xlu0 %v3459_v20, %s3676_s13 }
0x27b6   :  { %2313 = vrot.lane.b32.xlu1 %v3461_v59, %s3676_s13 }
0x2827   :  { %v2338_v61 = vpop.permute.xlu0 %2337 }
0x2828   :  { %v2340_v37 = vmul.f32 %v3455_v45, %v2338_v61  ;;  %v2314_v39 = vpop.permute.xlu1 %2313 }
0x2829   :  { %v2316_v58 = vmul.f32 %v3457_v5, %v2314_v39 }
0x282a   :  { %v2346_v40 = vrot.slane %v2340_v37, 7 }
0x282b   :  { %2342 = vrot.lane.b32.xlu0 %v2316_v58, %s3687_s4 }
0x282c   :  { %2347 = vrot.lane.b32.xlu1 %v2346_v40, %s3676_s13 }
0x289d   :  { %v2343_v63 = vpop.permute.xlu0 %2342 }
0x289e   :  { %v2348_v55 = vpop.permute.xlu1 %2347 }
0x289f   :  { %v2350_v1 = vsel %vm282_vm7, %v2343_v63, %v2348_v55 }
0x28a0   :  { %v2351_v60 = vpack.c.bf16 %v2350_v1, %v2350_v1 }
0x28a2   :  { %v2355_v54 = vshll.u32 %v2351_v60, 16  ;;  %v2353_v3 = vshrl.u32 %v2351_v60, 16 }
0x28a4   :  { %v2357_v4 = vrot.slane %v2355_v54, 1 }
0x28a6   :  { %v2358_v6 = vor.u32 %v2357_v4, %v2353_v3 }
0x28a8   :  { %3086 = vmatmul.mubr.msk.bf16.vlgmr.msra.gmra.mrb[36].mxu0 %vm1280_vm8, %v2358_v6  ;;  %3087 = vmatmul.mubr.msk.bf16.vlgmr.msra.gmra.mrb[56].mxu1 %vm1280_vm8, %v2358_v6 }
0x28a9   :  { %2573 = vmatpush1.bf16.msra.mxu0 %v4051_v22  ;;  %2614 = vmatpush1.bf16.msra.mxu1 %v4056_v23 }
0x28aa   :  { %2574 = vmatprep.subr.bf16.mxu0 %v4067_v28  ;;  %2615 = vmatprep.subr.bf16.mxu1 %v4072_v26 }
0x28ab   :  { %2604 = vmatprep.mubr.bf16.mxu0 %v3683_v0  ;;  %2645 = vmatprep.mubr.bf16.mxu1 %v3683_v0 }
0x28ad   :  { %2575 = vmatpush1.bf16.msra.mxu0 %v4077_v29  ;;  %2616 = vmatpush1.bf16.msra.mxu1 %v4082_v30  ;;  %v2500_v30 = vrot.slane %v3920_v51, 5 }
0x28ae   :  { %2576 = vmatprep.subr.bf16.mxu0 %v4091_v41  ;;  %2617 = vmatprep.subr.bf16.mxu1 %v4096_v31 }
0x28b1   :  { %2577 = vmatpush1.bf16.msra.mxu0 %v4101_v32  ;;  %2618 = vmatpush1.bf16.msra.mxu1 %v4106_v27  ;;  %v2497_v27 = vrot.slane %v3916_v48, 3 }
0x28b2   :  { %2578 = vmatprep.subr.bf16.mxu0 %v4115_v33  ;;  %2619 = vmatprep.subr.bf16.mxu1 %v4120_v44 }
0x28b5   :  { %2579 = vmatpush1.bf16.msra.mxu0 %v4125_v34  ;;  %2620 = vmatpush1.bf16.msra.mxu1 %v4130_v35 }
0x28b6   :  { %2789 = vmatprep.subr.bf16.mxu0 %v4046_v21 }
0x297b   :  { %v2396_v22 = vpop.f32.mrb[36].mxu0  ;;  %v4385_v23 = vpop.f32.mrb[56].mxu1 }
0x297c   :  { %v2493_v28 = vrot.slane %v2396_v22, 7  ;;  %v2398_v26 = vpop.f32.mrb[37].mxu0  ;;  %v4387_v29 = vpop.f32.mrb[57].mxu1 }
0x297d   :  { %v2496_v41 = vadd.f32 %v2398_v26, %v4022_v49  ;;  %v2400_v31 = vpop.f32.mrb[38].mxu0  ;;  %v2441_v32 = vpop.f32.mrb[58].mxu1 }
0x297e   :  { %v2495_v33 = vadd.f32 %v2493_v28, %v4020_v43  ;;  %v2401_v44 = vpop.f32.mrb[39].mxu0  ;;  %v2442_v34 = vpop.f32.mrb[59].mxu1 }
0x297f   :  { %v2502_v21 = vadd.f32 %v2500_v30, %v2496_v41  ;;  %v3560_v44 = vld [vmem:[%s4826_s8 + $0x28] ss:$16 sps:$4 sm:$0xff]   ;;  %v3561_v34 = vld [vmem:[%s4826_s8 + $0x4c] ss:$16 sps:$4 sm:$0xff]  }
0x2980   :  { %v2499_v35 = vadd.f32 %v2497_v27, %v2495_v33  ;;  %v3558_v27 = vld [vmem:[%s4826_s8 + $0x8] ss:$16 sps:$4 sm:$0xff]   ;;  %v3559_v33 = vld [vmem:[%s4826_s8 + $0x2c] ss:$16 sps:$4 sm:$0xff]  }
0x2981   :  { %3462 = vtanh.f32 %v2502_v21  ;;  %v3089_v51 = vmul.f32 -1.442695, %v2502_v21  ;;  %v3562_v21 = vld [vmem:[%s4826_s8 + $0x48] ss:$16 sps:$4 sm:$0xff]  }
0x2982   :  { %3464 = vtanh.f32 %v2499_v35  ;;  %v3088_v7 = vmul.f32 -1.442695, %v2499_v35  ;;  %v3564_v35 = vld [vmem:[%s4826_s8 + $0x68] ss:$16 sps:$4 sm:$0xff]  }
0x2983   :  { %3466 = vpow2.f32 %v3089_v51 }
0x2984   :  { %3468 = vpow2.f32 %v3088_v7 }
0x298b   :  { %v3463_v45 = vpop.eup %3462 }
0x298c   :  { %v3465_v5 = vpop.eup %3464  ;;  %2536 = vrot.lane.b32.xlu0 %v3463_v45, %s3676_s13 }
0x298d   :  { %2512 = vrot.lane.b32.xlu1 %v3465_v5, %s3676_s13  ;;  %v3467_v14 = vpop.eup %3466 }
0x298e   :  { %v3469_v48 = vpop.eup %3468  ;;  %v2530_v9 = vadd.f32 1.0, %v3467_v14 }
0x298f   :  { %v2506_v11 = vadd.f32 1.0, %v3469_v48  ;;  %v2717_v48 = vrot.slane %v3924_v53, 1 }
0x2990   :  { %3470 = vrcp.f32 %v2530_v9 }
0x2991   :  { %3472 = vrcp.f32 %v2506_v11 }
0x299a   :  { %v3471_v42 = vpop.eup %3470 }
0x299b   :  { %v3473_v38 = vpop.eup %3472  ;;  %v2534_v37 = vmul.f32 %v3471_v42, %v4355_v36 }
0x299c   :  { %v2510_v58 = vmul.f32 %v3473_v38, %v4357_v56 }
0x29fe   :  { %v2537_v25 = vpop.permute.xlu0 %2536 }
0x29ff   :  { %v2539_v20 = vmul.f32 %v3471_v42, %v2537_v25  ;;  %v2513_v59 = vpop.permute.xlu1 %2512  ;;  %v2713_v25 = vrot.slane %v3918_v50, 7 }
0x2a00   :  { %v2515_v61 = vmul.f32 %v3473_v38, %v2513_v59 }
0x2a01   :  { %2541 = vrot.lane.b32.xlu0 %v2539_v20, %s3687_s4 }
0x2a02   :  { %2517 = vrot.lane.b32.xlu1 %v2515_v61, %s3687_s4 }
0x2a73   :  { %v2542_v39 = vpop.permute.xlu0 %2541 }
0x2a74   :  { %v4399_v40 = vadd.f32 %v2542_v39, %v2534_v37  ;;  %v2518_v63 = vpop.permute.xlu1 %2517 }
0x2a75   :  { %v4401_v55 = vadd.f32 %v2518_v63, %v2510_v58 }
0x2a76   :  { %3474 = vtanh.f32 %v4399_v40 }
0x2a77   :  { %3476 = vtanh.f32 %v4401_v55 }
0x2a80   :  { %v3475_v1 = vpop.eup %3474 }
0x2a81   :  { %v3477_v60 = vpop.eup %3476  ;;  %2547 = vrot.lane.b32.xlu0 %v3475_v1, %s3676_s13 }
0x2a82   :  { %2523 = vrot.lane.b32.xlu1 %v3477_v60, %s3676_s13 }
0x2af3   :  { %v2548_v54 = vpop.permute.xlu0 %2547 }
0x2af4   :  { %v2550_v36 = vmul.f32 %v3471_v42, %v2548_v54  ;;  %v2524_v3 = vpop.permute.xlu1 %2523 }
0x2af5   :  { %v2526_v4 = vmul.f32 %v3473_v38, %v2524_v3 }
0x2af6   :  { %v2556_v56 = vrot.slane %v2550_v36, 7 }
0x2af7   :  { %2552 = vrot.lane.b32.xlu0 %v2526_v4, %s3687_s4 }
0x2af8   :  { %2557 = vrot.lane.b32.xlu1 %v2556_v56, %s3676_s13 }
0x2b69   :  { %v2553_v6 = vpop.permute.xlu0 %2552 }
0x2b6a   :  { %v2558_v22 = vpop.permute.xlu1 %2557 }
0x2b6b   :  { %v2560_v28 = vsel %vm282_vm7, %v2553_v6, %v2558_v22 }
0x2b6c   :  { %v2561_v26 = vpack.c.bf16 %v2560_v28, %v2560_v28 }
0x2b6e   :  { %v2565_v30 = vshll.u32 %v2561_v26, 16  ;;  %v2563_v41 = vshrl.u32 %v2561_v26, 16 }
0x2b70   :  { %v2567_v31 = vrot.slane %v2565_v30, 1 }
0x2b72   :  { %v2568_v32 = vor.u32 %v2567_v31, %v2563_v41 }
0x2b74   :  { %3090 = vmatmul.mubr.msk.bf16.vlgmr.msra.gmra.mrb[40].mxu0 %vm1280_vm8, %v2568_v32  ;;  %3091 = vmatmul.mubr.msk.bf16.vlgmr.msra.gmra.mrb[60].mxu1 %vm1280_vm8, %v2568_v32 }
0x2b75   :  { %2790 = vmatpush1.bf16.msra.mxu0 %v3558_v27  ;;  %2821 = vmatprep.mubr.bf16.mxu0 %v3683_v0  ;;  %v3563_v0 = vld [vmem:[%s4826_s8 + $0x6c] ss:$16 sps:$4 sm:$0xff]  }
0x2b76   :  { %2791 = vmatprep.subr.bf16.mxu0 %v3559_v33 }
0x2b79   :  { %2792 = vmatpush1.bf16.msra.mxu0 %v3560_v44 }
0x2b7a   :  { %2793 = vmatprep.subr.bf16.mxu0 %v3561_v34  ;;  %v3566_v34 = vld [vmem:[%s4818_s0 + $0x8] sm:$0xff] }
0x2b7b   :  { %vm1802_vm10 = vcmp.ne.s32.totalorder %v3566_v34, 2 }
0x2b7d   :  { %2794 = vmatpush1.bf16.msra.mxu0 %v3562_v21 }
0x2b7e   :  { %2795 = vmatprep.subr.bf16.mxu0 %v3563_v0 }
0x2b81   :  { %2796 = vmatpush1.bf16.msra.mxu0 %v3564_v35  ;;  %v3567_v35 = vld [vmem:[%s4818_s0 + $0x10] sm:$0xff] }
0x2b82   :  { %vm2229_vm11 = vcmp.ne.s32.totalorder %v3567_v35, 2 }
0x2c47   :  { %v2606_v45 = vpop.f32.mrb[40].mxu0  ;;  %v4434_v5 = vpop.f32.mrb[60].mxu1 }
0x2c48   :  { %v2708_v51 = vrot.slane %v2606_v45, 7  ;;  %v2608_v7 = vpop.f32.mrb[41].mxu0  ;;  %v4436_v14 = vpop.f32.mrb[61].mxu1  ;;  %v3074_v45 = vsel %vm1802_vm10, 1.0, %v3684_v13 }
0x2c49   :  { %v2711_v9 = vadd.f32 %v2608_v7, %v4022_v49  ;;  %v2610_v11 = vpop.f32.mrb[42].mxu0  ;;  %v2651_v42 = vpop.f32.mrb[62].mxu1  ;;  %v3083_v7 = vsel %vm2229_vm11, 1.0, %v3684_v13 }
0x2c4a   :  { %v2710_v38 = vadd.f32 %v2708_v51, %v4020_v43  ;;  %v2611_v20 = vpop.f32.mrb[43].mxu0  ;;  %v2652_v59 = vpop.f32.mrb[63].mxu1  ;;  %v3568_v51 = vld [vmem:[%s4818_s0 + $0x18] sm:$0xff] }
0x2c4b   :  { %v2719_v61 = vadd.f32 %v2717_v48, %v2711_v9  ;;  %vm2656_vm12 = vcmp.ne.s32.totalorder %v3568_v51, 2 }
0x2c4c   :  { %v2715_v37 = vadd.f32 %v2713_v25, %v2710_v38  ;;  %v3092_v48 = vsel %vm2656_vm12, 1.0, %v3684_v13 }
0x2c4d   :  { %3478 = vtanh.f32 %v2719_v61  ;;  %v3094_v53 = vmul.f32 -1.442695, %v2719_v61 }
0x2c4e   :  { %3480 = vtanh.f32 %v2715_v37  ;;  %v3093_v49 = vmul.f32 -1.442695, %v2715_v37  ;;  %v4470_v37 = vld [vmem:[#allocation8] ss:$0 sm:$0xff] }
0x2c4f   :  { %3482 = vpow2.f32 %v3094_v53 }
0x2c50   :  { %3484 = vpow2.f32 %v3093_v49  ;;  %v4482_v49 = vadd.f32 %v4470_v37, %v4206_v46  ;;  %v4497_v46 = vadd.f32 %v4470_v37, %v4251_v24 }
0x2c57   :  { %v3479_v39 = vpop.eup %3478 }
0x2c58   :  { %v3481_v58 = vpop.eup %3480  ;;  %2753 = vrot.lane.b32.xlu0 %v3479_v39, %s3676_s13  ;;  %v4474_v39 = vadd.f32 %v4470_v37, %v4161_v62 }
0x2c59   :  { %2729 = vrot.lane.b32.xlu1 %v3481_v58, %s3676_s13  ;;  %v3483_v63 = vpop.eup %3482  ;;  %v4478_v58 = vadd.f32 %v4470_v37, %v4163_v2 }
0x2c5a   :  { %v3485_v50 = vpop.eup %3484  ;;  %v2747_v1 = vadd.f32 1.0, %v3483_v63 }
0x2c5b   :  { %v2723_v43 = vadd.f32 1.0, %v3485_v50 }
0x2c5c   :  { %3486 = vrcp.f32 %v2747_v1 }
0x2c5d   :  { %3488 = vrcp.f32 %v2723_v43 }
0x2c66   :  { %v3487_v60 = vpop.eup %3486 }
0x2c67   :  { %v3489_v36 = vpop.eup %3488  ;;  %v2751_v6 = vmul.f32 %v3487_v60, %v4399_v40  ;;  %v3565_v40 = vld [vmem:[%s4818_s0] sm:$0xff] }
0x2c68   :  { %v2727_v28 = vmul.f32 %v3489_v36, %v4401_v55  ;;  %vm1374_vm9 = vcmp.ne.s32.totalorder %v3565_v40, 2 }
0x2c69   :  { %v3065_v0 = vsel %vm1374_vm9, 1.0, %v3684_v13 }
0x2cca   :  { %v2754_v54 = vpop.permute.xlu0 %2753 }
0x2ccb   :  { %v2756_v3 = vmul.f32 %v3487_v60, %v2754_v54  ;;  %v2730_v4 = vpop.permute.xlu1 %2729 }
0x2ccc   :  { %v2732_v56 = vmul.f32 %v3489_v36, %v2730_v4 }
0x2ccd   :  { %2758 = vrot.lane.b32.xlu0 %v2756_v3, %s3687_s4 }
0x2cce   :  { %2734 = vrot.lane.b32.xlu1 %v2732_v56, %s3687_s4 }
0x2d3f   :  { %v2759_v22 = vpop.permute.xlu0 %2758 }
0x2d40   :  { %v2761_v26 = vadd.f32 %v2759_v22, %v2751_v6  ;;  %v2735_v30 = vpop.permute.xlu1 %2734 }
0x2d41   :  { %v2737_v41 = vadd.f32 %v2735_v30, %v2727_v28  ;;  %v4515_v28 = vadd.f32 %v4470_v37, %v4296_v10 }
0x2d42   :  { %3490 = vtanh.f32 %v2761_v26 }
0x2d43   :  { %3492 = vtanh.f32 %v2737_v41 }
0x2d4c   :  { %v3491_v31 = vpop.eup %3490 }
0x2d4d   :  { %v3493_v32 = vpop.eup %3492  ;;  %2764 = vrot.lane.b32.xlu0 %v3491_v31, %s3676_s13 }
0x2d4e   :  { %2740 = vrot.lane.b32.xlu1 %v3493_v32, %s3676_s13 }
0x2dbf   :  { %v2765_v27 = vpop.permute.xlu0 %2764 }
0x2dc0   :  { %v2767_v33 = vmul.f32 %v3487_v60, %v2765_v27  ;;  %v2741_v44 = vpop.permute.xlu1 %2740  ;;  %v4533_v27 = vadd.f32 %v4470_v37, %v4341_v8 }
0x2dc1   :  { %v2743_v55 = vmul.f32 %v3489_v36, %v2741_v44  ;;  %v4501_v36 = vadd.f32 %v4470_v37, %v4208_v57  ;;  %v4519_v57 = vadd.f32 %v4470_v37, %v4253_v47  ;;  %v4537_v47 = vadd.f32 %v4470_v37, %v4298_v12 }
0x2dc2   :  { %v2773_v21 = vrot.slane %v2767_v33, 7  ;;  %v4555_v12 = vadd.f32 %v4470_v37, %v4343_v52  ;;  %v4571_v52 = vadd.f32 %v4470_v37, %v4434_v5 }
0x2dc3   :  { %2769 = vrot.lane.b32.xlu0 %v2743_v55, %s3687_s4 }
0x2dc4   :  { %2774 = vrot.lane.b32.xlu1 %v2773_v21, %s3676_s13  ;;  %v4551_v21 = vadd.f32 %v4470_v37, %v4385_v23 }
0x2dc7   :  { %1379 = vperm.xlu0 %3244, %v3065_v0  }
0x2dc8   :  { %1807 = vperm.xlu1 %3245, %v3074_v45  }
0x2dcb   :  { %2234 = vperm.xlu0 %3244, %v3083_v7  }
0x2dcc   :  { %2661 = vperm.xlu1 %3245, %v3092_v48   ;;  %v4575_v48 = vadd.f32 %v4470_v37, %v4387_v29  ;;  %v4591_v29 = vadd.f32 %v4470_v37, %v4436_v14 }
0x2e35   :  { %v2770_v9 = vpop.permute.xlu0 %2769 }
0x2e36   :  { %v2775_v11 = vpop.permute.xlu1 %2774 }
0x2e37   :  { %v2777_v42 = vsel %vm282_vm7, %v2770_v9, %v2775_v11  ;;  %vm2910_vm7 = vcmask 1046528  }
0x2e38   :  { %v2778_v25 = vpack.c.bf16 %v2777_v42, %v2777_v42 }
0x2e3a   :  { %v2782_v38 = vshll.u32 %v2778_v25, 16  ;;  %v2780_v20 = vshrl.u32 %v2778_v25, 16 }
0x2e3c   :  { %v2784_v59 = vrot.slane %v2782_v38, 1 }
0x2e3e   :  { %v2785_v61 = vor.u32 %v2784_v59, %v2780_v20 }
0x2e40   :  { %3095 = vmatmul.mubr.msk.bf16.vlgmr.msra.gmra.mrb[44].mxu0 %vm1280_vm8, %v2785_v61 }
0x2e46   :  { %v1380_v53 = vpop.permute.xlu0 %1379 }
0x2e47   :  { %v4485_v63 = vmul.f32 %v1380_v53, %v4474_v39  ;;  %v1402_v50 = vrot.slane %v1380_v53, 1  ;;  %v1592_v1 = vrot.slane %v1380_v53, 4  ;;  %v1615_v43 = vrot.slane %v1380_v53, 5  ;;  %v1808_v60 = vpop.permute.xlu1 %1807 }
0x2e48   :  { %v4504_v3 = vmul.f32 %v1808_v60, %v4497_v46  ;;  %v2019_v4 = vrot.slane %v1808_v60, 4  ;;  %v1829_v6 = vrot.slane %v1808_v60, 1  ;;  %v2042_v41 = vrot.slane %v1808_v60, 5 }
0x2e49   :  { %v1384_v62 = vsel %vm1383_vm13, %v4485_v63, -inf  ;;  %v4490_v54 = vmul.f32 %v1402_v50, %v4478_v58  ;;  %v4493_v2 = vmul.f32 %v1592_v1, %v4482_v49  ;;  %v4511_v24 = vmul.f32 %v1615_v43, %v4501_v36 }
0x2e4a   :  { %1385 = vmax.xlane.f32.xlu0 %v1384_v62  ;;  %v1811_v26 = vsel %vm1383_vm13, %v4504_v3, -inf  ;;  %v4524_v30 = vmul.f32 %v2019_v4, %v4515_v28  ;;  %v2235_v31 = vpop.permute.xlu0 %2234  ;;  %v4529_v10 = vmul.f32 %v1829_v6, %v4519_v57  ;;  %v4547_v8 = vmul.f32 %v2042_v41, %v4537_v47 }
0x2e4b   :  { %v1405_v56 = vsel %vm1383_vm13, %v4490_v54, -inf  ;;  %v1595_v22 = vsel %vm1383_vm13, %v4493_v2, -inf  ;;  %v1618_v32 = vsel %vm1383_vm13, %v4511_v24, -inf  ;;  %v4540_v33 = vmul.f32 %v2235_v31, %v4533_v27  ;;  %v4562_v51 = vpop.permute.xlu1 %2661 }
0x2e4c   :  { %1406 = vmax.xlane.f32.xlu1 %v1405_v56  ;;  %v2446_v44 = vrot.slane %v2235_v31, 4  ;;  %v2022_v40 = vsel %vm1383_vm13, %v4524_v30, -inf  ;;  %v2256_v55 = vrot.slane %v2235_v31, 1  ;;  %v1832_v34 = vsel %vm1383_vm13, %v4529_v10, -inf }
0x2e4d   :  { %v2238_v0 = vsel %vm1383_vm13, %v4540_v33, -inf  ;;  %v2469_v45 = vrot.slane %v2235_v31, 5  ;;  %v2045_v7 = vsel %vm1383_vm13, %v4547_v8, -inf  ;;  %v4579_v9 = vmul.f32 %v4562_v51, %v4571_v52 }
0x2e4e   :  { %1596 = vmax.xlane.f32.xlu0 %v1595_v22  ;;  %v4560_v35 = vmul.f32 %v2446_v44, %v4551_v21  ;;  %v4567_v23 = vmul.f32 %v2256_v55, %v4555_v12  ;;  %v2683_v42 = vrot.slane %v4562_v51, 1  ;;  %v2879_v62 = vrot.slane %v4482_v49, 7 }
0x2e4f   :  { %v4587_v5 = vmul.f32 %v2469_v45, %v4575_v48  ;;  %v2665_v38 = vsel %vm1383_vm13, %v4579_v9, -inf  ;;  %v2914_v4 = vrot.slane %v4501_v36, 7  ;;  %v2882_v56 = vrot.slane %v4497_v46, 6 }
0x2e50   :  { %1812 = vmax.xlane.f32.xlu1 %v1811_v26  ;;  %v2449_v11 = vsel %vm1383_vm13, %v4560_v35, -inf  ;;  %v2259_v25 = vsel %vm1383_vm13, %v4567_v23, -inf  ;;  %v4598_v59 = vmul.f32 %v2683_v42, %v4591_v29  ;;  %v2917_v22 = vrot.slane %v4519_v57, 6 }
0x2e51   :  { %v2472_v20 = vsel %vm1383_vm13, %v4587_v5, -inf  ;;  %v2900_v41 = vsel %vm2899_vm14, %v4474_v39, %v2879_v62  ;;  %v2934_v49 = vsel %vm2899_vm14, %v4478_v58, %v2914_v4  ;;  %v2885_v55 = vrot.slane %v4515_v28, 5 }
0x2e52   :  { %1619 = vmax.xlane.f32.xlu0 %v1618_v32  ;;  %v2686_v61 = vsel %vm1383_vm13, %v4598_v59, -inf  ;;  %v2902_v32 = vsel %vm2901_vm15, %v2900_v41, %v2882_v56  ;;  %v2920_v39 = vrot.slane %v4537_v47, 5  ;;  %v2923_v58 = vrot.slane %v4555_v12, 4 }
0x2e53   :  { %v2891_v45 = vrot.slane %v4551_v21, 3  ;;  %v2894_v28 = vrot.slane %v4571_v52, 2 }
0x2e54   :  { %2023 = vmax.xlane.f32.xlu1 %v2022_v40  ;;  %v2935_v40 = vsel %vm2901_vm15, %v2934_v49, %v2917_v22  ;;  %v2832_v49 = vrot.slane %v4562_v51, 4 }
0x2e55   :  { %v2936_v21 = vsel %vm1383_vm13, %v2935_v40, %v2920_v39  ;;  %v2855_v40 = vrot.slane %v4562_v51, 5 }
0x2e56   :  { %1833 = vmax.xlane.f32.xlu0 %v1832_v34  ;;  %v2937_v52 = vsel %vm2904_vm3, %v2936_v21, %v2923_v58 }
0x2e58   :  { %2239 = vmax.xlane.f32.xlu1 %v2238_v0  ;;  %v2888_v0 = vrot.slane %v4533_v27, 4  ;;  %v2903_v27 = vsel %vm1383_vm13, %v2902_v32, %v2885_v55 }
0x2e5a   :  { %2046 = vmax.xlane.f32.xlu0 %v2045_v7  ;;  %v2926_v7 = vrot.slane %v4575_v48, 3  ;;  %v2905_v48 = vsel %vm2904_vm3, %v2903_v27, %v2888_v0 }
0x2e5c   :  { %2450 = vmax.xlane.f32.xlu1 %v2449_v11  ;;  %v2938_v56 = vsel %vm2906_vm5, %v2937_v52, %v2926_v7 }
0x2e5e   :  { %2260 = vmax.xlane.f32.xlu0 %v2259_v25 }
0x2e60   :  { %2666 = vmax.xlane.f32.xlu1 %v2665_v38  ;;  %v2929_v38 = vrot.slane %v4591_v29, 2 }
0x2e62   :  { %2473 = vmax.xlane.f32.xlu0 %v2472_v20 }
0x2e66   :  { %2687 = vmax.xlane.f32.xlu0 %v2686_v61  ;;  %v2907_v61 = vsel %vm2906_vm5, %v2905_v48, %v2891_v45 }
0x2ed7   :  { %v4602_v53 = vpop.xlane.xlu0 %1385 }
0x2ed8   :  { %v1387_v6 = vsub.f32 %v4485_v63, %v4602_v53 }
0x2ed9   :  { %v4606_v14 = vpop.xlane.xlu1 %1406 }
0x2eda   :  { %v1408_v26 = vsub.f32 %v4490_v54, %v4606_v14  ;;  %v1388_v44 = vmul.f32 1.442695, %v1387_v6  ;;  %v2909_v6 = vsel %vm2908_vm6, %v2907_v61, %v2894_v28 }
0x2edb   :  { %v4604_v50 = vpop.xlane.xlu0 %1596 }
0x2edc   :  { %v1598_v46 = vsub.f32 %v4493_v2, %v4604_v50  ;;  %v1409_v57 = vmul.f32 1.442695, %v1408_v26  ;;  %3494 = vpow2.f32 %v1388_v44  ;;  %v2939_v44 = vsel %vm2908_vm6, %v2938_v56, %v2929_v38 }
0x2edd   :  { %v4610_v43 = vpop.xlane.xlu1 %1812 }
0x2ede   :  { %v1814_v11 = vsub.f32 %v4504_v3, %v4610_v43  ;;  %v1599_v42 = vmul.f32 1.442695, %v1598_v46  ;;  %3496 = vpow2.f32 %v1409_v57 }
0x2edf   :  { %v4608_v1 = vpop.xlane.xlu0 %1619 }
0x2ee0   :  { %v1621_v34 = vsub.f32 %v4511_v24, %v4608_v1  ;;  %v1815_v62 = vmul.f32 1.442695, %v1814_v11  ;;  %3498 = vpow2.f32 %v1599_v42 }
0x2ee1   :  { %v4623_v31 = vpop.xlane.xlu1 %2023 }
0x2ee2   :  { %v1622_v12 = vmul.f32 1.442695, %v1621_v34  ;;  %v2025_v4 = vsub.f32 %v4524_v30, %v4623_v31 }
0x2ee3   :  { %v4612_v60 = vpop.xlane.xlu0 %1833 }
0x2ee4   :  { %v1835_v47 = vsub.f32 %v4529_v10, %v4612_v60  ;;  %3500 = vpow2.f32 %v1622_v12  ;;  %v2026_v57 = vmul.f32 1.442695, %v2025_v4 }
0x2ee5   :  { %v4644_v25 = vpop.xlane.xlu1 %2239  ;;  %3502 = vpow2.f32 %v1815_v62 }
0x2ee6   :  { %v1836_v22 = vmul.f32 1.442695, %v1835_v47  ;;  %v2241_v45 = vsub.f32 %v4540_v33, %v4644_v25  ;;  %v3495_v27 = vpop.eup %3494 }
0x2ee7   :  { %v4628_v36 = vpop.xlane.xlu0 %2046  ;;  %v1390_v56 = vsel %vm1383_vm13, %v3495_v27, 0.0 }
0x2ee8   :  { %v2048_v29 = vsub.f32 %v4547_v8, %v4628_v36  ;;  %3504 = vpow2.f32 %v1836_v22  ;;  %v3497_v48 = vpop.eup %3496  ;;  %v2242_v38 = vmul.f32 1.442695, %v2241_v45 }
0x2ee9   :  { %v4664_v34 = vpop.xlane.xlu1 %2450  ;;  %3506 = vpow2.f32 %v2026_v57 }
0x2eea   :  { %v2049_v28 = vmul.f32 1.442695, %v2048_v29  ;;  %v2452_v52 = vsub.f32 %v4560_v35, %v4664_v34 }
0x2eeb   :  { %v4649_v20 = vpop.xlane.xlu0 %2260 }
0x2eec   :  { %v2262_v51 = vsub.f32 %v4567_v23, %v4649_v20  ;;  %3508 = vpow2.f32 %v2049_v28 }
0x2eed   :  { %v4690_v62 = vpop.xlane.xlu1 %2666  ;;  %3510 = vpow2.f32 %v2242_v38 }
0x2eee   :  { %v2263_v61 = vmul.f32 1.442695, %v2262_v51 }
0x2eef   :  { %v4670_v7 = vpop.xlane.xlu0 %2473 }
0x2ef0   :  { %v2475_v4 = vsub.f32 %v4587_v5, %v4670_v7  ;;  %3512 = vpow2.f32 %v2263_v61  ;;  %v2993_v61 = vsel %vm109_vm4, 1.0, %v3684_v13 }
0x2ef1   :  { %v1607_v16 = vrot.slane %v2993_v61, 4 }
0x2ef3   :  { %v4695_v22 = vpop.xlane.xlu0 %2687 }
0x2f13   :  { %v2823_v26 = vpop.f32.mrb[44].mxu0 }
0x2f14   :  { %v2830_v41 = vadd.f32 %v4470_v37, %v2823_v26  ;;  %v2825_v32 = vpop.f32.mrb[45].mxu0  ;;  %v1411_v26 = vsel %vm1383_vm13, %v3497_v48, 0.0 }
0x2f15   :  { %v2831_v46 = vadd.f32 %v4470_v37, %v2825_v32  ;;  %v2827_v55 = vpop.f32.mrb[46].mxu0 }
0x2f16   :  { %v4666_v39 = vmul.f32 %v2832_v49, %v2830_v41  ;;  %v2897_v0 = vrot.slane %v2830_v41, 1  ;;  %v2828_v58 = vpop.f32.mrb[47].mxu0  ;;  %v2453_v41 = vmul.f32 1.442695, %v2452_v52  ;;  %v2668_v49 = vsub.f32 %v4579_v9, %v4690_v62 }
0x2f17   :  { %v4672_v11 = vmul.f32 %v2855_v40, %v2831_v46  ;;  %v2932_v37 = vrot.slane %v2831_v46, 1  ;;  %v2689_v46 = vsub.f32 %v4598_v59, %v4695_v22 }
0x2f18   :  { %v2911_v42 = vsel %vm2910_vm7, %v2909_v6, %v2897_v0  ;;  %v2835_v47 = vsel %vm1383_vm13, %v4666_v39, -inf  ;;  %v3499_v6 = vpop.eup %3498  ;;  %3514 = vpow2.f32 %v2453_v41  ;;  %v2669_v0 = vmul.f32 1.442695, %v2668_v49 }
0x2f19   :  { %2912 = vst [vmem:[%s4829_s11] sm:$0xff] %v2911_v42  ;;  %v2940_v12 = vsel %vm2910_vm7, %v2939_v44, %v2932_v37  ;;  %2836 = vmax.xlane.f32.xlu1 %v2835_v47  ;;  %v2858_v21 = vsel %vm1383_vm13, %v4672_v11, -inf  ;;  %v3501_v29 = vpop.eup %3500  ;;  %v2476_v44 = vmul.f32 1.442695, %v2475_v4  ;;  %v1601_v40 = vsel %vm1383_vm13, %v3499_v6, 0.0 }
0x2f1a   :  { %2941 = vst [vmem:[%s4830_s12] sm:$0xff] %v2940_v12  ;;  %2859 = vmax.xlane.f32.xlu0 %v2858_v21  ;;  %v3503_v32 = vpop.eup %3502  ;;  %v1624_v57 = vsel %vm1383_vm13, %v3501_v29, 0.0  ;;  %v2690_v58 = vmul.f32 1.442695, %v2689_v46  ;;  %v1418_v29 = vrot.slane %v2993_v61, 1  ;;  %v1396_v49 = vmul.f32 %v2993_v61, %v4485_v63 }
0x2f1b   :  { %v3505_v55 = vpop.eup %3504  ;;  %3516 = vpow2.f32 %v2476_v44  ;;  %v1817_v45 = vsel %vm1383_vm13, %v3503_v32, 0.0  ;;  %v1630_v46 = vrot.slane %v2993_v61, 5 }
0x2f1c   :  { %v3507_v37 = vpop.eup %3506  ;;  %v1838_v28 = vsel %vm1383_vm13, %v3505_v55, 0.0  ;;  %3518 = vpow2.f32 %v2669_v0  ;;  %v1420_v44 = vmul.f32 %v1418_v29, %v4490_v54  ;;  %v1397_v55 = vsel %vm1383_vm13, %v1396_v49, 0.0 }
0x2f1d   :  { %1391 = vadd.xlane.f32.xlu1 %v1390_v56  ;;  %v3509_v51 = vpop.eup %3508  ;;  %3520 = vpow2.f32 %v2690_v58  ;;  %v2028_v42 = vsel %vm1383_vm13, %v3507_v37, 0.0  ;;  %v1632_v0 = vmul.f32 %v1630_v46, %v4511_v24  ;;  %v2699_v46 = vrot.slane %v2996_v15, 1 }
0x2f1e   :  { %1412 = vadd.xlane.f32.xlu0 %v1411_v26  ;;  %v3511_v47 = vpop.eup %3510  ;;  %v2051_v27 = vsel %vm1383_vm13, %v3509_v51, 0.0  ;;  %v1421_v63 = vsel %vm1383_vm13, %v1420_v44, 0.0 }
0x2f1f   :  { %v3513_v12 = vpop.eup %3512  ;;  %v2244_v21 = vsel %vm1383_vm13, %v3511_v47, 0.0  ;;  %v1633_v37 = vsel %vm1383_vm13, %v1632_v0, 0.0 }
0x2f20   :  { %v2265_v38 = vsel %vm1383_vm13, %v3513_v12, 0.0 }
0x2f21   :  { %1602 = vadd.xlane.f32.xlu1 %v1601_v40  ;;  %v2994_v40 = vsel %vm110_vm2, 1.0, %v3684_v13 }
0x2f22   :  { %1625 = vadd.xlane.f32.xlu0 %v1624_v57  ;;  %v3515_v48 = vpop.eup %3514  ;;  %v1609_v57 = vmul.f32 %v1607_v16, %v4493_v2  ;;  %v1845_v58 = vrot.slane %v2994_v40, 1  ;;  %v2057_v51 = vrot.slane %v2994_v40, 5 }
0x2f23   :  { %v2455_v4 = vsel %vm1383_vm13, %v3515_v48, 0.0 }
0x2f24   :  { %v1610_v54 = vsel %vm1383_vm13, %v1609_v57, 0.0  ;;  %v1847_v19 = vmul.f32 %v1845_v58, %v4529_v10  ;;  %v2059_v47 = vmul.f32 %v2057_v51, %v4547_v8  ;;  %v2995_v8 = vsel %vm111_vm0, 1.0, %v3684_v13 }
0x2f25   :  { %1818 = vadd.xlane.f32.xlu1 %v1817_v45  ;;  %v3517_v52 = vpop.eup %3516  ;;  %v1823_v45 = vmul.f32 %v2994_v40, %v4504_v3  ;;  %v2272_v61 = vrot.slane %v2995_v8, 1  ;;  %v2484_v49 = vrot.slane %v2995_v8, 5  ;;  %v2701_v13 = vmul.f32 %v2699_v46, %v4598_v59 }
0x2f26   :  { %1839 = vadd.xlane.f32.xlu0 %v1838_v28  ;;  %v3519_v56 = vpop.eup %3518  ;;  %v2478_v6 = vsel %vm1383_vm13, %v3517_v52, 0.0  ;;  %v2034_v28 = vrot.slane %v2994_v40, 4  ;;  %v1848_v24 = vsel %vm1383_vm13, %v1847_v19, 0.0  ;;  %v2677_v40 = vmul.f32 %v2996_v15, %v4579_v9 }
0x2f27   :  { %v3521_v26 = vpop.eup %3520  ;;  %v2671_v41 = vsel %vm1383_vm13, %v3519_v56, 0.0  ;;  %v1824_v2 = vsel %vm1383_vm13, %v1823_v45, 0.0  ;;  %v2274_v29 = vmul.f32 %v2272_v61, %v4567_v23  ;;  %v2486_v16 = vmul.f32 %v2484_v49, %v4587_v5 }
0x2f28   :  { %v2692_v32 = vsel %vm1383_vm13, %v3521_v26, 0.0  ;;  %v2849_v57 = vmul.f32 %v2847_v17, %v4666_v39  ;;  %v2702_v5 = vsel %vm1383_vm13, %v2701_v13, 0.0  ;;  %vm2942_vm0 = vcmask 2048  }
0x2f29   :  { %2029 = vadd.xlane.f32.xlu1 %v2028_v42  ;;  %v2036_v42 = vmul.f32 %v2034_v28, %v4524_v30 }
0x2f2a   :  { %2052 = vadd.xlane.f32.xlu0 %v2051_v27  ;;  %v2060_v27 = vsel %vm1383_vm13, %v2059_v47, 0.0  ;;  %v2850_v9 = vsel %vm1383_vm13, %v2849_v57, 0.0 }
0x2f2b   :  { %v2037_v3 = vsel %vm1383_vm13, %v2036_v42, 0.0 }
0x2f2d   :  { %2245 = vadd.xlane.f32.xlu1 %v2244_v21 }
0x2f2e   :  { %2266 = vadd.xlane.f32.xlu0 %v2265_v38 }
0x2f31   :  { %2456 = vadd.xlane.f32.xlu1 %v2455_v4 }
0x2f32   :  { %2479 = vadd.xlane.f32.xlu0 %v2478_v6  ;;  %v2250_v6 = vmul.f32 %v2995_v8, %v4540_v33  ;;  %v2275_v33 = vsel %vm1383_vm13, %v2274_v29, 0.0 }
0x2f35   :  { %2672 = vadd.xlane.f32.xlu1 %v2671_v41  ;;  %v2461_v41 = vrot.slane %v2995_v8, 4 }
0x2f36   :  { %2693 = vadd.xlane.f32.xlu0 %v2692_v32  ;;  %v2251_v32 = vsel %vm1383_vm13, %v2250_v6, 0.0 }
0x2f37   :  { %v2463_v44 = vmul.f32 %v2461_v41, %v4560_v35  ;;  %v2678_v35 = vsel %vm1383_vm13, %v2677_v40, 0.0 }
0x2f39   :  { %1398 = vadd.xlane.f32.xlu1 %v1397_v55  ;;  %v2464_v23 = vsel %vm1383_vm13, %v2463_v44, 0.0  ;;  %v2487_v55 = vsel %vm1383_vm13, %v2486_v16, 0.0 }
0x2f3a   :  { %1422 = vadd.xlane.f32.xlu0 %v1421_v63  ;;  %v2872_v63 = vmul.f32 %v2870_v18, %v4672_v11 }
0x2f3c   :  { %v2873_v0 = vsel %vm1383_vm13, %v2872_v63, 0.0 }
0x2f3d   :  { %1611 = vadd.xlane.f32.xlu1 %v1610_v54 }
0x2f3e   :  { %1634 = vadd.xlane.f32.xlu0 %v1633_v37 }
0x2f41   :  { %1825 = vadd.xlane.f32.xlu1 %v1824_v2 }
0x2f42   :  { %1849 = vadd.xlane.f32.xlu0 %v1848_v24 }
0x2f45   :  { %2038 = vadd.xlane.f32.xlu1 %v2037_v3 }
0x2f46   :  { %2061 = vadd.xlane.f32.xlu0 %v2060_v27 }
0x2fa6   :  { %v4738_v10 = vpop.xlane.xlu1 %2836 }
0x2fa7   :  { %v2838_v12 = vsub.f32 %v4666_v39, %v4738_v10  ;;  %v4742_v21 = vpop.xlane.xlu0 %2859 }
0x2fa8   :  { %v2861_v30 = vsub.f32 %v4672_v11, %v4742_v21 }
0x2fa9   :  { %v2839_v48 = vmul.f32 1.442695, %v2838_v12 }
0x2faa   :  { %v2862_v38 = vmul.f32 1.442695, %v2861_v30  ;;  %v1392_v59 = vpop.xlane.xlu1 %1391 }
0x2fab   :  { %3522 = vpow2.f32 %v2839_v48  ;;  %v1413_v58 = vpop.xlane.xlu0 %1412 }
0x2fac   :  { %3524 = vpow2.f32 %v2862_v38 }
0x2fad   :  { %3526 = vlog2.f32 %v1392_v59 }
0x2fae   :  { %v1603_v54 = vpop.xlane.xlu1 %1602  ;;  %3528 = vlog2.f32 %v1413_v58 }
0x2faf   :  { %v1626_v45 = vpop.xlane.xlu0 %1625  ;;  %3530 = vlog2.f32 %v1603_v54 }
0x2fb0   :  { %3532 = vlog2.f32 %v1626_v45 }
0x2fb2   :  { %v1819_v37 = vpop.xlane.xlu1 %1818 }
0x2fb3   :  { %v1840_v19 = vpop.xlane.xlu0 %1839  ;;  %3534 = vlog2.f32 %v1819_v37 }
0x2fb4   :  { %3536 = vlog2.f32 %v1840_v19 }
0x2fb5   :  { %v3523_v52 = vpop.eup %3522 }
0x2fb6   :  { %v3525_v4 = vpop.eup %3524  ;;  %v2841_v56 = vsel %vm1383_vm13, %v3523_v52, 0.0  ;;  %v2030_v28 = vpop.xlane.xlu1 %2029 }
0x2fb7   :  { %2842 = vadd.xlane.f32.xlu1 %v2841_v56  ;;  %v2864_v26 = vsel %vm1383_vm13, %v3525_v4, 0.0  ;;  %v2053_v39 = vpop.xlane.xlu0 %2052  ;;  %3538 = vlog2.f32 %v2030_v28  ;;  %v3527_v8 = vpop.eup %3526 }
0x2fb8   :  { %2865 = vadd.xlane.f32.xlu0 %v2864_v26  ;;  %3540 = vlog2.f32 %v2053_v39  ;;  %v3529_v52 = vpop.eup %3528  ;;  %v1394_v44 = vmul.f32 0.6931472, %v3527_v8 }
0x2fb9   :  { %v3531_v61 = vpop.eup %3530  ;;  %v1415_v46 = vmul.f32 0.6931472, %v3529_v52 }
0x2fba   :  { %v2246_v51 = vpop.xlane.xlu1 %2245  ;;  %v3533_v4 = vpop.eup %3532  ;;  %v1605_v29 = vmul.f32 0.6931472, %v3531_v61 }
0x2fbb   :  { %2252 = vadd.xlane.f32.xlu1 %v2251_v32  ;;  %v2267_v2 = vpop.xlane.xlu0 %2266  ;;  %3542 = vlog2.f32 %v2246_v51  ;;  %v1628_v15 = vmul.f32 0.6931472, %v3533_v4  ;;  %v1416_v37 = vadd.f32 %v1415_v46, %v4606_v14 }
0x2fbc   :  { %2276 = vadd.xlane.f32.xlu0 %v2275_v33  ;;  %3544 = vlog2.f32 %v2267_v2  ;;  %v1606_v17 = vadd.f32 %v1605_v29, %v4604_v50 }
0x2fbd   :  { %v3535_v56 = vpop.eup %3534 }
0x2fbe   :  { %v2457_v42 = vpop.xlane.xlu1 %2456  ;;  %v3537_v26 = vpop.eup %3536  ;;  %v1821_v33 = vmul.f32 0.6931472, %v3535_v56 }
0x2fbf   :  { %2465 = vadd.xlane.f32.xlu1 %v2464_v23  ;;  %v2480_v24 = vpop.xlane.xlu0 %2479  ;;  %3546 = vlog2.f32 %v2457_v42  ;;  %v1842_v23 = vmul.f32 0.6931472, %v3537_v26 }
0x2fc0   :  { %2488 = vadd.xlane.f32.xlu0 %v2487_v55  ;;  %3548 = vlog2.f32 %v2480_v24  ;;  %v1822_v58 = vadd.f32 %v1821_v33, %v4610_v43 }
0x2fc1   :  { %v3539_v49 = vpop.eup %3538  ;;  %v1843_v19 = vadd.f32 %v1842_v23, %v4612_v60 }
0x2fc2   :  { %v2673_v11 = vpop.xlane.xlu1 %2672  ;;  %v3541_v32 = vpop.eup %3540  ;;  %v2032_v13 = vmul.f32 0.6931472, %v3539_v49 }
0x2fc3   :  { %2679 = vadd.xlane.f32.xlu1 %v2678_v35  ;;  %v2694_v47 = vpop.xlane.xlu0 %2693  ;;  %3550 = vlog2.f32 %v2673_v11  ;;  %v2055_v57 = vmul.f32 0.6931472, %v3541_v32 }
0x2fc4   :  { %2703 = vadd.xlane.f32.xlu0 %v2702_v5  ;;  %3552 = vlog2.f32 %v2694_v47  ;;  %v1629_v5 = vadd.f32 %v1628_v15, %v4608_v1 }
0x2fc5   :  { %v3543_v16 = vpop.eup %3542  ;;  %v2056_v14 = vadd.f32 %v2055_v57, %v4628_v36 }
0x2fc6   :  { %v4772_v3 = vpop.xlane.xlu1 %1398  ;;  %v3545_v55 = vpop.eup %3544 }
0x2fc7   :  { %2851 = vadd.xlane.f32.xlu1 %v2850_v9  ;;  %v4774_v27 = vpop.xlane.xlu0 %1422  ;;  %v2248_v9 = vmul.f32 0.6931472, %v3543_v16  ;;  %v2269_v45 = vmul.f32 0.6931472, %v3545_v55 }
0x2fc8   :  { %2874 = vadd.xlane.f32.xlu0 %v2873_v0  ;;  %v1395_v0 = vadd.f32 %v1394_v44, %v4602_v53  ;;  %v2033_v53 = vadd.f32 %v2032_v13, %v4623_v31  ;;  %v1424_v43 = vsub.f32 %v1416_v37, %v4774_v27 }
0x2fc9   :  { %v3547_v35 = vpop.eup %3546 }
0x2fca   :  { %v4776_v12 = vpop.xlane.xlu1 %1611  ;;  %v3549_v63 = vpop.eup %3548  ;;  %v2459_v1 = vmul.f32 0.6931472, %v3547_v35  ;;  %v1400_v51 = vsub.f32 %v1395_v0, %v4772_v3 }
0x2fcb   :  { %v4778_v30 = vpop.xlane.xlu0 %1634  ;;  %v1613_v59 = vsub.f32 %v1606_v17, %v4776_v12  ;;  %v2482_v24 = vmul.f32 0.6931472, %v3549_v63 }
0x2fcc   :  { %v1636_v50 = vsub.f32 %v1629_v5, %v4778_v30  ;;  %v2249_v30 = vadd.f32 %v2248_v9, %v4644_v25  ;;  %v2460_v56 = vadd.f32 %v2459_v1, %v4664_v34 }
0x2fcd   :  { %v3551_v54 = vpop.eup %3550  ;;  %v1614_v12 = vadd.f32 %v1613_v59, %v1400_v51  ;;  %v2483_v36 = vadd.f32 %v2482_v24, %v4670_v7 }
0x2fce   :  { %v4780_v48 = vpop.xlane.xlu1 %1825  ;;  %v3553_v39 = vpop.eup %3552  ;;  %v2675_v47 = vmul.f32 0.6931472, %v3551_v54  ;;  %v1637_v52 = vadd.f32 %v1636_v50, %v1424_v43 }
0x2fcf   :  { %v4782_v38 = vpop.xlane.xlu0 %1849  ;;  %v1827_v2 = vsub.f32 %v1822_v58, %v4780_v48  ;;  %v2696_v8 = vmul.f32 0.6931472, %v3553_v39  ;;  %v2270_v48 = vadd.f32 %v2269_v45, %v4649_v20 }
0x2fd0   :  { %v1851_v11 = vsub.f32 %v1843_v19, %v4782_v38  ;;  %v2676_v25 = vadd.f32 %v2675_v47, %v4690_v62 }
0x2fd1   :  { %v1828_v31 = vadd.f32 %v1827_v2, %v1614_v12  ;;  %v2697_v33 = vadd.f32 %v2696_v8, %v4695_v22 }
0x2fd2   :  { %v2039_v6 = vpop.xlane.xlu1 %2038  ;;  %v1852_v26 = vadd.f32 %v1851_v11, %v1637_v52 }
0x2fd3   :  { %v2062_v41 = vpop.xlane.xlu0 %2061  ;;  %v2040_v60 = vsub.f32 %v2033_v53, %v2039_v6 }
0x2fd4   :  { %v2063_v3 = vsub.f32 %v2056_v14, %v2062_v41 }
0x2fd5   :  { %v2041_v49 = vadd.f32 %v2040_v60, %v1828_v31 }
0x2fd6   :  { %v2064_v32 = vadd.f32 %v2063_v3, %v1852_v26 }
0x3044   :  { %v2843_v40 = vpop.xlane.xlu1 %2842 }
0x3045   :  { %3554 = vlog2.f32 %v2843_v40  ;;  %v2866_v18 = vpop.xlane.xlu0 %2865 }
0x3046   :  { %3556 = vlog2.f32 %v2866_v18 }
0x3048   :  { %v2253_v28 = vpop.xlane.xlu1 %2252 }
0x3049   :  { %v2277_v42 = vpop.xlane.xlu0 %2276  ;;  %v2254_v4 = vsub.f32 %v2249_v30, %v2253_v28 }
0x304a   :  { %v2278_v38 = vsub.f32 %v2270_v48, %v2277_v42 }
0x304b   :  { %v2255_v46 = vadd.f32 %v2254_v4, %v2041_v49 }
0x304c   :  { %v2466_v61 = vpop.xlane.xlu1 %2465  ;;  %v2279_v40 = vadd.f32 %v2278_v38, %v2064_v32 }
0x304d   :  { %v2489_v27 = vpop.xlane.xlu0 %2488  ;;  %v2467_v6 = vsub.f32 %v2460_v56, %v2466_v61 }
0x304e   :  { %v2490_v44 = vsub.f32 %v2483_v36, %v2489_v27 }
0x304f   :  { %v3555_v29 = vpop.eup %3554  ;;  %v2468_v13 = vadd.f32 %v2467_v6, %v2255_v46 }
0x3050   :  { %v3557_v15 = vpop.eup %3556  ;;  %v2845_v41 = vmul.f32 0.6931472, %v3555_v29  ;;  %v2680_v20 = vpop.xlane.xlu1 %2679  ;;  %v2491_v18 = vadd.f32 %v2490_v44, %v2279_v40 }
0x3051   :  { %v2868_v16 = vmul.f32 0.6931472, %v3557_v15  ;;  %v2681_v34 = vsub.f32 %v2676_v25, %v2680_v20  ;;  %v2704_v23 = vpop.xlane.xlu0 %2703 }
0x3052   :  { %v2705_v55 = vsub.f32 %v2697_v33, %v2704_v23  ;;  %v2846_v7 = vadd.f32 %v2845_v41, %v4738_v10 }
0x3053   :  { %v2869_v17 = vadd.f32 %v2868_v16, %v4742_v21  ;;  %v2682_v35 = vadd.f32 %v2681_v34, %v2468_v13 }
0x3054   :  { %v2852_v62 = vpop.xlane.xlu1 %2851  ;;  %v2706_v63 = vadd.f32 %v2705_v55, %v2491_v18 }
0x3055   :  { %v2853_v57 = vsub.f32 %v2846_v7, %v2852_v62  ;;  %v2875_v5 = vpop.xlane.xlu0 %2874 }
0x3056   :  { %v2876_v9 = vsub.f32 %v2869_v17, %v2875_v5 }
0x3057   :  { %v2854_v22 = vadd.f32 %v2853_v57, %v2682_v35 }
0x3058   :  { %v2877_v0 = vadd.f32 %v2876_v9, %v2706_v63 }
0x3059   :  { %v2943_v59 = vsel %vm2942_vm0, %v2854_v22, 0.0 }
0x305a   :  { %2944 = vadd.xlane.f32.xlu1 %v2943_v59  ;;  %v2953_v58 = vsel %vm2942_vm0, %v2877_v0, 0.0 }
0x305b   :  { %2954 = vadd.xlane.f32.xlu0 %v2953_v58 }
0x30e7   :  { %v2945_v54 = vpop.xlane.xlu1 %2944 }
0x30e8   :  { %v2946_v45 = vrot.slane %v2945_v54, 4  ;;  %v2955_v10 = vpop.xlane.xlu0 %2954 }
0x30e9   :  { %v2956_v37 = vrot.slane %v2955_v10, 4 }
0x30ea   :  { %v2947_v50 = vadd.f32 %v2946_v45, %v2945_v54 }
0x30eb   :  { %v2957_v21 = vadd.f32 %v2956_v37, %v2955_v10 }
0x30ec   :  { %v2948_v19 = vrot.slane %v2947_v50, 2 }
0x30ed   :  { %v2958_v28 = vrot.slane %v2957_v21, 2 }
0x30ee   :  { %v2949_v39 = vadd.f32 %v2948_v19, %v2947_v50 }
0x30ef   :  { %v2959_v1 = vadd.f32 %v2958_v28, %v2957_v21 }
0x30f0   :  { %v2950_v51 = vrot.slane %v2949_v39, 1 }
0x30f1   :  { %v2960_v2 = vrot.slane %v2959_v1, 1 }
0x30f2   :  { %v2951_v53 = vadd.f32 %v2950_v51, %v2949_v39 }
0x30f3   :  { %v2961_v42 = vadd.f32 %v2960_v2, %v2959_v1 }
0x30f4   :  { %3226 = vpush %v2951_v53 }
0x30f5   :  { %3228 = vpush %v2961_v42 }
0x3125   :  { %s3227_s11 = spop %3226 }
0x3126   :  { %s3229_s12 = spop %3228 }
0x3127   :  { %s2963_s20 = sadd.f32 %s3229_s12, %s3227_s11 }
0x3129   :  { %s2966_s7 = smul.f32 0.041666668, %s2963_s20 }
0x312b   :  { %2968 = sst [smem:[#allocation10]] %s2966_s7 }
0x312c   :  { %3666 = shalt.err (!%p3663_p6)
}
0x312d   :  { %s3688_s16 = smov [#allocation10]  }
0x312e   :  { %2976 = dma.smem_to_hbm %s3688_s16, 16, %s4828_s10, [#allocation4]  }
0x312f   :  { %3673 = dma.done.wait [#allocation4], 16  }
0x3130   :  { %3674 = vsyncadd [#allocation4], 4294967280 }
0x3131   :  { %2988 = sfence }
0x3132   :  { %2989 = vsyncpa [#allocation3], 1 }
0x3133   :  { %2990 = vsyncpa [#allocation6], 1 }
0x3134   :  { %2991 = vsyncpa [#allocation9], 1 }
0x3135   :  { %2992 = vsyncpa [#allocation4], 1 }

</bundles_post_ra>
